<compile_context>
chip_gen: v7x
topology: tpu7x:2x2x1
jax: 0.10.0
libtpu: 0.0.40
codegen_flags: <defaults>
</compile_context>

<pallas_src>
import functools

import jax
import jax.numpy as jnp
from jax.experimental import pallas as pl
from jax.experimental.pallas import tpu as pltpu

_BN_EPS = 1e-5


# ----------------------------------------------------------------------------
# Kernel 1: initial ConvTranspose2d(k, C0, 4, 1, 0) on a 1x1 input == a matmul
# ----------------------------------------------------------------------------
def _initial_kernel(z_ref, w_ref, y_ref):
    # z_ref: (N, K) f32, w_ref: (K, 16*C0) bf16, y_ref: (N, 16*C0) bf16 (pre-BN)
    acc = jnp.dot(z_ref[...].astype(jnp.bfloat16), w_ref[...],
                  preferred_element_type=jnp.float32)
    y_ref[...] = acc.astype(y_ref.dtype)


def _initial_deconv(z, w0):
    n = z.shape[0]
    m = w0.shape[1]
    vmem = pl.BlockSpec(memory_space=pltpu.MemorySpace.VMEM)
    return pl.pallas_call(
        _initial_kernel,
        out_shape=jax.ShapeDtypeStruct((n, m), jnp.bfloat16),
        in_specs=[vmem, vmem],
        out_specs=vmem,
    )(z, w0)


# ----------------------------------------------------------------------------
# Kernel 2: polyphase stride-2 ConvTranspose2d(Cin, Cout, 4, 2, 1), one image
#           per grid step, with a fused (prev-layer BN + ReLU) input prologue
#           and either per-image BN partial stats (pyramid) or tanh (final).
# ----------------------------------------------------------------------------
def _deconv_kernel(x_ref, nb_ref, w_ref, y_ref, *rest, final):
    """x_ref : (1, H, W, Cin)       bf16  previous layer's pre-BN activation
    nb_ref: (2, Cin)             f32   previous layer's fused BN: scale, bias
    w_ref : (4, 4*Cin, Cout)     bf16  per-phase K-fused taps (phase = 2*ry+rx)
    y_ref : (1, H, 2, W, 2*Cout)       pre-BN output (bf16) or tanh output
                                       (f32, final); the 4 phases interleave
                                       via a free reshape to (N, 2H, 2W, Cout)
    st_ref: (1, 2, Cout)         f32   per-image (sum, sum_sq) BN partials
                                       (pyramid layers only)
    xp_ref: (H+2, W+2, Cin)      bf16  scratch: zero-padded normalized input"""
    xp_ref = rest[-1]
    st_ref = None if final else rest[0]

    _, h, w, cin = x_ref.shape
    cout = w_ref.shape[-1]

    # ---- prologue: previous layer's BatchNorm (global batch stats folded into
    #      scale/bias) + ReLU, then zero-pad by 1 directly in VMEM.
    scale = nb_ref[0:1, :]                                  # (1, Cin) f32
    bias = nb_ref[1:2, :]                                   # (1, Cin) f32
    xn = jnp.maximum(x_ref[0] * scale + bias, 0.0)          # (H, W, Cin) f32
    xp_ref[...] = jnp.zeros(xp_ref.shape, xp_ref.dtype)
    xp_ref[1:h + 1, 1:w + 1, :] = xn.astype(xp_ref.dtype)

    if not final:
        stat_s = jnp.zeros((1, cout), jnp.float32)
        stat_q = jnp.zeros((1, cout), jnp.float32)

    # ---- polyphase 2x2 convs: output pixel (2*oy+ry, 2*ox+rx) only touches
    #      4 taps of the un-dilated input -- no multiplies by inserted zeros.
    for ry in (0, 1):
        cols = []
        for rx in (0, 1):
            taps = [xp_ref[ry + dy:ry + dy + h, rx + dx:rx + dx + w, :]
                    for dy in (0, 1) for dx in (0, 1)]
            patch = jnp.concatenate(taps, axis=-1).reshape(h * w, 4 * cin)
            acc = jnp.dot(patch, w_ref[2 * ry + rx],
                          preferred_element_type=jnp.float32)   # (H*W, Cout) f32
            if not final:
                stat_s = stat_s + jnp.sum(acc, axis=0, keepdims=True)
                stat_q = stat_q + jnp.sum(acc * acc, axis=0, keepdims=True)
            cols.append(acc)
        row = jnp.concatenate(cols, axis=-1).reshape(h, w, 2 * cout)
        if final:
            row = jnp.tanh(row)
        y_ref[0, :, ry, :, :] = row.astype(y_ref.dtype)

    if not final:
        st_ref[0, 0:1, :] = stat_s
        st_ref[0, 1:2, :] = stat_q


def _polyphase_deconv(x, nb, w, *, final):
    n, h, wd, cin = x.shape
    cout = w.shape[-1]
    y_shape = (n, h, 2, wd, 2 * cout)
    y_block = pl.BlockSpec((1, h, 2, wd, 2 * cout), lambda i: (i, 0, 0, 0, 0))
    if final:
        out_shape = jax.ShapeDtypeStruct(y_shape, jnp.float32)
        out_specs = y_block
        # TODO(synk): the nc=3 final output keeps channels on the lane axis
        # (masked stores); a fully lane-dense NCHW store needs an in-kernel
        # lane-merge relayout that is deliberately avoided here for robustness.
    else:
        out_shape = (jax.ShapeDtypeStruct(y_shape, jnp.bfloat16),
                     jax.ShapeDtypeStruct((n, 2, cout), jnp.float32))
        out_specs = (y_block, pl.BlockSpec((1, 2, cout), lambda i: (i, 0, 0)))
    return pl.pallas_call(
        functools.partial(_deconv_kernel, final=final),
        grid=(n,),
        in_specs=[
            pl.BlockSpec((1, h, wd, cin), lambda i: (i, 0, 0, 0)),
            pl.BlockSpec((2, cin), lambda i: (0, 0)),
            pl.BlockSpec((4, 4 * cin, cout), lambda i: (0, 0, 0)),
        ],
        out_specs=out_specs,
        out_shape=out_shape,
        scratch_shapes=[pltpu.VMEM((h + 2, wd + 2, cin), jnp.bfloat16)],
        compiler_params=pltpu.CompilerParams(
            dimension_semantics=("parallel",)),
    )(x, nb, w)


# ----------------------------------------------------------------------------
# BatchNorm (training-mode batch stats) folded into per-channel scale / bias
# ----------------------------------------------------------------------------
def _bn_scale_bias(s, sq, count, gamma, beta):
    mean = s / count
    var = jnp.maximum(sq / count - mean * mean, 0.0)      # biased batch var
    scale = gamma * jax.lax.rsqrt(var + _BN_EPS)
    return jnp.stack([scale, beta - mean * scale]).astype(jnp.float32)  # (2, C)


# ----------------------------------------------------------------------------
# Parameters (PyTorch layout) and one-time kernel-layout preparation
# ----------------------------------------------------------------------------
def init_generator_params(key, isize, nc, k=100, ngf=64):
    assert isize % 16 == 0, "isize has to be a multiple of 16"
    cngf, tisize = ngf // 2, 4
    while tisize != isize:
        cngf, tisize = cngf * 2, tisize * 2

    keys = iter(jax.random.split(key, 16))

    def w(cin, cout):
        return 0.05 * jax.random.normal(next(keys), (cin, cout, 4, 4), jnp.float32)

    params = {"initial": {"w": w(k, cngf),
                          "gamma": jnp.ones((cngf,), jnp.float32),
                          "beta": jnp.zeros((cngf,), jnp.float32)},
              "pyramid": []}
    csize, c = 4, cngf
    while csize < isize // 2:
        params["pyramid"].append({"w": w(c, c // 2),
                                  "gamma": jnp.ones((c // 2,), jnp.float32),
                                  "beta": jnp.zeros((c // 2,), jnp.float32)})
        c, csize = c // 2, csize * 2
    params["final"] = {"w": w(c, nc)}
    return params


def _phase_fused_weights(w_pt):
    """(Cin, Cout, 4, 4) ConvTranspose2d weight -> (4, 4*Cin, Cout) bf16
    polyphase weights: phase p = 2*ry + rx, K axis = taps (dy, dx) x Cin."""
    wf = jnp.transpose(jnp.flip(w_pt, axis=(2, 3)), (2, 3, 0, 1))  # (ky,kx,Ci,Co)
    phases = []
    for ry in (0, 1):
        for rx in (0, 1):
            taps = [wf[ry + 2 * dy, rx + 2 * dx]
                    for dy in (0, 1) for dx in (0, 1)]             # (Cin, Cout)
            phases.append(jnp.concatenate(taps, axis=0))           # (4*Cin, Cout)
    return jnp.stack(phases).astype(jnp.bfloat16)                  # (4, 4*Cin, Cout)


def prepare_kernel_params(params):
    """One-time conversion (flip / transpose / K-fusion / bf16 cast) of the
    PyTorch-layout weights -- nothing is re-shuffled per forward call."""
    w0 = params["initial"]["w"]                                   # (K, C0, 4, 4)
    k = w0.shape[0]
    return {"initial": {"w": jnp.transpose(w0, (0, 2, 3, 1)).reshape(k, -1)
                                .astype(jnp.bfloat16),
                        "gamma": params["initial"]["gamma"],
                        "beta": params["initial"]["beta"]},
            "pyramid": [{"w": _phase_fused_weights(p["w"]),
                         "gamma": p["gamma"], "beta": p["beta"]}
                        for p in params["pyramid"]],
            "final": {"w": _phase_fused_weights(params["final"]["w"])}}


# ----------------------------------------------------------------------------
# Forward pass
# ----------------------------------------------------------------------------
def generator_forward(kparams, z_nchw):
    """z_nchw: (N, k, 1, 1) f32 -> (N, nc, isize, isize) f32."""
    n = z_nchw.shape[0]
    z = z_nchw.reshape(n, -1).astype(jnp.float32)

    # initial 1x1 -> 4x4 deconv (a single matmul); its BN+ReLU is fused into
    # the next kernel's input prologue via a per-channel (scale, bias).
    w0 = kparams["initial"]["w"]
    c0 = w0.shape[1] // 16
    y = _initial_deconv(z, w0)                          # (N, 16*C0) bf16, pre-BN
    x = y.reshape(n, 4, 4, c0)                          # free reshape (NHWC)
    xf = x.astype(jnp.float32)
    nb = _bn_scale_bias(jnp.sum(xf, axis=(0, 1, 2)),
                        jnp.sum(xf * xf, axis=(0, 1, 2)),
                        n * 16,
                        kparams["initial"]["gamma"], kparams["initial"]["beta"])

    # pyramid: stride-2 deconvs; each kernel normalizes+ReLUs its input with
    # the previous layer's stats and emits per-image BN partials for its own.
    for layer in kparams["pyramid"]:
        h, wd = x.shape[1], x.shape[2]
        cout = layer["w"].shape[-1]
        y, st = _polyphase_deconv(x, nb, layer["w"], final=False)
        x = y.reshape(n, 2 * h, 2 * wd, cout)           # free phase interleave
        tot = jnp.sum(st, axis=0)                       # (2, Cout) global sums
        nb = _bn_scale_bias(tot[0], tot[1], n * (2 * h) * (2 * wd),
                            layer["gamma"], layer["beta"])

    # final: stride-2 deconv + tanh (no BN, no dummy gamma/beta inputs).
    h, wd = x.shape[1], x.shape[2]
    nc = kparams["final"]["w"].shape[-1]
    yf = _polyphase_deconv(x, nb, kparams["final"]["w"], final=True)
    out = yf.reshape(n, 2 * h, 2 * wd, nc)
    # TODO(synk): BatchNorm running_mean/running_var updates (training-time
    # side effects) are not modeled; only the forward output is produced.
    return jnp.transpose(out, (0, 3, 1, 2))             # NHWC -> NCHW


# ----------------------------------------------------------------------------
# Pure-JAX reference (for numerical verification only)
# ----------------------------------------------------------------------------
def _convT_ref(x_nchw, w_pt, stride, pad):
    k = 4
    q = k - 1 - pad
    w_oihw = jnp.flip(w_pt, axis=(2, 3)).transpose(1, 0, 2, 3)
    return jax.lax.conv_general_dilated(
        x_nchw, w_oihw, window_strides=(1, 1),
        padding=[(q, q), (q, q)], lhs_dilation=(stride, stride),
        dimension_numbers=("NCHW", "OIHW", "NCHW"),
        precision=jax.lax.Precision.HIGHEST)


def _bn_relu_ref(x_nchw, gamma, beta):
    mean = jnp.mean(x_nchw, axis=(0, 2, 3), keepdims=True)
    var = jnp.mean(jnp.square(x_nchw - mean), axis=(0, 2, 3), keepdims=True)
    y = (x_nchw - mean) * jax.lax.rsqrt(var + _BN_EPS)
    y = y * gamma.reshape(1, -1, 1, 1) + beta.reshape(1, -1, 1, 1)
    return jnp.maximum(y, 0.0)


def generator_ref(params, z_nchw):
    p = params["initial"]
    x = _bn_relu_ref(_convT_ref(z_nchw, p["w"], 1, 0), p["gamma"], p["beta"])
    for p in params["pyramid"]:
        x = _bn_relu_ref(_convT_ref(x, p["w"], 2, 1), p["gamma"], p["beta"])
    return jnp.tanh(_convT_ref(x, params["final"]["w"], 2, 1))


# ----------------------------------------------------------------------------
if __name__ == "__main__":
    N, isize, nc, k, ngf = 2, 16, 3, 16, 8  # small shapes; isize % 16 == 0

    key = jax.random.PRNGKey(0)
    pkey, zkey = jax.random.split(key)
    params = init_generator_params(pkey, isize, nc, k=k, ngf=ngf)
    kparams = prepare_kernel_params(params)   # one-time weight re-layout
    z = jax.random.normal(zkey, (N, k, 1, 1), jnp.float32)

    fwd = jax.jit(generator_forward)
    out = jax.block_until_ready(fwd(kparams, z))
    ref = jax.block_until_ready(generator_ref(params, z))

    assert out.shape == (N, nc, isize, isize), out.shape
    assert out.dtype == jnp.float32
    max_err = float(jnp.max(jnp.abs(out - ref)))
    assert max_err < 3e-2, f"mismatch vs reference: max abs err {max_err}"

    print("KERNEL_OK")
</pallas_src>

<mosaic_0001>
module attributes {stable_mosaic.version = 11 : i64} {
  func.func @_initial_kernel(%arg0: memref<2x16xf32, #tpu.memory_space<vmem>>, %arg1: memref<16x256xbf16, #tpu.memory_space<vmem>>, %arg2: memref<2x256xbf16, #tpu.memory_space<vmem>>) attributes {dimension_semantics = [], scalar_prefetch = 0 : i64, scratch_operands = 0 : i64, tpu.core_type = #tpu.core_type<tc>} {
    %c0 = arith.constant 0 : index
    %c0_0 = arith.constant 0 : index
    %0 = vector.load %arg0[%c0, %c0_0] : memref<2x16xf32, #tpu.memory_space<vmem>>, vector<2x16xf32>
    %1 = arith.truncf %0 : vector<2x16xf32> to vector<2x16xbf16>
    %c0_1 = arith.constant 0 : index
    %c0_2 = arith.constant 0 : index
    %2 = vector.load %arg1[%c0_1, %c0_2] : memref<16x256xbf16, #tpu.memory_space<vmem>>, vector<16x256xbf16>
    %cst = arith.constant dense<0.000000e+00> : vector<2x256xf32>
    %3 = tpu.matmul %1, %2, %cst {dimension_numbers = #tpu.dot_dimension_numbers<[1], [0], [0], [1], [0, 0, 1, 1], [], []>} : vector<2x16xbf16>, vector<16x256xbf16>, vector<2x256xf32> -> vector<2x256xf32>
    %4 = arith.truncf %3 : vector<2x256xf32> to vector<2x256xbf16>
    %c0_3 = arith.constant 0 : index
    %c0_4 = arith.constant 0 : index
    %5 = vector.load %arg2[%c0_3, %c0_4] : memref<2x256xbf16, #tpu.memory_space<vmem>>, vector<2x256xbf16>
    tpu.vector_store %arg2[%c0_3, %c0_4], %4 {strides = array<i32>} : memref<2x256xbf16, #tpu.memory_space<vmem>>, vector<2x256xbf16>,
    return
  }
}

module attributes {stable_mosaic.version = 11 : i64} {
  func.func @_deconv_kernel(%arg0: i32, %arg1: memref<1x4x4x16xbf16, #tpu.memory_space<vmem>>, %arg2: memref<2x16xf32, #tpu.memory_space<vmem>>, %arg3: memref<4x64x8xbf16, #tpu.memory_space<vmem>>, %arg4: memref<1x4x2x4x16xbf16, #tpu.memory_space<vmem>>, %arg5: memref<1x2x8xf32, #tpu.memory_space<vmem>>, %arg6: memref<6x6x16xbf16, #tpu.memory_space<vmem>>) attributes {dimension_semantics = [#tpu.dimension_semantics<parallel>], iteration_bounds = array<i64: 2>, scalar_prefetch = 0 : i64, scratch_operands = 1 : i64, tpu.core_type = #tpu.core_type<tc>, window_params = [{transform_indices = @transform_0, window_bounds = array<i64: 1, 4, 4, 16>}, {pipeline_mode = #tpu.pipeline_mode<synchronous>, transform_indices = @transform_1, window_bounds = array<i64: 2, 16>}, {pipeline_mode = #tpu.pipeline_mode<synchronous>, transform_indices = @transform_2, window_bounds = array<i64: 4, 64, 8>}, {transform_indices = @transform_3, window_bounds = array<i64: 1, 4, 2, 4, 16>}, {transform_indices = @transform_4, window_bounds = array<i64: 1, 2, 8>}]} {
    %c0 = arith.constant 0 : index
    %c0_0 = arith.constant 0 : index
    %0 = vector.load %arg2[%c0, %c0_0] : memref<2x16xf32, #tpu.memory_space<vmem>>, vector<1x16xf32>
    %c1 = arith.constant 1 : index
    %c0_1 = arith.constant 0 : index
    %1 = vector.load %arg2[%c1, %c0_1] : memref<2x16xf32, #tpu.memory_space<vmem>>, vector<1x16xf32>
    %c0_2 = arith.constant 0 : index
    %c0_3 = arith.constant 0 : index
    %c0_4 = arith.constant 0 : index
    %c0_5 = arith.constant 0 : index
    %2 = vector.load %arg1[%c0_2, %c0_3, %c0_4, %c0_5] : memref<1x4x4x16xbf16, #tpu.memory_space<vmem>>, vector<1x4x4x16xbf16>
    %3 = vector.shape_cast %2 : vector<1x4x4x16xbf16> to vector<4x4x16xbf16>
    %4 = arith.extf %3 : vector<4x4x16xbf16> to vector<4x4x16xf32>
    %5 = vector.shape_cast %0 : vector<1x16xf32> to vector<1x1x16xf32>
    %6 = vector.broadcast %5 : vector<1x1x16xf32> to vector<4x4x16xf32>
    %7 = arith.mulf %4, %6 : vector<4x4x16xf32>
    %8 = vector.shape_cast %1 : vector<1x16xf32> to vector<1x1x16xf32>
    %9 = vector.broadcast %8 : vector<1x1x16xf32> to vector<4x4x16xf32>
    %10 = arith.addf %7, %9 : vector<4x4x16xf32>
    %cst = arith.constant 0.000000e+00 : f32
    %11 = vector.broadcast %cst : f32 to vector<4x4x16xf32>
    %12 = arith.maximumf %10, %11 : vector<4x4x16xf32>
    %cst_6 = arith.constant 0.000000e+00 : bf16
    %13 = vector.broadcast %cst_6 : bf16 to vector<6x6x16xbf16>
    %c0_7 = arith.constant 0 : index
    %c0_8 = arith.constant 0 : index
    %c0_9 = arith.constant 0 : index
    %14 = vector.load %arg6[%c0_7, %c0_8, %c0_9] : memref<6x6x16xbf16, #tpu.memory_space<vmem>>, vector<6x6x16xbf16>
    tpu.vector_store %arg6[%c0_7, %c0_8, %c0_9], %13 {strides = array<i32>} : memref<6x6x16xbf16, #tpu.memory_space<vmem>>, vector<6x6x16xbf16>,
    %15 = arith.truncf %12 : vector<4x4x16xf32> to vector<4x4x16xbf16>
    %c1_10 = arith.constant 1 : index
    %c1_11 = arith.constant 1 : index
    %c0_12 = arith.constant 0 : index
    %16 = vector.load %arg6[%c1_10, %c1_11, %c0_12] : memref<6x6x16xbf16, #tpu.memory_space<vmem>>, vector<4x4x16xbf16>
    tpu.vector_store %arg6[%c1_10, %c1_11, %c0_12], %15 {strides = array<i32>} : memref<6x6x16xbf16, #tpu.memory_space<vmem>>, vector<4x4x16xbf16>,
    %cst_13 = arith.constant 0.000000e+00 : f32
    %17 = vector.broadcast %cst_13 : f32 to vector<1x8xf32>
    %cst_14 = arith.constant 0.000000e+00 : f32
    %18 = vector.broadcast %cst_14 : f32 to vector<1x8xf32>
    %c0_15 = arith.constant 0 : index
    %c0_16 = arith.constant 0 : index
    %c0_17 = arith.constant 0 : index
    %19 = vector.load %arg6[%c0_15, %c0_16, %c0_17] : memref<6x6x16xbf16, #tpu.memory_space<vmem>>, vector<4x4x16xbf16>
    %c0_18 = arith.constant 0 : index
    %c1_19 = arith.constant 1 : index
    %c0_20 = arith.constant 0 : index
    %20 = vector.load %arg6[%c0_18, %c1_19, %c0_20] : memref<6x6x16xbf16, #tpu.memory_space<vmem>>, vector<4x4x16xbf16>
    %c1_21 = arith.constant 1 : index
    %c0_22 = arith.constant 0 : index
    %c0_23 = arith.constant 0 : index
    %21 = vector.load %arg6[%c1_21, %c0_22, %c0_23] : memref<6x6x16xbf16, #tpu.memory_space<vmem>>, vector<4x4x16xbf16>
    %c1_24 = arith.constant 1 : index
    %c1_25 = arith.constant 1 : index
    %c0_26 = arith.constant 0 : index
    %22 = vector.load %arg6[%c1_24, %c1_25, %c0_26] : memref<6x6x16xbf16, #tpu.memory_space<vmem>>, vector<4x4x16xbf16>
    %23 = tpu.concatenate %19, %20, %21, %22 in 2 : vector<4x4x16xbf16>, vector<4x4x16xbf16>, vector<4x4x16xbf16>, vector<4x4x16xbf16> -> vector<4x4x64xbf16>
    %24 = vector.shape_cast %23 : vector<4x4x64xbf16> to vector<16x64xbf16>
    %c0_27 = arith.constant 0 : index
    %c0_28 = arith.constant 0 : index
    %c0_29 = arith.constant 0 : index
    %25 = vector.load %arg3[%c0_27, %c0_28, %c0_29] : memref<4x64x8xbf16, #tpu.memory_space<vmem>>, vector<1x64x8xbf16>
    %26 = vector.shape_cast %25 : vector<1x64x8xbf16> to vector<64x8xbf16>
    %cst_30 = arith.constant dense<0.000000e+00> : vector<16x8xf32>
    %27 = tpu.matmul %24, %26, %cst_30 {dimension_numbers = #tpu.dot_dimension_numbers<[1], [0], [0], [1], [0, 0, 1, 1], [], []>} : vector<16x64xbf16>, vector<64x8xbf16>, vector<16x8xf32> -> vector<16x8xf32>
    %cst_31 = arith.constant dense<0.000000e+00> : vector<8xf32>
    %28 = vector.multi_reduction <add>, %27, %cst_31 [0] : vector<16x8xf32> to vector<8xf32>
    %29 = vector.shape_cast %28 : vector<8xf32> to vector<1x8xf32>
    %30 = arith.addf %17, %29 : vector<1x8xf32>
    %31 = arith.mulf %27, %27 : vector<16x8xf32>
    %cst_32 = arith.constant dense<0.000000e+00> : vector<8xf32>
    %32 = vector.multi_reduction <add>, %31, %cst_32 [0] : vector<16x8xf32> to vector<8xf32>
    %33 = vector.shape_cast %32 : vector<8xf32> to vector<1x8xf32>
    %34 = arith.addf %18, %33 : vector<1x8xf32>
    %c0_33 = arith.constant 0 : index
    %c1_34 = arith.constant 1 : index
    %c0_35 = arith.constant 0 : index
    %35 = vector.load %arg6[%c0_33, %c1_34, %c0_35] : memref<6x6x16xbf16, #tpu.memory_space<vmem>>, vector<4x4x16xbf16>
    %c0_36 = arith.constant 0 : index
    %c2 = arith.constant 2 : index
    %c0_37 = arith.constant 0 : index
    %36 = vector.load %arg6[%c0_36, %c2, %c0_37] : memref<6x6x16xbf16, #tpu.memory_space<vmem>>, vector<4x4x16xbf16>
    %c1_38 = arith.constant 1 : index
    %c1_39 = arith.constant 1 : index
    %c0_40 = arith.constant 0 : index
    %37 = vector.load %arg6[%c1_38, %c1_39, %c0_40] : memref<6x6x16xbf16, #tpu.memory_space<vmem>>, vector<4x4x16xbf16>
    %c1_41 = arith.constant 1 : index
    %c2_42 = arith.constant 2 : index
    %c0_43 = arith.constant 0 : index
    %38 = vector.load %arg6[%c1_41, %c2_42, %c0_43] : memref<6x6x16xbf16, #tpu.memory_space<vmem>>, vector<4x4x16xbf16>
    %39 = tpu.concatenate %35, %36, %37, %38 in 2 : vector<4x4x16xbf16>, vector<4x4x16xbf16>, vector<4x4x16xbf16>, vector<4x4x16xbf16> -> vector<4x4x64xbf16>
    %40 = vector.shape_cast %39 : vector<4x4x64xbf16> to vector<16x64xbf16>
    %c1_44 = arith.constant 1 : index
    %c0_45 = arith.constant 0 : index
    %c0_46 = arith.constant 0 : index
    %41 = vector.load %arg3[%c1_44, %c0_45, %c0_46] : memref<4x64x8xbf16, #tpu.memory_space<vmem>>, vector<1x64x8xbf16>
    %42 = vector.shape_cast %41 : vector<1x64x8xbf16> to vector<64x8xbf16>
    %cst_47 = arith.constant dense<0.000000e+00> : vector<16x8xf32>
    %43 = tpu.matmul %40, %42, %cst_47 {dimension_numbers = #tpu.dot_dimension_numbers<[1], [0], [0], [1], [0, 0, 1, 1], [], []>} : vector<16x64xbf16>, vector<64x8xbf16>, vector<16x8xf32> -> vector<16x8xf32>
    %cst_48 = arith.constant dense<0.000000e+00> : vector<8xf32>
    %44 = vector.multi_reduction <add>, %43, %cst_48 [0] : vector<16x8xf32> to vector<8xf32>
    %45 = vector.shape_cast %44 : vector<8xf32> to vector<1x8xf32>
    %46 = arith.addf %30, %45 : vector<1x8xf32>
    %47 = arith.mulf %43, %43 : vector<16x8xf32>
    %cst_49 = arith.constant dense<0.000000e+00> : vector<8xf32>
    %48 = vector.multi_reduction <add>, %47, %cst_49 [0] : vector<16x8xf32> to vector<8xf32>
    %49 = vector.shape_cast %48 : vector<8xf32> to vector<1x8xf32>
    %50 = arith.addf %34, %49 : vector<1x8xf32>
    %51 = tpu.concatenate %27, %43 in 1 : vector<16x8xf32>, vector<16x8xf32> -> vector<16x16xf32>
    %52 = vector.shape_cast %51 : vector<16x16xf32> to vector<4x4x16xf32>
    %53 = arith.truncf %52 : vector<4x4x16xf32> to vector<4x4x16xbf16>
    %c0_50 = arith.constant 0 : index
    %c0_51 = arith.constant 0 : index
    %c0_52 = arith.constant 0 : index
    %c0_53 = arith.constant 0 : index
    %c0_54 = arith.constant 0 : index
    %54 = vector.load %arg4[%c0_50, %c0_51, %c0_52, %c0_53, %c0_54] : memref<1x4x2x4x16xbf16, #tpu.memory_space<vmem>>, vector<1x4x1x4x16xbf16>
    %55 = vector.shape_cast %54 : vector<1x4x1x4x16xbf16> to vector<4x4x16xbf16>
    %56 = vector.shape_cast %53 : vector<4x4x16xbf16> to vector<1x4x1x4x16xbf16>
    tpu.vector_store %arg4[%c0_50, %c0_51, %c0_52, %c0_53, %c0_54], %56 {strides = array<i32>} : memref<1x4x2x4x16xbf16, #tpu.memory_space<vmem>>, vector<1x4x1x4x16xbf16>,
    %c1_55 = arith.constant 1 : index
    %c0_56 = arith.constant 0 : index
    %c0_57 = arith.constant 0 : index
    %57 = vector.load %arg6[%c1_55, %c0_56, %c0_57] : memref<6x6x16xbf16, #tpu.memory_space<vmem>>, vector<4x4x16xbf16>
    %c1_58 = arith.constant 1 : index
    %c1_59 = arith.constant 1 : index
    %c0_60 = arith.constant 0 : index
    %58 = vector.load %arg6[%c1_58, %c1_59, %c0_60] : memref<6x6x16xbf16, #tpu.memory_space<vmem>>, vector<4x4x16xbf16>
    %c2_61 = arith.constant 2 : index
    %c0_62 = arith.constant 0 : index
    %c0_63 = arith.constant 0 : index
    %59 = vector.load %arg6[%c2_61, %c0_62, %c0_63] : memref<6x6x16xbf16, #tpu.memory_space<vmem>>, vector<4x4x16xbf16>
    %c2_64 = arith.constant 2 : index
    %c1_65 = arith.constant 1 : index
    %c0_66 = arith.constant 0 : index
    %60 = vector.load %arg6[%c2_64, %c1_65, %c0_66] : memref<6x6x16xbf16, #tpu.memory_space<vmem>>, vector<4x4x16xbf16>
    %61 = tpu.concatenate %57, %58, %59, %60 in 2 : vector<4x4x16xbf16>, vector<4x4x16xbf16>, vector<4x4x16xbf16>, vector<4x4x16xbf16> -> vector<4x4x64xbf16>
    %62 = vector.shape_cast %61 : vector<4x4x64xbf16> to vector<16x64xbf16>
    %c2_67 = arith.constant 2 : index
    %c0_68 = arith.constant 0 : index
    %c0_69 = arith.constant 0 : index
    %63 = vector.load %arg3[%c2_67, %c0_68, %c0_69] : memref<4x64x8xbf16, #tpu.memory_space<vmem>>, vector<1x64x8xbf16>
    %64 = vector.shape_cast %63 : vector<1x64x8xbf16> to vector<64x8xbf16>
    %cst_70 = arith.constant dense<0.000000e+00> : vector<16x8xf32>
    %65 = tpu.matmul %62, %64, %cst_70 {dimension_numbers = #tpu.dot_dimension_numbers<[1], [0], [0], [1], [0, 0, 1, 1], [], []>} : vector<16x64xbf16>, vector<64x8xbf16>, vector<16x8xf32> -> vector<16x8xf32>
    %cst_71 = arith.constant dense<0.000000e+00> : vector<8xf32>
    %66 = vector.multi_reduction <add>, %65, %cst_71 [0] : vector<16x8xf32> to vector<8xf32>
    %67 = vector.shape_cast %66 : vector<8xf32> to vector<1x8xf32>
    %68 = arith.addf %46, %67 : vector<1x8xf32>
    %69 = arith.mulf %65, %65 : vector<16x8xf32>
    %cst_72 = arith.constant dense<0.000000e+00> : vector<8xf32>
    %70 = vector.multi_reduction <add>, %69, %cst_72 [0] : vector<16x8xf32> to vector<8xf32>
    %71 = vector.shape_cast %70 : vector<8xf32> to vector<1x8xf32>
    %72 = arith.addf %50, %71 : vector<1x8xf32>
    %c1_73 = arith.constant 1 : index
    %c1_74 = arith.constant 1 : index
    %c0_75 = arith.constant 0 : index
    %73 = vector.load %arg6[%c1_73, %c1_74, %c0_75] : memref<6x6x16xbf16, #tpu.memory_space<vmem>>, vector<4x4x16xbf16>
    %c1_76 = arith.constant 1 : index
    %c2_77 = arith.constant 2 : index
    %c0_78 = arith.constant 0 : index
    %74 = vector.load %arg6[%c1_76, %c2_77, %c0_78] : memref<6x6x16xbf16, #tpu.memory_space<vmem>>, vector<4x4x16xbf16>
    %c2_79 = arith.constant 2 : index
    %c1_80 = arith.constant 1 : index
    %c0_81 = arith.constant 0 : index
    %75 = vector.load %arg6[%c2_79, %c1_80, %c0_81] : memref<6x6x16xbf16, #tpu.memory_space<vmem>>, vector<4x4x16xbf16>
    %c2_82 = arith.constant 2 : index
    %c2_83 = arith.constant 2 : index
    %c0_84 = arith.constant 0 : index
    %76 = vector.load %arg6[%c2_82, %c2_83, %c0_84] : memref<6x6x16xbf16, #tpu.memory_space<vmem>>, vector<4x4x16xbf16>
    %77 = tpu.concatenate %73, %74, %75, %76 in 2 : vector<4x4x16xbf16>, vector<4x4x16xbf16>, vector<4x4x16xbf16>, vector<4x4x16xbf16> -> vector<4x4x64xbf16>
    %78 = vector.shape_cast %77 : vector<4x4x64xbf16> to vector<16x64xbf16>
    %c3 = arith.constant 3 : index
    %c0_85 = arith.constant 0 : index
    %c0_86 = arith.constant 0 : index
    %79 = vector.load %arg3[%c3, %c0_85, %c0_86] : memref<4x64x8xbf16, #tpu.memory_space<vmem>>, vector<1x64x8xbf16>
    %80 = vector.shape_cast %79 : vector<1x64x8xbf16> to vector<64x8xbf16>
    %cst_87 = arith.constant dense<0.000000e+00> : vector<16x8xf32>
    %81 = tpu.matmul %78, %80, %cst_87 {dimension_numbers = #tpu.dot_dimension_numbers<[1], [0], [0], [1], [0, 0, 1, 1], [], []>} : vector<16x64xbf16>, vector<64x8xbf16>, vector<16x8xf32> -> vector<16x8xf32>
    %cst_88 = arith.constant dense<0.000000e+00> : vector<8xf32>
    %82 = vector.multi_reduction <add>, %81, %cst_88 [0] : vector<16x8xf32> to vector<8xf32>
    %83 = vector.shape_cast %82 : vector<8xf32> to vector<1x8xf32>
    %84 = arith.addf %68, %83 : vector<1x8xf32>
    %85 = arith.mulf %81, %81 : vector<16x8xf32>
    %cst_89 = arith.constant dense<0.000000e+00> : vector<8xf32>
    %86 = vector.multi_reduction <add>, %85, %cst_89 [0] : vector<16x8xf32> to vector<8xf32>
    %87 = vector.shape_cast %86 : vector<8xf32> to vector<1x8xf32>
    %88 = arith.addf %72, %87 : vector<1x8xf32>
    %89 = tpu.concatenate %65, %81 in 1 : vector<16x8xf32>, vector<16x8xf32> -> vector<16x16xf32>
    %90 = vector.shape_cast %89 : vector<16x16xf32> to vector<4x4x16xf32>
    %91 = arith.truncf %90 : vector<4x4x16xf32> to vector<4x4x16xbf16>
    %c0_90 = arith.constant 0 : index
    %c0_91 = arith.constant 0 : index
    %c1_92 = arith.constant 1 : index
    %c0_93 = arith.constant 0 : index
    %c0_94 = arith.constant 0 : index
    %92 = vector.load %arg4[%c0_90, %c0_91, %c1_92, %c0_93, %c0_94] : memref<1x4x2x4x16xbf16, #tpu.memory_space<vmem>>, vector<1x4x1x4x16xbf16>
    %93 = vector.shape_cast %92 : vector<1x4x1x4x16xbf16> to vector<4x4x16xbf16>
    %94 = vector.shape_cast %91 : vector<4x4x16xbf16> to vector<1x4x1x4x16xbf16>
    tpu.vector_store %arg4[%c0_90, %c0_91, %c1_92, %c0_93, %c0_94], %94 {strides = array<i32>} : memref<1x4x2x4x16xbf16, #tpu.memory_space<vmem>>, vector<1x4x1x4x16xbf16>,
    %c0_95 = arith.constant 0 : index
    %c0_96 = arith.constant 0 : index
    %c0_97 = arith.constant 0 : index
    %95 = vector.load %arg5[%c0_95, %c0_96, %c0_97] : memref<1x2x8xf32, #tpu.memory_space<vmem>>, vector<1x1x8xf32>
    %96 = vector.shape_cast %95 : vector<1x1x8xf32> to vector<1x8xf32>
    %97 = vector.shape_cast %84 : vector<1x8xf32> to vector<1x1x8xf32>
    tpu.vector_store %arg5[%c0_95, %c0_96, %c0_97], %97 {strides = array<i32>} : memref<1x2x8xf32, #tpu.memory_space<vmem>>, vector<1x1x8xf32>,
    %c0_98 = arith.constant 0 : index
    %c1_99 = arith.constant 1 : index
    %c0_100 = arith.constant 0 : index
    %98 = vector.load %arg5[%c0_98, %c1_99, %c0_100] : memref<1x2x8xf32, #tpu.memory_space<vmem>>, vector<1x1x8xf32>
    %99 = vector.shape_cast %98 : vector<1x1x8xf32> to vector<1x8xf32>
    %100 = vector.shape_cast %88 : vector<1x8xf32> to vector<1x1x8xf32>
    tpu.vector_store %arg5[%c0_98, %c1_99, %c0_100], %100 {strides = array<i32>} : memref<1x2x8xf32, #tpu.memory_space<vmem>>, vector<1x1x8xf32>,
    return
  }
  func.func @transform_0(%arg0: i32) -> (i32, i32, i32, i32) {
    %c0_i32 = arith.constant 0 : i32
    %c0_i32_0 = arith.constant 0 : i32
    %c0_i32_1 = arith.constant 0 : i32
    %c0_i32_2 = arith.constant 0 : i32
    return %arg0, %c0_i32, %c0_i32_0, %c0_i32_1 : i32, i32, i32, i32
  }
  func.func @transform_1(%arg0: i32) -> (i32, i32) {
    %c0_i32 = arith.constant 0 : i32
    %c0_i32_0 = arith.constant 0 : i32
    %c0_i32_1 = arith.constant 0 : i32
    return %c0_i32, %c0_i32_0 : i32, i32
  }
  func.func @transform_2(%arg0: i32) -> (i32, i32, i32) {
    %c0_i32 = arith.constant 0 : i32
    %c0_i32_0 = arith.constant 0 : i32
    %c0_i32_1 = arith.constant 0 : i32
    %c0_i32_2 = arith.constant 0 : i32
    return %c0_i32, %c0_i32_0, %c0_i32_1 : i32, i32, i32
  }
  func.func @transform_3(%arg0: i32) -> (i32, i32, i32, i32, i32) {
    %c0_i32 = arith.constant 0 : i32
    %c0_i32_0 = arith.constant 0 : i32
    %c0_i32_1 = arith.constant 0 : i32
    %c0_i32_2 = arith.constant 0 : i32
    %c0_i32_3 = arith.constant 0 : i32
    return %arg0, %c0_i32, %c0_i32_0, %c0_i32_1, %c0_i32_2 : i32, i32, i32, i32, i32
  }
  func.func @transform_4(%arg0: i32) -> (i32, i32, i32) {
    %c0_i32 = arith.constant 0 : i32
    %c0_i32_0 = arith.constant 0 : i32
    %c0_i32_1 = arith.constant 0 : i32
    return %arg0, %c0_i32, %c0_i32_0 : i32, i32, i32
  }
}

module attributes {stable_mosaic.version = 11 : i64} {
  func.func @_deconv_kernel(%arg0: i32, %arg1: memref<1x8x8x8xbf16, #tpu.memory_space<vmem>>, %arg2: memref<2x8xf32, #tpu.memory_space<vmem>>, %arg3: memref<4x32x3xbf16, #tpu.memory_space<vmem>>, %arg4: memref<1x8x2x8x6xf32, #tpu.memory_space<vmem>>, %arg5: memref<10x10x8xbf16, #tpu.memory_space<vmem>>) attributes {dimension_semantics = [#tpu.dimension_semantics<parallel>], iteration_bounds = array<i64: 2>, scalar_prefetch = 0 : i64, scratch_operands = 1 : i64, tpu.core_type = #tpu.core_type<tc>, window_params = [{transform_indices = @transform_0, window_bounds = array<i64: 1, 8, 8, 8>}, {pipeline_mode = #tpu.pipeline_mode<synchronous>, transform_indices = @transform_1, window_bounds = array<i64: 2, 8>}, {pipeline_mode = #tpu.pipeline_mode<synchronous>, transform_indices = @transform_2, window_bounds = array<i64: 4, 32, 3>}, {transform_indices = @transform_3, window_bounds = array<i64: 1, 8, 2, 8, 6>}]} {
    %c0 = arith.constant 0 : index
    %c0_0 = arith.constant 0 : index
    %0 = vector.load %arg2[%c0, %c0_0] : memref<2x8xf32, #tpu.memory_space<vmem>>, vector<1x8xf32>
    %c1 = arith.constant 1 : index
    %c0_1 = arith.constant 0 : index
    %1 = vector.load %arg2[%c1, %c0_1] : memref<2x8xf32, #tpu.memory_space<vmem>>, vector<1x8xf32>
    %c0_2 = arith.constant 0 : index
    %c0_3 = arith.constant 0 : index
    %c0_4 = arith.constant 0 : index
    %c0_5 = arith.constant 0 : index
    %2 = vector.load %arg1[%c0_2, %c0_3, %c0_4, %c0_5] : memref<1x8x8x8xbf16, #tpu.memory_space<vmem>>, vector<1x8x8x8xbf16>
    %3 = vector.shape_cast %2 : vector<1x8x8x8xbf16> to vector<8x8x8xbf16>
    %4 = arith.extf %3 : vector<8x8x8xbf16> to vector<8x8x8xf32>
    %5 = vector.shape_cast %0 : vector<1x8xf32> to vector<1x1x8xf32>
    %6 = vector.broadcast %5 : vector<1x1x8xf32> to vector<8x8x8xf32>
    %7 = arith.mulf %4, %6 : vector<8x8x8xf32>
    %8 = vector.shape_cast %1 : vector<1x8xf32> to vector<1x1x8xf32>
    %9 = vector.broadcast %8 : vector<1x1x8xf32> to vector<8x8x8xf32>
    %10 = arith.addf %7, %9 : vector<8x8x8xf32>
    %cst = arith.constant 0.000000e+00 : f32
    %11 = vector.broadcast %cst : f32 to vector<8x8x8xf32>
    %12 = arith.maximumf %10, %11 : vector<8x8x8xf32>
    %cst_6 = arith.constant 0.000000e+00 : bf16
    %13 = vector.broadcast %cst_6 : bf16 to vector<10x10x8xbf16>
    %c0_7 = arith.constant 0 : index
    %c0_8 = arith.constant 0 : index
    %c0_9 = arith.constant 0 : index
    %14 = vector.load %arg5[%c0_7, %c0_8, %c0_9] : memref<10x10x8xbf16, #tpu.memory_space<vmem>>, vector<10x10x8xbf16>
    tpu.vector_store %arg5[%c0_7, %c0_8, %c0_9], %13 {strides = array<i32>} : memref<10x10x8xbf16, #tpu.memory_space<vmem>>, vector<10x10x8xbf16>,
    %15 = arith.truncf %12 : vector<8x8x8xf32> to vector<8x8x8xbf16>
    %c1_10 = arith.constant 1 : index
    %c1_11 = arith.constant 1 : index
    %c0_12 = arith.constant 0 : index
    %16 = vector.load %arg5[%c1_10, %c1_11, %c0_12] : memref<10x10x8xbf16, #tpu.memory_space<vmem>>, vector<8x8x8xbf16>
    tpu.vector_store %arg5[%c1_10, %c1_11, %c0_12], %15 {strides = array<i32>} : memref<10x10x8xbf16, #tpu.memory_space<vmem>>, vector<8x8x8xbf16>,
    %c0_13 = arith.constant 0 : index
    %c0_14 = arith.constant 0 : index
    %c0_15 = arith.constant 0 : index
    %17 = vector.load %arg5[%c0_13, %c0_14, %c0_15] : memref<10x10x8xbf16, #tpu.memory_space<vmem>>, vector<8x8x8xbf16>
    %c0_16 = arith.constant 0 : index
    %c1_17 = arith.constant 1 : index
    %c0_18 = arith.constant 0 : index
    %18 = vector.load %arg5[%c0_16, %c1_17, %c0_18] : memref<10x10x8xbf16, #tpu.memory_space<vmem>>, vector<8x8x8xbf16>
    %c1_19 = arith.constant 1 : index
    %c0_20 = arith.constant 0 : index
    %c0_21 = arith.constant 0 : index
    %19 = vector.load %arg5[%c1_19, %c0_20, %c0_21] : memref<10x10x8xbf16, #tpu.memory_space<vmem>>, vector<8x8x8xbf16>
    %c1_22 = arith.constant 1 : index
    %c1_23 = arith.constant 1 : index
    %c0_24 = arith.constant 0 : index
    %20 = vector.load %arg5[%c1_22, %c1_23, %c0_24] : memref<10x10x8xbf16, #tpu.memory_space<vmem>>, vector<8x8x8xbf16>
    %21 = tpu.concatenate %17, %18, %19, %20 in 2 : vector<8x8x8xbf16>, vector<8x8x8xbf16>, vector<8x8x8xbf16>, vector<8x8x8xbf16> -> vector<8x8x32xbf16>
    %22 = vector.shape_cast %21 : vector<8x8x32xbf16> to vector<64x32xbf16>
    %c0_25 = arith.constant 0 : index
    %c0_26 = arith.constant 0 : index
    %c0_27 = arith.constant 0 : index
    %23 = vector.load %arg3[%c0_25, %c0_26, %c0_27] : memref<4x32x3xbf16, #tpu.memory_space<vmem>>, vector<1x32x3xbf16>
    %24 = vector.shape_cast %23 : vector<1x32x3xbf16> to vector<32x3xbf16>
    %cst_28 = arith.constant dense<0.000000e+00> : vector<64x3xf32>
    %25 = tpu.matmul %22, %24, %cst_28 {dimension_numbers = #tpu.dot_dimension_numbers<[1], [0], [0], [1], [0, 0, 1, 1], [], []>} : vector<64x32xbf16>, vector<32x3xbf16>, vector<64x3xf32> -> vector<64x3xf32>
    %c0_29 = arith.constant 0 : index
    %c1_30 = arith.constant 1 : index
    %c0_31 = arith.constant 0 : index
    %26 = vector.load %arg5[%c0_29, %c1_30, %c0_31] : memref<10x10x8xbf16, #tpu.memory_space<vmem>>, vector<8x8x8xbf16>
    %c0_32 = arith.constant 0 : index
    %c2 = arith.constant 2 : index
    %c0_33 = arith.constant 0 : index
    %27 = vector.load %arg5[%c0_32, %c2, %c0_33] : memref<10x10x8xbf16, #tpu.memory_space<vmem>>, vector<8x8x8xbf16>
    %c1_34 = arith.constant 1 : index
    %c1_35 = arith.constant 1 : index
    %c0_36 = arith.constant 0 : index
    %28 = vector.load %arg5[%c1_34, %c1_35, %c0_36] : memref<10x10x8xbf16, #tpu.memory_space<vmem>>, vector<8x8x8xbf16>
    %c1_37 = arith.constant 1 : index
    %c2_38 = arith.constant 2 : index
    %c0_39 = arith.constant 0 : index
    %29 = vector.load %arg5[%c1_37, %c2_38, %c0_39] : memref<10x10x8xbf16, #tpu.memory_space<vmem>>, vector<8x8x8xbf16>
    %30 = tpu.concatenate %26, %27, %28, %29 in 2 : vector<8x8x8xbf16>, vector<8x8x8xbf16>, vector<8x8x8xbf16>, vector<8x8x8xbf16> -> vector<8x8x32xbf16>
    %31 = vector.shape_cast %30 : vector<8x8x32xbf16> to vector<64x32xbf16>
    %c1_40 = arith.constant 1 : index
    %c0_41 = arith.constant 0 : index
    %c0_42 = arith.constant 0 : index
    %32 = vector.load %arg3[%c1_40, %c0_41, %c0_42] : memref<4x32x3xbf16, #tpu.memory_space<vmem>>, vector<1x32x3xbf16>
    %33 = vector.shape_cast %32 : vector<1x32x3xbf16> to vector<32x3xbf16>
    %cst_43 = arith.constant dense<0.000000e+00> : vector<64x3xf32>
    %34 = tpu.matmul %31, %33, %cst_43 {dimension_numbers = #tpu.dot_dimension_numbers<[1], [0], [0], [1], [0, 0, 1, 1], [], []>} : vector<64x32xbf16>, vector<32x3xbf16>, vector<64x3xf32> -> vector<64x3xf32>
    %35 = tpu.concatenate %25, %34 in 1 : vector<64x3xf32>, vector<64x3xf32> -> vector<64x6xf32>
    %36 = vector.shape_cast %35 : vector<64x6xf32> to vector<8x8x6xf32>
    %37 = math.tanh %36 : vector<8x8x6xf32>
    %c0_44 = arith.constant 0 : index
    %c0_45 = arith.constant 0 : index
    %c0_46 = arith.constant 0 : index
    %c0_47 = arith.constant 0 : index
    %c0_48 = arith.constant 0 : index
    %38 = vector.load %arg4[%c0_44, %c0_45, %c0_46, %c0_47, %c0_48] : memref<1x8x2x8x6xf32, #tpu.memory_space<vmem>>, vector<1x8x1x8x6xf32>
    %39 = vector.shape_cast %38 : vector<1x8x1x8x6xf32> to vector<8x8x6xf32>
    %40 = vector.shape_cast %37 : vector<8x8x6xf32> to vector<1x8x1x8x6xf32>
    tpu.vector_store %arg4[%c0_44, %c0_45, %c0_46, %c0_47, %c0_48], %40 {strides = array<i32>} : memref<1x8x2x8x6xf32, #tpu.memory_space<vmem>>, vector<1x8x1x8x6xf32>,
    %c1_49 = arith.constant 1 : index
    %c0_50 = arith.constant 0 : index
    %c0_51 = arith.constant 0 : index
    %41 = vector.load %arg5[%c1_49, %c0_50, %c0_51] : memref<10x10x8xbf16, #tpu.memory_space<vmem>>, vector<8x8x8xbf16>
    %c1_52 = arith.constant 1 : index
    %c1_53 = arith.constant 1 : index
    %c0_54 = arith.constant 0 : index
    %42 = vector.load %arg5[%c1_52, %c1_53, %c0_54] : memref<10x10x8xbf16, #tpu.memory_space<vmem>>, vector<8x8x8xbf16>
    %c2_55 = arith.constant 2 : index
    %c0_56 = arith.constant 0 : index
    %c0_57 = arith.constant 0 : index
    %43 = vector.load %arg5[%c2_55, %c0_56, %c0_57] : memref<10x10x8xbf16, #tpu.memory_space<vmem>>, vector<8x8x8xbf16>
    %c2_58 = arith.constant 2 : index
    %c1_59 = arith.constant 1 : index
    %c0_60 = arith.constant 0 : index
    %44 = vector.load %arg5[%c2_58, %c1_59, %c0_60] : memref<10x10x8xbf16, #tpu.memory_space<vmem>>, vector<8x8x8xbf16>
    %45 = tpu.concatenate %41, %42, %43, %44 in 2 : vector<8x8x8xbf16>, vector<8x8x8xbf16>, vector<8x8x8xbf16>, vector<8x8x8xbf16> -> vector<8x8x32xbf16>
    %46 = vector.shape_cast %45 : vector<8x8x32xbf16> to vector<64x32xbf16>
    %c2_61 = arith.constant 2 : index
    %c0_62 = arith.constant 0 : index
    %c0_63 = arith.constant 0 : index
    %47 = vector.load %arg3[%c2_61, %c0_62, %c0_63] : memref<4x32x3xbf16, #tpu.memory_space<vmem>>, vector<1x32x3xbf16>
    %48 = vector.shape_cast %47 : vector<1x32x3xbf16> to vector<32x3xbf16>
    %cst_64 = arith.constant dense<0.000000e+00> : vector<64x3xf32>
    %49 = tpu.matmul %46, %48, %cst_64 {dimension_numbers = #tpu.dot_dimension_numbers<[1], [0], [0], [1], [0, 0, 1, 1], [], []>} : vector<64x32xbf16>, vector<32x3xbf16>, vector<64x3xf32> -> vector<64x3xf32>
    %c1_65 = arith.constant 1 : index
    %c1_66 = arith.constant 1 : index
    %c0_67 = arith.constant 0 : index
    %50 = vector.load %arg5[%c1_65, %c1_66, %c0_67] : memref<10x10x8xbf16, #tpu.memory_space<vmem>>, vector<8x8x8xbf16>
    %c1_68 = arith.constant 1 : index
    %c2_69 = arith.constant 2 : index
    %c0_70 = arith.constant 0 : index
    %51 = vector.load %arg5[%c1_68, %c2_69, %c0_70] : memref<10x10x8xbf16, #tpu.memory_space<vmem>>, vector<8x8x8xbf16>
    %c2_71 = arith.constant 2 : index
    %c1_72 = arith.constant 1 : index
    %c0_73 = arith.constant 0 : index
    %52 = vector.load %arg5[%c2_71, %c1_72, %c0_73] : memref<10x10x8xbf16, #tpu.memory_space<vmem>>, vector<8x8x8xbf16>
    %c2_74 = arith.constant 2 : index
    %c2_75 = arith.constant 2 : index
    %c0_76 = arith.constant 0 : index
    %53 = vector.load %arg5[%c2_74, %c2_75, %c0_76] : memref<10x10x8xbf16, #tpu.memory_space<vmem>>, vector<8x8x8xbf16>
    %54 = tpu.concatenate %50, %51, %52, %53 in 2 : vector<8x8x8xbf16>, vector<8x8x8xbf16>, vector<8x8x8xbf16>, vector<8x8x8xbf16> -> vector<8x8x32xbf16>
    %55 = vector.shape_cast %54 : vector<8x8x32xbf16> to vector<64x32xbf16>
    %c3 = arith.constant 3 : index
    %c0_77 = arith.constant 0 : index
    %c0_78 = arith.constant 0 : index
    %56 = vector.load %arg3[%c3, %c0_77, %c0_78] : memref<4x32x3xbf16, #tpu.memory_space<vmem>>, vector<1x32x3xbf16>
    %57 = vector.shape_cast %56 : vector<1x32x3xbf16> to vector<32x3xbf16>
    %cst_79 = arith.constant dense<0.000000e+00> : vector<64x3xf32>
    %58 = tpu.matmul %55, %57, %cst_79 {dimension_numbers = #tpu.dot_dimension_numbers<[1], [0], [0], [1], [0, 0, 1, 1], [], []>} : vector<64x32xbf16>, vector<32x3xbf16>, vector<64x3xf32> -> vector<64x3xf32>
    %59 = tpu.concatenate %49, %58 in 1 : vector<64x3xf32>, vector<64x3xf32> -> vector<64x6xf32>
    %60 = vector.shape_cast %59 : vector<64x6xf32> to vector<8x8x6xf32>
    %61 = math.tanh %60 : vector<8x8x6xf32>
    %c0_80 = arith.constant 0 : index
    %c0_81 = arith.constant 0 : index
    %c1_82 = arith.constant 1 : index
    %c0_83 = arith.constant 0 : index
    %c0_84 = arith.constant 0 : index
    %62 = vector.load %arg4[%c0_80, %c0_81, %c1_82, %c0_83, %c0_84] : memref<1x8x2x8x6xf32, #tpu.memory_space<vmem>>, vector<1x8x1x8x6xf32>
    %63 = vector.shape_cast %62 : vector<1x8x1x8x6xf32> to vector<8x8x6xf32>
    %64 = vector.shape_cast %61 : vector<8x8x6xf32> to vector<1x8x1x8x6xf32>
    tpu.vector_store %arg4[%c0_80, %c0_81, %c1_82, %c0_83, %c0_84], %64 {strides = array<i32>} : memref<1x8x2x8x6xf32, #tpu.memory_space<vmem>>, vector<1x8x1x8x6xf32>,
    return
  }
  func.func @transform_0(%arg0: i32) -> (i32, i32, i32, i32) {
    %c0_i32 = arith.constant 0 : i32
    %c0_i32_0 = arith.constant 0 : i32
    %c0_i32_1 = arith.constant 0 : i32
    %c0_i32_2 = arith.constant 0 : i32
    return %arg0, %c0_i32, %c0_i32_0, %c0_i32_1 : i32, i32, i32, i32
  }
  func.func @transform_1(%arg0: i32) -> (i32, i32) {
    %c0_i32 = arith.constant 0 : i32
    %c0_i32_0 = arith.constant 0 : i32
    %c0_i32_1 = arith.constant 0 : i32
    return %c0_i32, %c0_i32_0 : i32, i32
  }
  func.func @transform_2(%arg0: i32) -> (i32, i32, i32) {
    %c0_i32 = arith.constant 0 : i32
    %c0_i32_0 = arith.constant 0 : i32
    %c0_i32_1 = arith.constant 0 : i32
    %c0_i32_2 = arith.constant 0 : i32
    return %c0_i32, %c0_i32_0, %c0_i32_1 : i32, i32, i32
  }
  func.func @transform_3(%arg0: i32) -> (i32, i32, i32, i32, i32) {
    %c0_i32 = arith.constant 0 : i32
    %c0_i32_0 = arith.constant 0 : i32
    %c0_i32_1 = arith.constant 0 : i32
    %c0_i32_2 = arith.constant 0 : i32
    %c0_i32_3 = arith.constant 0 : i32
    return %arg0, %c0_i32, %c0_i32_0, %c0_i32_1, %c0_i32_2 : i32, i32, i32, i32, i32
  }
}

</mosaic_0001>

<bundles_post_ra>
// kernel: generator_forward.3
= control target key start
LH: loop header
LB: loop body
LE: loop exit
PB: predicated region body
PF: predicated region fallthrough
CT: control target
= control target key end

     0   :  { %7 = vsyncpa [#allocation3], 0  ;;  %s148_s9 = smov [#allocation2]   ;;  %s186_s0 = inlined_call_operand.vmem [shape: f32[2,16], index: 0, kind: input, shape index: {}]   ;;  %s187_s1 = inlined_call_operand.hbm [shape: bf16[16,256], index: 1, kind: input, shape index: {}]   ;;  %s188_s2 = inlined_call_operand.vmem [shape: bf16[2,256], index: 2, kind: output, shape index: {}]  }
   0x1   :  { %s15_s10 = sshll.u32 %s148_s9, 4  ;;  %s124_s13 = scalar_lea.hbm %s187_s1, 256  ;;  %s16_s10 = int_to_ptr.vmem [resolvable:$true] %s15_s10 }
   0x2   :  { %p125_p0 = scmp.ne.s32.totalorder %s187_s1, %s124_s13  ;;  %p128_p1 = scmp.lt.u32.totalorder %s124_s13, %s187_s1 }
   0x4   :  { %p130_p2 = pnand %p128_p1, %p125_p0 }
   0x6   :  { %133 = shalt.err (!%p130_p2)
}
   0x7   :  { %s134_s18 = scalar_lea.vmem %s16_s10, 256  ;;  %p139_p4 = scmp.lt.s32.totalorder %s16_s10, %s16_s10 }
   0x8   :  { %p135_p3 = scmp.ne.s32.totalorder %s16_s10, %s134_s18  ;;  %p140_p5 = scmp.lt.s32.totalorder %s134_s18, %s134_s18 }
   0xa   :  { %p141_p6 = por %p140_p5, %p139_p4 }
   0xc   :  { %p142_p7 = pnand %p141_p6, %p135_p3 }
   0xe   :  { %145 = shalt.err (!%p142_p7)
}
   0xf   :  { %s149_s19 = smov 128   ;;  %s150_s20 = smov 8  }
  0x10   :  { %21 = dma.hbm_to_vmem [thread:$0]  %s187_s1, 256, %s16_s10, [#allocation3], %s149_s19, %s149_s19, %s150_s20  }
  0x11   :  { %146 = dma.done.wait [#allocation3], 256  }
  0x12   :  { %147 = vsyncadd [#allocation3], 4294967040  ;;  %v151_v0 = vmov 0   ;;  %v121_v1 = vld [vmem:[#allocation2 + $0x4] ss:$8 sps:$4 sm:$0xff]   ;;  %vm40_vm0 = vcmask 130048   ;;  %v93_v7 = vlaneseq }
  0x13   :  { %76 = vmatprep.mubr.bf16.mxu0 %v151_v0  ;;  %v123_v2 = vld [vmem:[#allocation2] ss:$8 sps:$4 sm:$0xff]   ;;  %44 = vmatprep.subr.bf16.mxu0 %v121_v1  ;;  %v152_v5 = vmov 1966171168  }
  0x14   :  { %v26_v3 = vld [vmem:[%s186_s0] sm:$0x3]  ;;  %45 = vmatpush1.bf16.msra.mxu0 %v123_v2  ;;  %v91_v6 = vunpack.c.l.s4 %v152_v5  ;;  %v94_v9 = vshrl.u32 %v93_v7, 7 }
  0x15   :  { %v27_v4 = vpack.c.bf16 %v26_v3, %v26_v3 }
  0x16   :  { %v92_v8 = vunpack.c.0.s8 %v91_v6 }
  0x17   :  { %113 = vmatmul.mubr.msk.bf16.vlgmr.msra.gmra.mrb[0].mxu0 %vm40_vm0, %v27_v4 }
  0x18   :  { %v95_v11 = vsub.s32 %v92_v8, %v94_v9 }
  0xea   :  { %v78_v10 = vpop.f32.mrb[0].mxu0 }
  0xeb   :  { %v80_v12 = vpop.f32.mrb[1].mxu0 }
  0xec   :  { %v114_v13 = vpack.c.bf16 %v80_v12, %v78_v10  ;;  %v82_v14 = vpop.f32.mrb[2].mxu0 }
  0xed   :  { %v83_v15 = vpop.f32.mrb[3].mxu0 }
  0xee   :  { %v96_v16 = vrot.slane %v114_v13, %v95_v11 }
  0xf0   :  { %115 = vst.sshfl [vmem:[%s188_s2] sm:$0x5 pattern:$0x73625140] %v96_v16 }
  0xf1   :  { %110 = vsyncpa [#allocation3], 1 }

// kernel: generator_forward.4
= control target key start
LH: loop header
LB: loop body
LE: loop exit
PB: predicated region body
PF: predicated region fallthrough
CT: control target
= control target key end

     0   :  { %s2011_s15 = smov 0   ;;  %s2406_s0 = inlined_call_operand.vmem [shape: bf16[2,4,4,16], index: 0, kind: input, shape index: {}]   ;;  %s2407_s1 = inlined_call_operand.vmem [shape: f32[2,16], index: 1, kind: input, shape index: {}]   ;;  %s2408_s2 = inlined_call_operand.vmem [shape: bf16[4,64,8], index: 2, kind: input, shape index: {}]   ;;  %s2409_s3 = inlined_call_operand.vmem [shape: bf16[2,4,2,4,16], index: 3, kind: output, shape index: {0}]   ;;  %s2410_s4 = inlined_call_operand.vmem [shape: f32[2,2,8], index: 4, kind: output, shape index: {1}]  }
   0x1 LB: > { %s1718_s16 = sadd.s32 4294967295, %s1976_s15   ;;  %p1722_p0 = scmp.ge.s32.totalorder %s1976_s15, 1  ;;  %s1976_s15 = sphi %s2011_s15, %s15_s15  }
   0x2   : > { %p165_p1 = scmp.lt.s32.totalorder %s1976_s15, 3 }
   0x4   : > { %p166_p2 = pnand %p1722_p0, %p165_p1 }
   0x5   : > { %vm240_vm0 = vcmask (!%p166_p2), 124928   ;;  %v1978_v0 = vmov (!%p166_p2), 0   ;;  %p195_p3 = scmp.lt.s32.totalorder (!%p166_p2), %s1718_s16, 1  ;;  %v1728_v1 = vld [vmem:[%s2407_s1] ss:$0 sm:$0xff] (!%p166_p2)  ;;  %s1979_s25 = smov (!%p166_p2), 32  }
   0x6   : > { %169 = sbr.rel (%p166_p2) target bundleno = 556 (0x22c), region = 32  ;;  %246 = vst.msk [vmem:[#allocation2 + $0x14] sm:$0x7] (!%p166_p2), %vm240_vm0, %v1978_v0  ;;  %241 = vst.msk [vmem:[#allocation2] sm:$0x7] (!%p166_p2), %vm240_vm0, %v1978_v0  ;;  %s1980_s26 = smov (!%p166_p2), 16  }
   0x7   : > { %242 = vst.msk [vmem:[#allocation2 + $0x4] sm:$0x7] (!%p166_p2), %vm240_vm0, %v1978_v0  ;;  %243 = vst.msk [vmem:[#allocation2 + $0x8] sm:$0x7] (!%p166_p2), %vm240_vm0, %v1978_v0  ;;  %v1729_v2 = vld [vmem:[%s2407_s1 + $0x1] ss:$0 sm:$0xff] (!%p166_p2) }
   0x8   : > { %244 = vst.msk [vmem:[#allocation2 + $0xc] sm:$0x7] (!%p166_p2), %vm240_vm0, %v1978_v0  ;;  %245 = vst.msk [vmem:[#allocation2 + $0x10] sm:$0x7] (!%p166_p2), %vm240_vm0, %v1978_v0  ;;  %vm297_vm1 = vsmask.f32 (!%p166_p2), 2306 }
   0x9   : > { %vm2043_vm2 = vmand (!%p166_p2), %vm240_vm0, %vm297_vm1  ;;  %s1981_s27 = smov (!%p166_p2), 48   ;;  %vm1983_vm3 = vmmov (!%p166_p2), 0   ;;  %vm443_vm4 = vcmask (!%p166_p2), 130048   ;;  %vm456_vm5 = vcmask (!%p166_p2), 261120   ;;  %vm465_vm6 = vcmask (!%p166_p2), 392192   ;;  %s1985_s10 = smov (!%p166_p2), 8  }
   0xa   : > { %vm771_vm7 = vsmask.f32 (!%p166_p2), 1280  ;;  %vm772_vm8 = vsmask.f32 (!%p166_p2), 3336  ;;  %vm774_vm9 = vsmask.f32 (!%p166_p2), 5392 }
   0xb   : > { %vm773_vm10 = vmor (!%p166_p2), %vm771_vm7, %vm772_vm8  ;;  %vm776_vm11 = vsmask.f32 (!%p166_p2), 7448  ;;  %vm527_vm14 = vcmask (!%p166_p2), 523264   ;;  %vm572_vm15 = vcmask (!%p166_p2), 64512   ;;  %vm1629_vm0 = vcmask (!%p166_p2), 57344  }
   0xc   : > { %vm775_vm12 = vmor (!%p166_p2), %vm773_vm10, %vm774_vm9  ;;  %vm970_vm1 = vcmask (!%p166_p2), 123904  }
   0xd   : > { %s2416_s16 = smov (!%p195_p3, %s1718_s16), 1  ;;  %v2037_v6 = vld [vmem:[#allocation2 + $0x14] ss:$0 sps:$4 sm:$0x77]   ;;  %vm2251_vm13 = vmor %vm775_vm12, %vm776_vm11 }
   0xe   : > { %s1824_s17 = sshll.u32 %s2416_s16, 3  ;;  %v1915_v10 = vld [vmem:[#allocation2] ss:$0 sps:$4 sm:$0x66]   ;;  %1318 = vrot.lane.b32.xlu1 %v2037_v6, %s1979_s25  ;;  %v302_v35 = vld [vmem:[#allocation2 + $0x8] sm:$0x7] }
   0xf   : > { %s199_s22 = scalar_lea.vmem %s2406_s0, %s1824_s17  ;;  %v616_v14 = vshrl.u32 %v1915_v10, 16  ;;  %v618_v15 = vshll.u32 %v1915_v10, 16  ;;  %v299_v36 = vld [vmem:[#allocation2 + $0x4] sm:$0x7]  ;;  %v308_v42 = vld [vmem:[#allocation2 + $0x10] sm:$0x7] }
  0x10   : > { %v213_v3 = vld [vmem:[%s199_s22 + $0x2] sm:$0x3]  ;;  %v212_v4 = vld [vmem:[%s199_s22] sm:$0x3]  ;;  %v215_v5 = vld [vmem:[%s199_s22 + $0x6] sm:$0x3] }
  0x11   : > { %v217_v7 = vunpack.c.l.bf16 %v213_v3  ;;  %v216_v8 = vunpack.c.l.bf16 %v212_v4  ;;  %v219_v9 = vunpack.c.l.bf16 %v215_v5  ;;  %v214_v16 = vld [vmem:[%s199_s22 + $0x4] sm:$0x3]  ;;  %v620_v21 = vrot.slane %v618_v15, 1  ;;  %v305_v55 = vld [vmem:[#allocation2 + $0xc] sm:$0x7]  ;;  %s1727_s11 = sshll.u32 %s2416_s16, 1 }
  0x12   : > { %v218_v20 = vunpack.c.l.bf16 %v214_v16  ;;  %s208_s14 = scalar_lea.vmem %s2410_s4, %s1727_s11  ;;  %s1825_s17 = sshll.u32 %s2416_s16, 4 }
  0x13   : > { %v225_v11 = vmul.f32 %v1728_v1, %v217_v7  ;;  %v224_v12 = vmul.f32 %v1728_v1, %v216_v8  ;;  %v227_v13 = vmul.f32 %v1728_v1, %v219_v9  ;;  %v621_v26 = vor.u32 %v620_v21, %v616_v14  ;;  %s204_s20 = scalar_lea.vmem %s2409_s3, %s1825_s17 }
  0x14   : > { %v226_v25 = vmul.f32 %v1728_v1, %v218_v20 }
  0x15   : > { %v233_v17 = vadd.f32 %v1729_v2, %v225_v11  ;;  %v232_v18 = vadd.f32 %v1729_v2, %v224_v12  ;;  %v235_v19 = vadd.f32 %v1729_v2, %v227_v13  ;;  %643 = vrot.lane.b32.xlu0 %v621_v26, %s1980_s26 }
  0x16   : > { %v234_v30 = vadd.f32 %v1729_v2, %v226_v25 }
  0x17   : > { %v237_v22 = vmax.f32 %v233_v17, 0.0  ;;  %v236_v23 = vmax.f32 %v232_v18, 0.0  ;;  %v239_v24 = vmax.f32 %v235_v19, 0.0 }
  0x18   : > { %v238_v39 = vmax.f32 %v234_v30, 0.0 }
  0x19   : > { %v1827_v27 = vpack.c.bf16 %v237_v22, %v237_v22  ;;  %v1826_v28 = vpack.c.bf16 %v236_v23, %v236_v23  ;;  %v1829_v29 = vpack.c.bf16 %v239_v24, %v239_v24 }
  0x1a   : > { %v1828_v45 = vpack.c.bf16 %v238_v39, %v238_v39 }
  0x1b   : > { %v271_v31 = vshrl.u32 %v1827_v27, 16  ;;  %v274_v32 = vshll.u32 %v1827_v27, 16  ;;  %v264_v33 = vshrl.u32 %v1826_v28, 16  ;;  %v267_v34 = vshll.u32 %v1826_v28, 16 }
  0x1c   : > { %v285_v37 = vshrl.u32 %v1829_v29, 16  ;;  %v288_v38 = vshll.u32 %v1829_v29, 16  ;;  %v278_v49 = vshrl.u32 %v1828_v45, 16  ;;  %v281_v50 = vshll.u32 %v1828_v45, 16 }
  0x1d   : > { %v273_v40 = vrot.slane %v271_v31, 7  ;;  %v266_v41 = vrot.slane %v264_v33, 7 }
  0x1e   : > { %v287_v44 = vrot.slane %v285_v37, 7  ;;  %v280_v54 = vrot.slane %v278_v49, 7 }
  0x1f   : > { %v276_v46 = vor.u32 %v274_v32, %v273_v40  ;;  %v269_v47 = vor.u32 %v267_v34, %v266_v41 }
  0x20   : > { %v290_v48 = vor.u32 %v288_v38, %v287_v44  ;;  %v283_v56 = vor.u32 %v281_v50, %v280_v54 }
  0x21   : > { %v303_v51 = vsel %vm2043_vm2, %v276_v46, %v302_v35  ;;  %v300_v52 = vsel %vm2043_vm2, %v269_v47, %v299_v36 }
  0x22   : > { %304 = vst [vmem:[#allocation2 + $0x8] sm:$0x7] %v303_v51  ;;  %301 = vst [vmem:[#allocation2 + $0x4] sm:$0x7] %v300_v52  ;;  %v309_v53 = vsel %vm2043_vm2, %v290_v48, %v308_v42  ;;  %v306_v57 = vsel %vm2043_vm2, %v283_v56, %v305_v55  ;;  %v2088_v55 = vld [vmem:[#allocation2] sm:$0x7] }
  0x23   : > { %310 = vst [vmem:[#allocation2 + $0x10] sm:$0x7] %v309_v53  ;;  %307 = vst [vmem:[#allocation2 + $0xc] sm:$0x7] %v306_v57 }
  0x24   : > { %v1936_v51 = vld [vmem:[#allocation2 + $0x14] ss:$0 sps:$4 sm:$0x66]  }
  0x29   : > { %v2055_v58 = vld [vmem:[#allocation2 + $0x8] ss:$0 sps:$4 sm:$0x77]   ;;  %v2057_v59 = vld [vmem:[#allocation2 + $0x4] ss:$0 sps:$4 sm:$0x77]  }
  0x2a   : > { %653 = vrot.lane.b32.xlu1 %v2055_v58, %s1979_s25  ;;  %v2061_v60 = vld [vmem:[#allocation2 + $0x10] ss:$0 sps:$4 sm:$0x77]   ;;  %651 = vrot.lane.b32.xlu0 %v2057_v59, %s1979_s25  ;;  %v1922_v61 = vld [vmem:[#allocation2 + $0x8] ss:$0 sps:$4 sm:$0x66]  }
  0x2b   : > { %v2065_v62 = vld [vmem:[#allocation2 + $0xc] ss:$0 sps:$4 sm:$0x77]   ;;  %v2067_v63 = vld [vmem:[#allocation2 + $0x8] ss:$0 sps:$4 sm:$0x77]  }
  0x2c   : > { %v2071_v0 = vld [vmem:[#allocation2 + $0xc] ss:$0 sps:$4 sm:$0x77]   ;;  %v630_v1 = vshrl.u32 %v1922_v61, 16  ;;  %v632_v2 = vshll.u32 %v1922_v61, 16 }
  0x2d   : > { %v1924_v3 = vld [vmem:[#allocation2 + $0xc] ss:$0 sps:$4 sm:$0x66]   ;;  %v2075_v5 = vld [vmem:[#allocation2 + $0x10] ss:$0 sps:$4 sm:$0x77]  }
  0x2e   : > { %657 = vrot.lane.b32.xlu1 %v2061_v60, %s1979_s25  ;;  %655 = vrot.lane.b32.xlu0 %v2065_v62, %s1979_s25  ;;  %v634_v4 = vrot.slane %v632_v2, 1  ;;  %v1925_v7 = vld [vmem:[#allocation2 + $0x4] ss:$0 sps:$4 sm:$0x66]   ;;  %v637_v8 = vshrl.u32 %v1924_v3, 16  ;;  %v639_v9 = vshll.u32 %v1924_v3, 16 }
  0x2f   : > { %v623_v11 = vshrl.u32 %v1925_v7, 16  ;;  %v625_v12 = vshll.u32 %v1925_v7, 16  ;;  %v1926_v13 = vld [vmem:[#allocation2 + $0x8] ss:$0 sps:$4 sm:$0x66]  }
  0x30   : > { %v635_v10 = vor.u32 %v634_v4, %v630_v1  ;;  %v641_v14 = vrot.slane %v639_v9, 1  ;;  %v1927_v15 = vld [vmem:[#allocation2 + $0x4] ss:$0 sps:$4 sm:$0x66]   ;;  %v681_v17 = vshll.u32 %v1926_v13, 16  ;;  %v679_v20 = vshrl.u32 %v1926_v13, 16 }
  0x31   : > { %v627_v16 = vrot.slane %v625_v12, 1  ;;  %v1928_v18 = vld [vmem:[#allocation2 + $0x10] ss:$0 sps:$4 sm:$0x66]   ;;  %v674_v21 = vshll.u32 %v1927_v15, 16  ;;  %v672_v24 = vshrl.u32 %v1927_v15, 16  ;;  %v1734_v9 = vcombine.low %v2088_v55, %v2088_v55 }
  0x32   : > { %1314 = vrot.lane.b32.xlu1 %v2071_v0, %s1979_s25  ;;  %1312 = vrot.lane.b32.xlu0 %v2067_v63, %s1979_s25  ;;  %v642_v19 = vor.u32 %v641_v14, %v637_v8  ;;  %v683_v23 = vrot.slane %v681_v17, 1  ;;  %v695_v25 = vshll.u32 %v1928_v18, 16  ;;  %v1929_v26 = vld [vmem:[#allocation2 + $0xc] ss:$0 sps:$4 sm:$0x66]   ;;  %v693_v29 = vshrl.u32 %v1928_v18, 16 }
  0x33   : > { %v628_v22 = vor.u32 %v627_v16, %v623_v11  ;;  %v676_v27 = vrot.slane %v674_v21, 1  ;;  %v1930_v28 = vld [vmem:[#allocation2 + $0x8] ss:$0 sps:$4 sm:$0x66]   ;;  %v688_v30 = vshll.u32 %v1929_v26, 16  ;;  %v686_v36 = vshrl.u32 %v1929_v26, 16 }
  0x34   : > { %v1931_v31 = vld [vmem:[#allocation2 + $0x4] ss:$0 sps:$4 sm:$0x66]   ;;  %v684_v32 = vor.u32 %v683_v23, %v679_v20  ;;  %v697_v33 = vrot.slane %v695_v25, 1  ;;  %v1286_v34 = vshll.u32 %v1930_v28, 16  ;;  %v1284_v44 = vshrl.u32 %v1930_v28, 16 }
  0x35   : > { %v677_v35 = vor.u32 %v676_v27, %v672_v24  ;;  %v690_v37 = vrot.slane %v688_v30, 1  ;;  %v1279_v38 = vshll.u32 %v1931_v31, 16  ;;  %v1932_v39 = vld [vmem:[#allocation2 + $0x10] ss:$0 sps:$4 sm:$0x66]   ;;  %v1277_v47 = vshrl.u32 %v1931_v31, 16 }
  0x36   : > { %647 = vrot.lane.b32.xlu1 %v635_v10, %s1980_s26  ;;  %1316 = vrot.lane.b32.xlu0 %v2075_v5, %s1979_s25  ;;  %v1933_v40 = vld [vmem:[#allocation2 + $0xc] ss:$0 sps:$4 sm:$0x66]   ;;  %v1300_v41 = vshll.u32 %v1932_v39, 16  ;;  %v698_v43 = vor.u32 %v697_v33, %v693_v29  ;;  %v1288_v45 = vrot.slane %v1286_v34, 1  ;;  %v1298_v52 = vshrl.u32 %v1932_v39, 16 }
  0x37   : > { %v1934_v42 = vld [vmem:[#allocation2 + $0xc] ss:$0 sps:$4 sm:$0x66]   ;;  %v691_v46 = vor.u32 %v690_v37, %v686_v36  ;;  %v1281_v48 = vrot.slane %v1279_v38, 1  ;;  %v1293_v49 = vshll.u32 %v1933_v40, 16  ;;  %v1291_v54 = vshrl.u32 %v1933_v40, 16 }
  0x38   : > { %v1935_v50 = vld [vmem:[#allocation2 + $0x8] ss:$0 sps:$4 sm:$0x66]   ;;  %v1302_v53 = vrot.slane %v1300_v41, 1  ;;  %v1289_v56 = vor.u32 %v1288_v45, %v1284_v44  ;;  %v1342_v57 = vshll.u32 %v1934_v42, 16  ;;  %v1340_v7 = vshrl.u32 %v1934_v42, 16 }
  0x39   : > { %v1937_v61 = vld [vmem:[#allocation2 + $0x10] ss:$0 sps:$4 sm:$0x66]   ;;  %v1282_v1 = vor.u32 %v1281_v48, %v1277_v47  ;;  %v1295_v2 = vrot.slane %v1293_v49, 1  ;;  %v1335_v3 = vshll.u32 %v1935_v50, 16  ;;  %v1356_v8 = vshll.u32 %v1936_v51, 16 }
  0x3a   : > { %649 = vrot.lane.b32.xlu1 %v642_v19, %s1980_s26  ;;  %645 = vrot.lane.b32.xlu0 %v628_v22, %s1980_s26  ;;  %v2092_v4 = vld [vmem:[#allocation2 + $0x4] sm:$0x7]  ;;  %v1303_v10 = vor.u32 %v1302_v53, %v1298_v52  ;;  %v1344_v11 = vrot.slane %v1342_v57, 1  ;;  %v1333_v12 = vshrl.u32 %v1935_v50, 16  ;;  %v1349_v16 = vshll.u32 %v1937_v61, 16  ;;  %v1955_v45 = vld [vmem:[%s2408_s2 + $0x28] sm:$0xff]  }
  0x3b   : > { %v1735_v13 = vcombine.low %v2092_v4, %v2092_v4  ;;  %v1296_v14 = vor.u32 %v1295_v2, %v1291_v54  ;;  %v1337_v15 = vrot.slane %v1335_v3, 1  ;;  %v2100_v17 = vld [vmem:[#allocation2 + $0xc] sm:$0x7]  ;;  %v2102_v18 = vld [vmem:[#allocation2 + $0x8] sm:$0x7]  ;;  %v1354_v19 = vshrl.u32 %v1936_v51, 16 }
  0x3c   : > { %v1358_v20 = vrot.slane %v1356_v8, 1  ;;  %v1345_v21 = vor.u32 %v1344_v11, %v1340_v7  ;;  %v342_v22 = vshll.u32 %v1734_v9, 16  ;;  %v1737_v24 = vcombine.low %v2100_v17, %v2100_v17  ;;  %v1954_v37 = vld [vmem:[%s2408_s2 + $0x20] sm:$0xff]   ;;  %v1956_v50 = vld [vmem:[%s2408_s2 + $0x30] sm:$0xff]   ;;  %v2137_v53 = vld [vmem:[#allocation2 + $0x8] sm:$0x7] }
  0x3d   : > { %v349_v23 = vshll.u32 %v1735_v13, 16  ;;  %v1338_v25 = vor.u32 %v1337_v15, %v1333_v12  ;;  %v1347_v26 = vshrl.u32 %v1937_v61, 16  ;;  %v1351_v27 = vrot.slane %v1349_v16, 1  ;;  %v1943_v51 = vld [vmem:[#allocation2 + $0x8] ss:$0 sps:$4 sm:$0x33]  }
  0x3e   : > { %701 = vrot.lane.b32.xlu1 %v684_v32, %s1981_s27  ;;  %699 = vrot.lane.b32.xlu0 %v677_v35, %s1981_s27  ;;  %v1736_v28 = vcombine.low %v2102_v18, %v2102_v18  ;;  %v1359_v29 = vor.u32 %v1358_v20, %v1354_v19  ;;  %v347_v30 = vshrl.u32 %v1735_v13, 16  ;;  %v363_v32 = vshll.u32 %v1737_v24, 16  ;;  %v1942_v52 = vld [vmem:[#allocation2 + $0x4] ss:$0 sps:$4 sm:$0x33]   ;;  %v1957_v3 = vld [vmem:[%s2408_s2 + $0x38] sm:$0xff]  }
  0x3f   : > { %v351_v31 = vrot.slane %v349_v23, 1  ;;  %v1352_v33 = vor.u32 %v1351_v27, %v1347_v26  ;;  %v340_v34 = vshrl.u32 %v1734_v9, 16  ;;  %v344_v35 = vrot.slane %v342_v22, 1  ;;  %v2139_v54 = vld [vmem:[#allocation2 + $0x4] sm:$0x7]  ;;  %v1963_v13 = vld [vmem:[%s2408_s2 + $0x8] sm:$0xff]  }
  0x40   : > { %v356_v36 = vshll.u32 %v1736_v28, 16  ;;  %v361_v39 = vshrl.u32 %v1737_v24, 16  ;;  %v365_v40 = vrot.slane %v363_v32, 1  ;;  %v354_v42 = vshrl.u32 %v1736_v28, 16  ;;  %v2158_v11 = vld [vmem:[#allocation2 + $0x10] sm:$0x7] }
  0x41   : > { %v352_v38 = vor.u32 %v351_v31, %v347_v30  ;;  %v345_v41 = vor.u32 %v344_v35, %v340_v34  ;;  %v1982_v44 = vmov 0.0   ;;  %v410_v48 = vshll.u32 %v2057_v59, 16  ;;  %v1945_v7 = vld [vmem:[#allocation2 + $0x10] ss:$0 sps:$4 sm:$0x33]  }
  0x42   : > { %705 = vrot.lane.b32.xlu1 %v698_v43, %s1981_s27  ;;  %703 = vrot.lane.b32.xlu0 %v691_v46, %s1981_s27  ;;  %v358_v43 = vrot.slane %v356_v36, 1  ;;  %v366_v46 = vor.u32 %v365_v40, %v361_v39  ;;  %v417_v49 = vshll.u32 %v2055_v58, 16  ;;  %v408_v57 = vshrl.u32 %v2057_v59, 16  ;;  %v1944_v59 = vld [vmem:[#allocation2 + $0xc] ss:$0 sps:$4 sm:$0x33]  }
  0x43   : > { %1862 = vmatprep.subr.bf16.mxu1 %v1982_v44  ;;  %1850 = vmatprep.subr.bf16.mxu0 %v1982_v44  ;;  %v412_v61 = vrot.slane %v410_v48, 1  ;;  %v431_v8 = vshll.u32 %v2061_v60, 16  ;;  %v1773_v9 = vcombine.low %v2137_v53, %v2137_v53  ;;  %v2160_v12 = vld [vmem:[#allocation2 + $0xc] sm:$0x7]  ;;  %v429_v16 = vshrl.u32 %v2061_v60, 16  ;;  %v1964_v60 = vld [vmem:[%s2408_s2 + $0x10] sm:$0xff]  }
  0x44   : > { %1863 = vmatpush3.bf16.msra.mxu1 %v1954_v37  ;;  %v359_v47 = vor.u32 %v358_v43, %v354_v42  ;;  %1870 = vmatprep.mubr.msk.bf16.mxu1 %vm1983_vm3, %v1982_v44  ;;  %v419_v2 = vrot.slane %v417_v49, 1  ;;  %v422_v22 = vshrl.u32 %v2065_v62, 16  ;;  %v1951_v42 = vld [vmem:[#allocation2 + $0xc] ss:$0 sps:$4 sm:$0x33]   ;;  %v1082_v43 = vshll.u32 %v2071_v0, 16 }
  0x45   : > { %1864 = vmatprep.subr.bf16.mxu1 %v1982_v44  ;;  %1858 = vmatprep.mubr.msk.bf16.mxu0 %vm1983_vm3, %v1982_v44  ;;  %v433_v19 = vrot.slane %v431_v8, 1  ;;  %v1014_v20 = vshll.u32 %v1773_v9, 16  ;;  %v1012_v27 = vshrl.u32 %v1773_v9, 16  ;;  %v1080_v48 = vshrl.u32 %v2071_v0, 16 }
  0x46   : > { %1306 = vrot.lane.b32.xlu1 %v1289_v56, %s1980_s26  ;;  %1304 = vrot.lane.b32.xlu0 %v1282_v1, %s1980_s26  ;;  %v1962_v56 = vld [vmem:[%s2408_s2] sm:$0xff]   ;;  %v415_v1 = vshrl.u32 %v2055_v58, 16  ;;  %v424_v58 = vshll.u32 %v2065_v62, 16  ;;  %v1084_v49 = vrot.slane %v1082_v43, 1 }
  0x47   : > { %1851 = vmatpush3.bf16.msra.mxu0 %v1962_v56  ;;  %v434_v26 = vor.u32 %v433_v19, %v429_v16  ;;  %v1016_v28 = vrot.slane %v1014_v20, 1  ;;  %v491_v19 = vlaneseq }
  0x48   : > { %1865 = vmatpush3.bf16.msra.mxu1 %v1955_v45  ;;  %1852 = vmatprep.subr.bf16.mxu0 %v1982_v44  ;;  %v420_v15 = vor.u32 %v419_v2, %v415_v1  ;;  %v426_v23 = vrot.slane %v424_v58, 1  ;;  %v1950_v45 = vld [vmem:[#allocation2 + $0x8] ss:$0 sps:$4 sm:$0x33]   ;;  %v1094_v1 = vshrl.u32 %v2037_v6, 16 }
  0x49   : > { %1866 = vmatprep.subr.bf16.mxu1 %v1982_v44  ;;  %v1017_v34 = vor.u32 %v1016_v28, %v1012_v27 }
  0x4a   : > { %1310 = vrot.lane.b32.xlu1 %v1303_v10, %s1980_s26  ;;  %1308 = vrot.lane.b32.xlu0 %v1296_v14, %s1980_s26  ;;  %v1772_v10 = vcombine.low %v2139_v54, %v2139_v54  ;;  %v413_v14 = vor.u32 %v412_v61, %v408_v57  ;;  %v427_v62 = vor.u32 %v426_v23, %v422_v22  ;;  %v1089_v57 = vshll.u32 %v2075_v5, 16 }
  0x4b   : > { %1853 = vmatpush3.bf16.msra.mxu0 %v1963_v13  ;;  %v1085_v61 = vor.u32 %v1084_v49, %v1080_v48  ;;  %v492_v23 = vshrl.u32 %v491_v19, 7 }
  0x4c   : > { %1867 = vmatpush3.bf16.msra.mxu1 %v1956_v50  ;;  %v1007_v24 = vshll.u32 %v1772_v10, 16  ;;  %1854 = vmatprep.subr.bf16.mxu0 %v1982_v44  ;;  %v1005_v30 = vshrl.u32 %v1772_v10, 16  ;;  %v1096_v50 = vshll.u32 %v2037_v6, 16 }
  0x4d   : > { %1868 = vmatprep.subr.bf16.mxu1 %v1982_v44 }
  0x4e   : > { %1362 = vrot.lane.b32.xlu1 %v1345_v21, %s1981_s27  ;;  %1360 = vrot.lane.b32.xlu0 %v1338_v25, %s1981_s27  ;;  %v1775_v21 = vcombine.low %v2158_v11, %v2158_v11  ;;  %v1774_v25 = vcombine.low %v2160_v12, %v2160_v12  ;;  %v1009_v31 = vrot.slane %v1007_v24, 1  ;;  %v1098_v2 = vrot.slane %v1096_v50, 1 }
  0x4f   : > { %1855 = vmatpush3.bf16.msra.mxu0 %v1964_v60 }
  0x50   : > { %1869 = vmatpush3.bf16.msra.mxu1 %v1957_v3  ;;  %v1021_v32 = vshll.u32 %v1774_v25, 16  ;;  %1856 = vmatprep.subr.bf16.mxu0 %v1982_v44  ;;  %v1026_v35 = vshrl.u32 %v1775_v21, 16  ;;  %v1010_v37 = vor.u32 %v1009_v31, %v1005_v30  ;;  %v1087_v3 = vshrl.u32 %v2075_v5, 16 }
  0x51   : > { %1886 = vmatprep.subr.bf16.mxu1 %v1982_v44  ;;  %v1099_v8 = vor.u32 %v1098_v2, %v1094_v1 }
  0x52   : > { %1366 = vrot.lane.b32.xlu1 %v1359_v29, %s1981_s27  ;;  %1364 = vrot.lane.b32.xlu0 %v1352_v33, %s1981_s27  ;;  %v1028_v29 = vshll.u32 %v1775_v21, 16  ;;  %v1965_v33 = vld [vmem:[%s2408_s2 + $0x18] sm:$0xff]   ;;  %v1023_v39 = vrot.slane %v1021_v32, 1 }
  0x53   : > { %1857 = vmatpush3.bf16.msra.mxu0 %v1965_v33 }
  0x54   : > { %v1030_v36 = vrot.slane %v1028_v29, 1  ;;  %1874 = vmatprep.subr.bf16.mxu0 %v1982_v44 }
  0x56   : > { %369 = vrot.lane.b32.xlu1 %v352_v38, %s1980_s26  ;;  %367 = vrot.lane.b32.xlu0 %v345_v41, %s1980_s26  ;;  %v1019_v38 = vshrl.u32 %v1774_v25, 16  ;;  %v1031_v40 = vor.u32 %v1030_v36, %v1026_v35 }
  0x58   : > { %v1024_v41 = vor.u32 %v1023_v39, %v1019_v38 }
  0x5a   : > { %373 = vrot.lane.b32.xlu1 %v366_v46, %s1980_s26  ;;  %371 = vrot.lane.b32.xlu0 %v359_v47, %s1980_s26  ;;  %v1075_v46 = vshll.u32 %v2067_v63, 16  ;;  %v1953_v47 = vld [vmem:[#allocation2 + $0x14] ss:$0 sps:$4 sm:$0x33]  }
  0x5c   : > { %v1077_v56 = vrot.slane %v1075_v46, 1 }
  0x5e   : > { %389 = vrot.lane.b32.xlu1 %v1943_v51, %s1979_s25  ;;  %387 = vrot.lane.b32.xlu0 %v1942_v52, %s1979_s25  ;;  %v1952_v51 = vld [vmem:[#allocation2 + $0x10] ss:$0 sps:$4 sm:$0x33]   ;;  %v1073_v52 = vshrl.u32 %v2067_v63, 16 }
  0x60   : > { %v1078_v0 = vor.u32 %v1077_v56, %v1073_v52 }
  0x62   : > { %393 = vrot.lane.b32.xlu1 %v1945_v7, %s1979_s25  ;;  %391 = vrot.lane.b32.xlu0 %v1944_v59, %s1979_s25  ;;  %v1091_v7 = vrot.slane %v1089_v57, 1 }
  0x64   : > { %v1092_v63 = vor.u32 %v1091_v7, %v1087_v3 }
  0x66   : > { %437 = vrot.lane.b32.xlu1 %v420_v15, %s1981_s27  ;;  %435 = vrot.lane.b32.xlu0 %v413_v14, %s1981_s27  ;;  %v1984_v15 = vmov 1983009808  }
  0x67   : > { %v489_v16 = vunpack.c.l.s4 %v1984_v15 }
  0x69   : > { %v490_v22 = vunpack.c.0.s8 %v489_v16 }
  0x6a   : > { %441 = vrot.lane.b32.xlu1 %v434_v26, %s1981_s27  ;;  %439 = vrot.lane.b32.xlu0 %v427_v62, %s1981_s27 }
  0x6b   : > { %v2218_v26 = vsub.s32 %v490_v22, %v492_v23 }
  0x6e   : > { %1034 = vrot.lane.b32.xlu1 %v1017_v34, %s1980_s26  ;;  %1032 = vrot.lane.b32.xlu0 %v1010_v37, %s1980_s26 }
  0x72   : > { %1038 = vrot.lane.b32.xlu1 %v1031_v40, %s1980_s26  ;;  %1036 = vrot.lane.b32.xlu0 %v1024_v41, %s1980_s26 }
  0x76   : > { %1054 = vrot.lane.b32.xlu1 %v1951_v42, %s1979_s25  ;;  %1052 = vrot.lane.b32.xlu0 %v1950_v45, %s1979_s25 }
  0x7a   : > { %1058 = vrot.lane.b32.xlu1 %v1953_v47, %s1979_s25  ;;  %1056 = vrot.lane.b32.xlu0 %v1952_v51, %s1979_s25 }
  0x7e   : > { %1102 = vrot.lane.b32.xlu1 %v1085_v61, %s1981_s27  ;;  %1100 = vrot.lane.b32.xlu0 %v1078_v0, %s1981_s27 }
  0x80   : > { %v2208_v9 = vpop.permute.xlu1 %1318 }
  0x82   : > { %1106 = vrot.lane.b32.xlu1 %v1099_v8, %s1981_s27  ;;  %1104 = vrot.lane.b32.xlu0 %v1092_v63, %s1981_s27 }
  0x87   : > { %v644_v6 = vpop.permute.xlu0 %643 }
  0x88   : > { %v709_v27 = vsel %vm443_vm4, %v2088_v55, %v644_v6 }
  0x9c   : > { %v654_v59 = vpop.permute.xlu1 %653  ;;  %v652_v58 = vpop.permute.xlu0 %651 }
  0x9d   : > { %v720_v62 = vsel %vm456_vm5, %v709_v27, %v652_v58 }
  0xa0   : > { %v658_v10 = vpop.permute.xlu1 %657  ;;  %v656_v13 = vpop.permute.xlu0 %655 }
  0xa4   : > { %v2210_v14 = vpop.permute.xlu1 %1314  ;;  %v2212_v5 = vpop.permute.xlu0 %1312 }
  0xa8   : > { %v648_v20 = vpop.permute.xlu1 %647  ;;  %v2214_v21 = vpop.permute.xlu0 %1316 }
  0xa9   : > { %v715_v34 = vsel %vm443_vm4, %v2102_v18, %v648_v20 }
  0xaa   : > { %v724_v45 = vsel %vm456_vm5, %v715_v34, %v656_v13 }
  0xac   : > { %v650_v24 = vpop.permute.xlu1 %649  ;;  %v646_v25 = vpop.permute.xlu0 %645 }
  0xad   : > { %v712_v60 = vsel %vm443_vm4, %v2092_v4, %v646_v25  ;;  %v718_v30 = vsel %vm443_vm4, %v2100_v17, %v650_v24 }
  0xae   : > { %v722_v29 = vsel %vm456_vm5, %v712_v60, %v654_v59  ;;  %v726_v36 = vsel %vm456_vm5, %v718_v30, %v658_v10 }
  0xb0   : > { %v702_v28 = vpop.permute.xlu1 %701  ;;  %v700_v32 = vpop.permute.xlu0 %699 }
  0xb1   : > { %v730_v31 = vsel %vm465_vm6, %v722_v29, %v702_v28  ;;  %v728_v4 = vsel %vm465_vm6, %v720_v62, %v700_v32 }
  0xb2   : > { %v753_v33 = vrot.slane %v730_v31, %v2218_v26  ;;  %v745_v55 = vrot.slane %v728_v4, %v2218_v26 }
  0xb4   : > { %v793_v35 = vshrl.u32 %v753_v33, 16  ;;  %v706_v37 = vpop.permute.xlu1 %705  ;;  %v796_v38 = vshll.u32 %v753_v33, 16  ;;  %v779_v39 = vshrl.u32 %v745_v55, 16  ;;  %v782_v40 = vshll.u32 %v745_v55, 16  ;;  %v704_v41 = vpop.permute.xlu0 %703 }
  0xb5   : > { %v734_v17 = vsel %vm465_vm6, %v726_v36, %v706_v37  ;;  %v754_v42 = vcombine.high %v753_v33, %v753_v33  ;;  %v746_v46 = vcombine.high %v745_v55, %v745_v55  ;;  %v732_v18 = vsel %vm465_vm6, %v724_v45, %v704_v41 }
  0xb6   : > { %v769_v43 = vrot.slane %v734_v17, %v2218_v26  ;;  %v781_v47 = vrot.slane %v779_v39, 6  ;;  %v784_v48 = vrot.slane %v782_v40, 7  ;;  %v795_v51 = vrot.slane %v793_v35, 6 }
  0xb7   : > { %v798_v52 = vrot.slane %v796_v38, 7  ;;  %v761_v57 = vrot.slane %v732_v18, %v2218_v26  ;;  %v802_v1 = vshll.u32 %v754_v42, 16  ;;  %v788_v3 = vshll.u32 %v746_v46, 16 }
  0xb8   : > { %v821_v49 = vshrl.u32 %v769_v43, 16  ;;  %v1307_v50 = vpop.permute.xlu1 %1306  ;;  %v824_v56 = vshll.u32 %v769_v43, 16  ;;  %v1305_v61 = vpop.permute.xlu0 %1304  ;;  %v770_v2 = vcombine.high %v769_v43, %v769_v43  ;;  %v785_v6 = vor.u32 %v784_v48, %v781_v47 }
  0xb9   : > { %v762_v8 = vcombine.high %v761_v57, %v761_v57  ;;  %v807_v63 = vshrl.u32 %v761_v57, 16  ;;  %v810_v59 = vshll.u32 %v761_v57, 16  ;;  %v799_v10 = vor.u32 %v798_v52, %v795_v51 }
  0xba   : > { %v823_v0 = vrot.slane %v821_v49, 6  ;;  %v826_v7 = vrot.slane %v824_v56, 7  ;;  %v1373_v15 = vsel %vm443_vm4, %v2137_v53, %v1307_v50  ;;  %v830_v20 = vshll.u32 %v770_v2, 16 }
  0xbb   : > { %v809_v13 = vrot.slane %v807_v63, 6  ;;  %v812_v22 = vrot.slane %v810_v59, 7  ;;  %v1370_v23 = vsel %vm443_vm4, %v2139_v54, %v1305_v61  ;;  %v804_v24 = vrot.slane %v802_v1, 7 }
  0xbc   : > { %v1311_v58 = vpop.permute.xlu1 %1310  ;;  %v1309_v16 = vpop.permute.xlu0 %1308  ;;  %v827_v19 = vor.u32 %v826_v7, %v823_v0  ;;  %v790_v25 = vrot.slane %v788_v3, 7  ;;  %v816_v60 = vshll.u32 %v762_v8, 16  ;;  %v786_v27 = vrot.slane %v785_v6, 2 }
  0xbd   : > { %v813_v28 = vor.u32 %v812_v22, %v809_v13  ;;  %v1379_v29 = vsel %vm443_vm4, %v2158_v11, %v1311_v58  ;;  %v1383_v53 = vsel %vm456_vm5, %v1373_v15, %v2210_v14  ;;  %v800_v30 = vrot.slane %v799_v10, 2 }
  0xbe   : > { %v1376_v31 = vsel %vm443_vm4, %v2160_v12, %v1309_v16  ;;  %v1381_v33 = vsel %vm456_vm5, %v1370_v23, %v2212_v5  ;;  %v828_v11 = vrot.slane %v827_v19, 2  ;;  %v832_v34 = vrot.slane %v830_v20, 7 }
  0xbf   : > { %v814_v35 = vrot.slane %v813_v28, 2  ;;  %v818_v36 = vrot.slane %v816_v60, 7  ;;  %v1387_v37 = vsel %vm456_vm5, %v1379_v29, %v2208_v9  ;;  %v1385_v5 = vsel %vm456_vm5, %v1376_v31, %v2214_v21 }
  0xc0   : > { %v1363_v62 = vpop.permute.xlu1 %1362  ;;  %v1361_v4 = vpop.permute.xlu0 %1360  ;;  %v791_v17 = vsel %vm2251_vm13, %v786_v27, %v790_v25  ;;  %v805_v46 = vsel %vm2251_vm13, %v800_v30, %v804_v24  ;;  %v833_v48 = vsel %vm2251_vm13, %v828_v11, %v832_v34  ;;  %v1958_v27 = vld [vmem:[%s2408_s2 + $0x60] sm:$0xff]  }
  0xc1   : > { %v1391_v32 = vsel %vm465_vm6, %v1383_v53, %v1363_v62  ;;  %v1389_v55 = vsel %vm465_vm6, %v1381_v33, %v1361_v4  ;;  %v819_v51 = vsel %vm2251_vm13, %v814_v35, %v818_v36  ;;  %v843_v57 = vcombine.low %v791_v17, %v805_v46  ;;  %v312_v11 = vld [vmem:[#allocation2 + $0x4] sm:$0x3]  ;;  %v311_v35 = vld [vmem:[#allocation2] sm:$0x3]  ;;  %v1959_v36 = vld [vmem:[%s2408_s2 + $0x68] sm:$0xff]  }
  0xc2   : > { %v1414_v14 = vrot.slane %v1391_v32, %v2218_v26  ;;  %v1406_v12 = vrot.slane %v1389_v55, %v2218_v26  ;;  %v844_v6 = vcombine.low %v819_v51, %v833_v48 }
  0xc3   : > { %v851_v19 = vrot.slane %v843_v57, %v2218_v26 }
  0xc4   : > { %v1447_v38 = vshrl.u32 %v1414_v14, 16  ;;  %v1450_v39 = vshll.u32 %v1414_v14, 16  ;;  %v1367_v40 = vpop.permute.xlu1 %1366  ;;  %v1433_v41 = vshrl.u32 %v1406_v12, 16  ;;  %v1436_v42 = vshll.u32 %v1406_v12, 16  ;;  %v1365_v45 = vpop.permute.xlu0 %1364 }
  0xc5   : > { %v1395_v43 = vsel %vm465_vm6, %v1387_v37, %v1367_v40  ;;  %v1393_v50 = vsel %vm465_vm6, %v1385_v5, %v1365_v45  ;;  %v1415_v1 = vcombine.high %v1414_v14, %v1414_v14  ;;  %v1407_v2 = vcombine.high %v1406_v12, %v1406_v12 }
  0xc6   : > { %v1449_v18 = vrot.slane %v1447_v38, 6  ;;  %v1452_v47 = vrot.slane %v1450_v39, 7  ;;  %v1430_v9 = vrot.slane %v1395_v43, %v2218_v26  ;;  %v1435_v49 = vrot.slane %v1433_v41, 6  ;;  %v314_v43 = vld [vmem:[#allocation2 + $0xc] sm:$0x3] }
  0xc7   : > { %v1438_v21 = vrot.slane %v1436_v42, 7  ;;  %v1422_v3 = vrot.slane %v1393_v50, %v2218_v26  ;;  %v858_v20 = vrot.slane %v844_v6, %v2218_v26  ;;  %v1456_v23 = vshll.u32 %v1415_v1, 16 }
  0xc8   : > { %v1431_v52 = vcombine.high %v1430_v9, %v1430_v9  ;;  %v1475_v56 = vshrl.u32 %v1430_v9, 16  ;;  %v370_v61 = vpop.permute.xlu1 %369  ;;  %v1478_v0 = vshll.u32 %v1430_v9, 16  ;;  %v368_v7 = vpop.permute.xlu0 %367  ;;  %v1453_v8 = vor.u32 %v1452_v47, %v1449_v18  ;;  %v313_v18 = vld [vmem:[#allocation2 + $0x8] sm:$0x3]  ;;  %v1960_v47 = vld [vmem:[%s2408_s2 + $0x70] sm:$0xff]  }
  0xc9   : > { %v1439_v59 = vor.u32 %v1438_v21, %v1435_v49  ;;  %v1423_v10 = vcombine.high %v1422_v3, %v1422_v3  ;;  %v1461_v13 = vshrl.u32 %v1422_v3, 16  ;;  %v1464_v16 = vshll.u32 %v1422_v3, 16 }
  0xca   : > { %v1477_v63 = vrot.slane %v1475_v56, 6  ;;  %v1480_v58 = vrot.slane %v1478_v0, 7  ;;  %v1484_v15 = vshll.u32 %v1431_v52, 16  ;;  %v1442_v24 = vshll.u32 %v1407_v2, 16  ;;  %v1961_v56 = vld [vmem:[%s2408_s2 + $0x78] sm:$0xff]  }
  0xcb   : > { %v1463_v60 = vrot.slane %v1461_v13, 6  ;;  %v1466_v29 = vrot.slane %v1464_v16, 7  ;;  %v1470_v53 = vshll.u32 %v1423_v10, 16  ;;  %v859_v62 = vcombine.low %v851_v19, %v858_v20  ;;  %v1966_v20 = vld [vmem:[%s2408_s2 + $0x40] sm:$0xff]  }
  0xcc   : > { %v374_v22 = vpop.permute.xlu1 %373  ;;  %v1481_v25 = vor.u32 %v1480_v58, %v1477_v63  ;;  %v372_v28 = vpop.permute.xlu0 %371  ;;  %v1454_v30 = vrot.slane %v1453_v8, 2  ;;  %v1440_v31 = vrot.slane %v1439_v59, 2  ;;  %v1486_v33 = vrot.slane %v1484_v15, 7 }
  0xcd   : > { %v1467_v4 = vor.u32 %v1466_v29, %v1463_v60  ;;  %1871 = vmatmul.mubr.msk.bf16.vlgmr.msra.gmra.mrb[0].mxu1 %vm527_vm14, %v859_v62  ;;  %v1458_v14 = vrot.slane %v1456_v23, 7  ;;  %v1444_v55 = vrot.slane %v1442_v24, 7  ;;  %v1472_v39 = vrot.slane %v1470_v53, 7  ;;  %v976_v60 = vld [vmem:[#allocation2 + $0x8] sm:$0x3]  ;;  %v1968_v53 = vld [vmem:[%s2408_s2 + $0x50] sm:$0xff]  }
  0xce   : > { %v1482_v32 = vrot.slane %v1481_v25, 2  ;;  %1887 = vmatpush3.bf16.msra.mxu1 %v1958_v27  ;;  %1894 = vmatprep.mubr.msk.bf16.mxu1 %vm1983_vm3, %v1982_v44  ;;  %v449_v17 = vsel %vm443_vm4, %v312_v11, %v370_v61  ;;  %v446_v42 = vsel %vm443_vm4, %v311_v35, %v368_v7  ;;  %v455_v54 = vsel %vm443_vm4, %v314_v43, %v374_v22  ;;  %v1967_v25 = vld [vmem:[%s2408_s2 + $0x48] sm:$0xff]  }
  0xcf   : > { %v1468_v38 = vrot.slane %v1467_v4, 2  ;;  %1888 = vmatprep.subr.bf16.mxu1 %v1982_v44  ;;  %v1459_v40 = vsel %vm2251_vm13, %v1454_v30, %v1458_v14  ;;  %v1445_v5 = vsel %vm2251_vm13, %v1440_v31, %v1444_v55  ;;  %v452_v50 = vsel %vm443_vm4, %v313_v18, %v372_v28  ;;  %v975_v28 = vld [vmem:[#allocation2 + $0x4] sm:$0x3]  ;;  %v978_v31 = vld [vmem:[#allocation2 + $0x10] sm:$0x3] }
  0xd0   : > { %v390_v34 = vpop.permute.xlu1 %389  ;;  %v388_v12 = vpop.permute.xlu0 %387  ;;  %v1487_v37 = vsel %vm2251_vm13, %v1482_v32, %v1486_v33  ;;  %v1497_v48 = vcombine.low %v1445_v5, %v1459_v40  ;;  %v977_v33 = vld [vmem:[#allocation2 + $0xc] sm:$0x3] }
  0xd1   : > { %v1473_v41 = vsel %vm2251_vm13, %v1468_v38, %v1472_v39  ;;  %v460_v49 = vsel %vm456_vm5, %v449_v17, %v390_v34  ;;  %v458_v21 = vsel %vm456_vm5, %v446_v42, %v388_v12  ;;  %v1969_v34 = vld [vmem:[%s2408_s2 + $0x58] sm:$0xff]  }
  0xd2   : > { %v1498_v46 = vcombine.low %v1473_v41, %v1487_v37  ;;  %1889 = vmatpush3.bf16.msra.mxu1 %v1959_v36  ;;  %v1505_v2 = vrot.slane %v1497_v48, %v2218_v26 }
  0xd3   : > { %1890 = vmatprep.subr.bf16.mxu1 %v1982_v44 }
  0xd4   : > { %v394_v45 = vpop.permute.xlu1 %393  ;;  %v392_v9 = vpop.permute.xlu0 %391  ;;  %v1512_v51 = vrot.slane %v1498_v46, %v2218_v26 }
  0xd5   : > { %v464_v1 = vsel %vm456_vm5, %v455_v54, %v394_v45  ;;  %v462_v3 = vsel %vm456_vm5, %v452_v50, %v392_v9 }
  0xd6   : > { %1891 = vmatpush3.bf16.msra.mxu1 %v1960_v47  ;;  %v1513_v8 = vcombine.low %v1505_v2, %v1512_v51 }
  0xd7   : > { %1892 = vmatprep.subr.bf16.mxu1 %v1982_v44 }
  0xd8   : > { %v438_v52 = vpop.permute.xlu1 %437  ;;  %v436_v57 = vpop.permute.xlu0 %435 }
  0xd9   : > { %v469_v61 = vsel %vm465_vm6, %v460_v49, %v438_v52  ;;  %v467_v0 = vsel %vm465_vm6, %v458_v21, %v436_v57 }
  0xda   : > { %v486_v7 = vcombine.low %v467_v0, %v469_v61  ;;  %1893 = vmatpush3.bf16.msra.mxu1 %v1961_v56 }
  0xdc   : > { %v442_v63 = vpop.permute.xlu1 %441  ;;  %v440_v6 = vpop.permute.xlu0 %439  ;;  %v494_v10 = vrot.slane %v486_v7, %v2218_v26 }
  0xdd   : > { %v473_v59 = vsel %vm465_vm6, %v464_v1, %v442_v63  ;;  %v471_v58 = vsel %vm465_vm6, %v462_v3, %v440_v6  ;;  %1895 = vmatmul.mubr.msk.bf16.vlgmr.msra.gmra.mrb[4].mxu1 %vm527_vm14, %v1513_v8 }
  0xde   : > { %v487_v13 = vcombine.low %v471_v58, %v473_v59 }
  0xe0   : > { %v1035_v15 = vpop.permute.xlu1 %1034  ;;  %v501_v16 = vrot.slane %v487_v13, %v2218_v26  ;;  %v1033_v19 = vpop.permute.xlu0 %1032 }
  0xe1   : > { %v1113_v62 = vsel %vm443_vm4, %v976_v60, %v1035_v15  ;;  %v1110_v30 = vsel %vm443_vm4, %v975_v28, %v1033_v19 }
  0xe2   : > { %v502_v22 = vcombine.low %v494_v10, %v501_v16 }
  0xe4   : > { %v1039_v23 = vpop.permute.xlu1 %1038  ;;  %v1037_v24 = vpop.permute.xlu0 %1036  ;;  %1859 = vmatmul.mubr.msk.bf16.vlgmr.msra.gmra.mrb[0].mxu0 %vm527_vm14, %v502_v22 }
  0xe5   : > { %1875 = vmatpush3.bf16.msra.mxu0 %v1966_v20  ;;  %1882 = vmatprep.mubr.msk.bf16.mxu0 %vm1983_vm3, %v1982_v44  ;;  %v1119_v14 = vsel %vm443_vm4, %v978_v31, %v1039_v23  ;;  %v1116_v35 = vsel %vm443_vm4, %v977_v33, %v1037_v24 }
  0xe6   : > { %1876 = vmatprep.subr.bf16.mxu0 %v1982_v44 }
  0xe8   : > { %v1055_v27 = vpop.permute.xlu1 %1054  ;;  %v1053_v29 = vpop.permute.xlu0 %1052 }
  0xe9   : > { %1877 = vmatpush3.bf16.msra.mxu0 %v1967_v25  ;;  %v1123_v11 = vsel %vm456_vm5, %v1113_v62, %v1055_v27  ;;  %v1121_v55 = vsel %vm456_vm5, %v1110_v30, %v1053_v29 }
  0xea   : > { %1878 = vmatprep.subr.bf16.mxu0 %v1982_v44 }
  0xec   : > { %v1059_v32 = vpop.permute.xlu1 %1058  ;;  %v1057_v4 = vpop.permute.xlu0 %1056 }
  0xed   : > { %1879 = vmatpush3.bf16.msra.mxu0 %v1968_v53  ;;  %v1127_v38 = vsel %vm456_vm5, %v1119_v14, %v1059_v32  ;;  %v1125_v40 = vsel %vm456_vm5, %v1116_v35, %v1057_v4 }
  0xee   : > { %1880 = vmatprep.subr.bf16.mxu0 %v1982_v44 }
  0xf0   : > { %v1103_v36 = vpop.permute.xlu1 %1102  ;;  %v1101_v12 = vpop.permute.xlu0 %1100 }
  0xf1   : > { %v1131_v37 = vsel %vm465_vm6, %v1123_v11, %v1103_v36  ;;  %v1129_v39 = vsel %vm465_vm6, %v1121_v55, %v1101_v12  ;;  %1881 = vmatpush3.bf16.msra.mxu0 %v1969_v34 }
  0xf2   : > { %v1149_v5 = vcombine.low %v1129_v39, %v1131_v37 }
  0xf4   : > { %v1107_v17 = vpop.permute.xlu1 %1106  ;;  %v1105_v41 = vpop.permute.xlu0 %1104  ;;  %v1157_v43 = vrot.slane %v1149_v5, %v2218_v26 }
  0xf5   : > { %v1135_v42 = vsel %vm465_vm6, %v1127_v38, %v1107_v17  ;;  %v1133_v44 = vsel %vm465_vm6, %v1125_v40, %v1105_v41 }
  0xf6   : > { %v1150_v45 = vcombine.low %v1133_v44, %v1135_v42 }
  0xf8   : > { %v1164_v46 = vrot.slane %v1150_v45, %v2218_v26 }
  0xfa   : > { %v1165_v18 = vcombine.low %v1157_v43, %v1164_v46 }
  0xfc   : > { %1883 = vmatmul.mubr.msk.bf16.vlgmr.msra.gmra.mrb[4].mxu0 %vm527_vm14, %v1165_v18 }
 0x1a0   : > { %v921_v47 = vpop.f32.mrb[0].mxu1 }
 0x1a1   : > { %v938_v9 = vmul.f32 %v921_v47, %v921_v47  ;;  %952 = vrot.lane.b32.xlu0 %v921_v47, %s1985_s10  ;;  %v1872_v48 = vpop.f32.mrb[1].mxu1  ;;  %v928_v54 = vsel %vm572_vm15, %v921_v47, 0.0 }
 0x1a2   : > { %v924_v49 = vpop.f32.mrb[2].mxu1 }
 0x1a3   : > { %v929_v21 = vsel %vm572_vm15, %v924_v49, 0.0  ;;  %v939_v50 = vmul.f32 %v924_v49, %v924_v49  ;;  %v1873_v51 = vpop.f32.mrb[3].mxu1  ;;  %954 = vrot.lane.b32.xlu1 %v924_v49, %s1985_s10  ;;  %v940_v26 = vsel %vm572_vm15, %v938_v9, 0.0 }
 0x1a4   : > { %v930_v52 = vadd.f32 %v929_v21, %v928_v54 }
 0x1a5   : > { %v941_v56 = vsel %vm572_vm15, %v939_v50, 0.0 }
 0x1a6   : > { %v942_v57 = vadd.f32 %v941_v56, %v940_v26  ;;  %v931_v1 = vrot.slane %v930_v52, 4 }
 0x1a8   : > { %v943_v59 = vrot.slane %v942_v57, 4  ;;  %v932_v10 = vadd.f32 %v931_v1, %v930_v52 }
 0x1aa   : > { %v944_v25 = vadd.f32 %v943_v59, %v942_v57  ;;  %v933_v28 = vrot.slane %v932_v10, 2 }
 0x1ac   : > { %v945_v32 = vrot.slane %v944_v25, 2  ;;  %v934_v4 = vadd.f32 %v933_v28, %v932_v10 }
 0x1ae   : > { %v946_v55 = vadd.f32 %v945_v32, %v944_v25  ;;  %v935_v36 = vrot.slane %v934_v4, 1 }
 0x1b0   : > { %v1575_v61 = vpop.f32.mrb[4].mxu1  ;;  %v947_v39 = vrot.slane %v946_v55, 1  ;;  %v936_v5 = vadd.f32 %v935_v36, %v934_v4 }
 0x1b1   : > { %v1592_v2 = vmul.f32 %v1575_v61, %v1575_v61  ;;  %1606 = vrot.lane.b32.xlu0 %v1575_v61, %s1985_s10  ;;  %v1896_v0 = vpop.f32.mrb[5].mxu1  ;;  %v1582_v7 = vsel %vm572_vm15, %v1575_v61, 0.0 }
 0x1b2   : > { %v1578_v3 = vpop.f32.mrb[6].mxu1  ;;  %v948_v44 = vadd.f32 %v947_v39, %v946_v55 }
 0x1b3   : > { %v1583_v8 = vsel %vm572_vm15, %v1578_v3, 0.0  ;;  %v1593_v63 = vmul.f32 %v1578_v3, %v1578_v3  ;;  %v1897_v6 = vpop.f32.mrb[7].mxu1  ;;  %1608 = vrot.lane.b32.xlu1 %v1578_v3, %s1985_s10  ;;  %v1594_v13 = vsel %vm572_vm15, %v1592_v2, 0.0 }
 0x1b4   : > { %v1584_v58 = vadd.f32 %v1583_v8, %v1582_v7 }
 0x1b5   : > { %v1595_v15 = vsel %vm572_vm15, %v1593_v63, 0.0 }
 0x1b6   : > { %v1596_v19 = vadd.f32 %v1595_v15, %v1594_v13  ;;  %v1585_v46 = vrot.slane %v1584_v58, 4 }
 0x1b7   : > { %v2363_v16 = vpop.f32.mrb[0].mxu0 }
 0x1b8   : > { %v573_v20 = vsel %vm572_vm15, %v2363_v16, 0.0  ;;  %v583_v22 = vmul.f32 %v2363_v16, %v2363_v16  ;;  %v1860_v23 = vpop.f32.mrb[1].mxu0  ;;  %v1597_v18 = vrot.slane %v1596_v19, 4  ;;  %v1586_v54 = vadd.f32 %v1585_v46, %v1584_v58 }
 0x1b9   : > { %v2369_v24 = vpop.f32.mrb[2].mxu0 }
 0x1ba   : > { %v574_v60 = vsel %vm572_vm15, %v2369_v24, 0.0  ;;  %v1861_v27 = vpop.f32.mrb[3].mxu0  ;;  %v585_v29 = vsel %vm572_vm15, %v583_v22, 0.0  ;;  %v584_v62 = vmul.f32 %v2369_v24, %v2369_v24  ;;  %v1598_v56 = vadd.f32 %v1597_v18, %v1596_v19 }
 0x1bb   : > { %v575_v53 = vadd.f32 %v574_v60, %v573_v20  ;;  %v1587_v1 = vrot.slane %v1586_v54, 2 }
 0x1bc   : > { %v586_v31 = vsel %vm572_vm15, %v584_v62, 0.0  ;;  %v1599_v3 = vrot.slane %v1598_v56, 2 }
 0x1bd   : > { %v576_v30 = vrot.slane %v575_v53, 4  ;;  %v587_v33 = vadd.f32 %v586_v31, %v585_v29  ;;  %v1588_v63 = vadd.f32 %v1587_v1, %v1586_v54 }
 0x1be   : > { %v1600_v58 = vadd.f32 %v1599_v3, %v1598_v56 }
 0x1bf   : > { %v577_v11 = vadd.f32 %v576_v30, %v575_v53  ;;  %v588_v34 = vrot.slane %v587_v33, 4  ;;  %v1589_v15 = vrot.slane %v1588_v63, 1 }
 0x1c0   : > { %v1601_v19 = vrot.slane %v1600_v58, 1 }
 0x1c1   : > { %v578_v14 = vrot.slane %v577_v11, 2  ;;  %v589_v35 = vadd.f32 %v588_v34, %v587_v33  ;;  %v1590_v60 = vadd.f32 %v1589_v15, %v1588_v63 }
 0x1c2   : > { %v1602_v29 = vadd.f32 %v1601_v19, %v1600_v58 }
 0x1c3   : > { %v579_v12 = vadd.f32 %v578_v14, %v577_v11  ;;  %v590_v37 = vrot.slane %v589_v35, 2 }
 0x1c5   : > { %v580_v38 = vrot.slane %v579_v12, 1  ;;  %v591_v40 = vadd.f32 %v590_v37, %v589_v35 }
 0x1c7   : > { %v581_v17 = vadd.f32 %v580_v38, %v579_v12  ;;  %v592_v41 = vrot.slane %v591_v40, 1 }
 0x1c9   : > { %v937_v42 = vadd.f32 %v936_v5, %v581_v17  ;;  %v593_v43 = vadd.f32 %v592_v41, %v591_v40 }
 0x1cb   : > { %v949_v45 = vadd.f32 %v948_v44, %v593_v43 }
 0x1cf   : > { %v1227_v47 = vpop.f32.mrb[4].mxu0 }
 0x1d0   : > { %v1234_v9 = vsel %vm572_vm15, %v1227_v47, 0.0  ;;  %v1244_v48 = vmul.f32 %v1227_v47, %v1227_v47  ;;  %v1884_v49 = vpop.f32.mrb[5].mxu0 }
 0x1d1   : > { %v1230_v21 = vpop.f32.mrb[6].mxu0 }
 0x1d2   : > { %v1246_v50 = vsel %vm572_vm15, %v1244_v48, 0.0  ;;  %v1235_v51 = vsel %vm572_vm15, %v1230_v21, 0.0  ;;  %v1245_v52 = vmul.f32 %v1230_v21, %v1230_v21  ;;  %v1885_v26 = vpop.f32.mrb[7].mxu0 }
 0x1d3   : > { %v1236_v57 = vadd.f32 %v1235_v51, %v1234_v9 }
 0x1d4   : > { %v1247_v61 = vsel %vm572_vm15, %v1245_v52, 0.0 }
 0x1d5   : > { %v1237_v2 = vrot.slane %v1236_v57, 4  ;;  %v1248_v0 = vadd.f32 %v1247_v61, %v1246_v50 }
 0x1d7   : > { %v1238_v7 = vadd.f32 %v1237_v2, %v1236_v57  ;;  %v1249_v8 = vrot.slane %v1248_v0, 4 }
 0x1d9   : > { %v1239_v6 = vrot.slane %v1238_v7, 2  ;;  %v1250_v59 = vadd.f32 %v1249_v8, %v1248_v0 }
 0x1db   : > { %v1240_v10 = vadd.f32 %v1239_v6, %v1238_v7  ;;  %v1251_v13 = vrot.slane %v1250_v59, 2 }
 0x1dd   : > { %v1241_v20 = vrot.slane %v1240_v10, 1  ;;  %v1252_v22 = vadd.f32 %v1251_v13, %v1250_v59 }
 0x1df   : > { %v1242_v23 = vadd.f32 %v1241_v20, %v1240_v10  ;;  %v1253_v25 = vrot.slane %v1252_v22, 1 }
 0x1e1   : > { %v1243_v27 = vadd.f32 %v1242_v23, %v937_v42  ;;  %v1254_v28 = vadd.f32 %v1253_v25, %v1252_v22 }
 0x1e3   : > { %v1255_v53 = vadd.f32 %v1254_v28, %v949_v45  ;;  %v1591_v62 = vadd.f32 %v1590_v60, %v1243_v27 }
 0x1e5   : > { %v1603_v30 = vadd.f32 %v1602_v29, %v1255_v53  ;;  %1630 = vst.msk [vmem:[%s208_s14] sm:$0x1] %vm1629_vm0, %v1591_v62 }
 0x1e7   : > { %1631 = vst.msk [vmem:[%s208_s14 + $0x1] sm:$0x1] %vm1629_vm0, %v1603_v30 }
 0x213   : > { %v953_v31 = vpop.permute.xlu0 %952 }
 0x214   : > { %v958_v32 = vsel %vm572_vm15, %v2363_v16, %v953_v31 }
 0x215   : > { %v962_v33 = vcombine.high %v958_v32, %v958_v32  ;;  %v966_v4 = vpack.c.bf16 %v958_v32, %v958_v32  ;;  %v955_v11 = vpop.permute.xlu1 %954 }
 0x216   : > { %v959_v34 = vsel %vm572_vm15, %v2369_v24, %v955_v11 }
 0x217   : > { %v967_v14 = vpack.c.bf16 %v962_v33, %v962_v33  ;;  %971 = vst.msk [vmem:[%s204_s20] sm:$0x3] %vm970_vm1, %v966_v4  ;;  %v963_v55 = vcombine.high %v959_v34, %v959_v34  ;;  %v968_v35 = vpack.c.bf16 %v959_v34, %v959_v34 }
 0x219   : > { %972 = vst.msk [vmem:[%s204_s20 + $0x4] sm:$0x3] %vm970_vm1, %v967_v14  ;;  %v969_v36 = vpack.c.bf16 %v963_v55, %v963_v55  ;;  %973 = vst.msk [vmem:[%s204_s20 + $0x8] sm:$0x3] %vm970_vm1, %v968_v35 }
 0x21b   : > { %974 = vst.msk [vmem:[%s204_s20 + $0xc] sm:$0x3] %vm970_vm1, %v969_v36 }
 0x223   : > { %v1607_v12 = vpop.permute.xlu0 %1606 }
 0x224   : > { %v1612_v16 = vsel %vm572_vm15, %v1227_v47, %v1607_v12 }
 0x225   : > { %v1616_v37 = vcombine.high %v1612_v16, %v1612_v16  ;;  %v1620_v38 = vpack.c.bf16 %v1612_v16, %v1612_v16  ;;  %v1609_v39 = vpop.permute.xlu1 %1608 }
 0x226   : > { %v1613_v24 = vsel %vm572_vm15, %v1230_v21, %v1609_v39 }
 0x227   : > { %v1621_v40 = vpack.c.bf16 %v1616_v37, %v1616_v37  ;;  %1818 = vst.msk [vmem:[%s204_s20 + $0x2] sm:$0x3] %vm970_vm1, %v1620_v38  ;;  %v1617_v5 = vcombine.high %v1613_v24, %v1613_v24  ;;  %v1622_v17 = vpack.c.bf16 %v1613_v24, %v1613_v24 }
 0x229   : > { %1819 = vst.msk [vmem:[%s204_s20 + $0x6] sm:$0x3] %vm970_vm1, %v1621_v40  ;;  %v1623_v41 = vpack.c.bf16 %v1617_v5, %v1617_v5  ;;  %1820 = vst.msk [vmem:[%s204_s20 + $0xa] sm:$0x3] %vm970_vm1, %v1622_v17 }
 0x22b   : > { %1821 = vst.msk [vmem:[%s204_s20 + $0xe] sm:$0x3] %vm970_vm1, %v1623_v41 }
 0x22c PF: > { %s15_s15 = sadd.s32 1, %s1976_s15  }
 0x22d   : > { %p12_p4 = scmp.ge.s32.totalorder %s15_s15, 4  }
 0x22f   :  { %14 = sbr.rel (!%p12_p4) target bundleno = 1 (0x1), region = 80 }

// kernel: generator_forward.5
= control target key start
LH: loop header
LB: loop body
LE: loop exit
PB: predicated region body
PF: predicated region fallthrough
CT: control target
= control target key end

     0   :  { %s3019_s12 = smov 0   ;;  %s3917_s0 = inlined_call_operand.vmem [shape: bf16[2,8,8,8], index: 0, kind: input, shape index: {}]   ;;  %s3918_s1 = inlined_call_operand.vmem [shape: f32[2,8], index: 1, kind: input, shape index: {}]   ;;  %s3919_s2 = inlined_call_operand.vmem [shape: bf16[4,32,3], index: 2, kind: input, shape index: {}]   ;;  %s3920_s3 = inlined_call_operand.vmem [shape: f32[2,8,2,8,6], index: 3, kind: output, shape index: {}]  }
   0x1 LB: > { %s2548_s13 = sadd.s32 4294967295, %s2992_s12   ;;  %p2552_p0 = scmp.ge.s32.totalorder %s2992_s12, 1  ;;  %s2992_s12 = sphi %s3019_s12, %s13_s12  }
   0x2   : > { %p137_p1 = scmp.lt.s32.totalorder %s2992_s12, 3 }
   0x4   : > { %p138_p2 = pnand %p2552_p0, %p137_p1 }
   0x6   : > { %141 = sbr.rel (%p138_p2) target bundleno = 617 (0x269), region = 32 }
   0xd   : > { %vm222_vm0 = vcmask 60416   ;;  %vm224_vm1 = vcmask 57344   ;;  %p3027_p3 = scmp.lt.s32.totalorder %s2548_s13, 1  ;;  %v2994_v0 = vmov 0   ;;  %v3059_v1 = vld [vmem:[%s3918_s1] ss:$0 sm:$0xff] }
   0xe   : > { %223 = vst.msk [vmem:[#allocation2] sm:$0xf] %vm222_vm0, %v2994_v0  ;;  %226 = vst.msk [vmem:[#allocation2 + $0x8] sm:$0xf] %vm222_vm0, %v2994_v0  ;;  %v3071_v12 = vld [vmem:[%s3918_s1 + $0x1] ss:$0 sm:$0xff] }
   0xf   : > { %225 = vst.msk [vmem:[#allocation2 + $0x4] sm:$0x1] %vm224_vm1, %v2994_v0  ;;  %227 = vst.msk [vmem:[#allocation2 + $0xc] sm:$0x1] %vm224_vm1, %v2994_v0  ;;  %s3958_s13 = smov (!%p3027_p3, %s2548_s13), 1  ;;  %s2995_s23 = smov 8  }
  0x10   : > { %228 = vst.msk [vmem:[#allocation2 + $0x10] sm:$0xf] %vm222_vm0, %v2994_v0  ;;  %230 = vst.msk [vmem:[#allocation2 + $0x18] sm:$0xf] %vm222_vm0, %v2994_v0  ;;  %s2741_s15 = sshll.u32 %s3958_s13, 5  ;;  %s2996_s24 = smov 16  }
  0x11   : > { %229 = vst.msk [vmem:[#allocation2 + $0x14] sm:$0x1] %vm224_vm1, %v2994_v0  ;;  %231 = vst.msk [vmem:[#allocation2 + $0x1c] sm:$0x1] %vm224_vm1, %v2994_v0  ;;  %s165_s20 = scalar_lea.vmem %s3917_s0, %s2741_s15  ;;  %vm358_vm2 = vsmask.f32 7938 }
  0x12   : > { %232 = vst.msk [vmem:[#allocation2 + $0x20] sm:$0xf] %vm222_vm0, %v2994_v0  ;;  %234 = vst.msk [vmem:[#allocation2 + $0x28] sm:$0xf] %vm222_vm0, %v2994_v0  ;;  %v2752_v2 = vld [vmem:[%s165_s20] sm:$0xff]   ;;  %v2767_v3 = vld [vmem:[%s165_s20 + $0x8] sm:$0xff]  }
  0x13   : > { %233 = vst.msk [vmem:[#allocation2 + $0x24] sm:$0x1] %vm224_vm1, %v2994_v0  ;;  %235 = vst.msk [vmem:[#allocation2 + $0x2c] sm:$0x1] %vm224_vm1, %v2994_v0  ;;  %v2768_v4 = vld [vmem:[%s165_s20 + $0x10] sm:$0xff]   ;;  %v2754_v5 = vunpack.c.h.bf16 %v2752_v2  ;;  %v2753_v6 = vunpack.c.l.bf16 %v2752_v2  ;;  %v2758_v7 = vunpack.c.h.bf16 %v2767_v3  ;;  %v2757_v8 = vunpack.c.l.bf16 %v2767_v3  ;;  %v3064_v9 = vld [vmem:[%s165_s20 + $0x18] sm:$0xff]  }
  0x14   : > { %236 = vst.msk [vmem:[#allocation2 + $0x30] sm:$0xf] %vm222_vm0, %v2994_v0  ;;  %238 = vst.msk [vmem:[#allocation2 + $0x38] sm:$0xf] %vm222_vm0, %v2994_v0  ;;  %v2762_v13 = vunpack.c.h.bf16 %v2768_v4  ;;  %v2761_v14 = vunpack.c.l.bf16 %v2768_v4  ;;  %v2766_v15 = vunpack.c.h.bf16 %v3064_v9  ;;  %v2765_v16 = vunpack.c.l.bf16 %v3064_v9  ;;  %s2997_s25 = smov 24   ;;  %s2998_s17 = smov 3  }
  0x15   : > { %237 = vst.msk [vmem:[#allocation2 + $0x34] sm:$0x1] %vm224_vm1, %v2994_v0  ;;  %239 = vst.msk [vmem:[#allocation2 + $0x3c] sm:$0x1] %vm224_vm1, %v2994_v0  ;;  %v864_v11 = vld [vmem:[#allocation2] sm:$0xe]  ;;  %v195_v18 = vmul.f32 %v2754_v5, %v3059_v1  ;;  %v194_v19 = vmul.f32 %v2753_v6, %v3059_v1  ;;  %v197_v20 = vmul.f32 %v2758_v7, %v3059_v1 }
  0x16   : > { %240 = vst.msk [vmem:[#allocation2 + $0x40] sm:$0xf] %vm222_vm0, %v2994_v0  ;;  %242 = vst.msk [vmem:[#allocation2 + $0x48] sm:$0xf] %vm222_vm0, %v2994_v0  ;;  %v3066_v10 = vld [vmem:[#allocation2 + $0x4] sm:$0x1]  ;;  %v196_v21 = vmul.f32 %v2757_v8, %v3059_v1  ;;  %v199_v22 = vmul.f32 %v2762_v13, %v3059_v1  ;;  %v198_v23 = vmul.f32 %v2761_v14, %v3059_v1 }
  0x17   : > { %241 = vst.msk [vmem:[#allocation2 + $0x44] sm:$0x1] %vm224_vm1, %v2994_v0  ;;  %243 = vst.msk [vmem:[#allocation2 + $0x4c] sm:$0x1] %vm224_vm1, %v2994_v0  ;;  %v2601_v17 = vcombine.low %v864_v11, %v3066_v10  ;;  %vm364_vm3 = vsmask.f32 256  ;;  %v201_v24 = vmul.f32 %v2766_v15, %v3059_v1  ;;  %v207_v27 = vadd.f32 %v3071_v12, %v195_v18 }
  0x18   : > { %v206_v28 = vadd.f32 %v3071_v12, %v194_v19  ;;  %v209_v29 = vadd.f32 %v3071_v12, %v197_v20  ;;  %v208_v30 = vadd.f32 %v3071_v12, %v196_v21  ;;  %v211_v31 = vadd.f32 %v3071_v12, %v199_v22  ;;  %v369_v53 = vld [vmem:[#allocation2 + $0x10] sm:$0xf]  ;;  %v372_v54 = vld [vmem:[#allocation2 + $0x14] sm:$0x1]  ;;  %v360_v55 = vld [vmem:[#allocation2 + $0x8] sm:$0xf] }
  0x19   : > { %v905_v25 = vshrl.u32 %v2601_v17, 16  ;;  %v907_v26 = vshll.u32 %v2601_v17, 16  ;;  %v210_v32 = vadd.f32 %v3071_v12, %v198_v23  ;;  %v215_v34 = vmax.f32 %v207_v27, 0.0  ;;  %v366_v56 = vld [vmem:[#allocation2 + $0xc] sm:$0x1]  ;;  %vm3100_vm4 = vmand %vm222_vm0, %vm358_vm2  ;;  %s2742_s18 = sshll.u32 %s3958_s13, 7 }
  0x1a   : > { %v214_v35 = vmax.f32 %v206_v28, 0.0  ;;  %v3090_v36 = vadd.f32 %v3071_v12, %v201_v24  ;;  %v217_v37 = vmax.f32 %v209_v29, 0.0  ;;  %v216_v38 = vmax.f32 %v208_v30, 0.0  ;;  %v381_v0 = vld [vmem:[#allocation2 + $0x20] sm:$0xf]  ;;  %vm3108_vm5 = vmand %vm224_vm1, %vm364_vm3  ;;  %s3868_s21 = scalar_lea.vmem %s3920_s3, %s2742_s18 }
  0x1b   : > { %v909_v33 = vrot.slane %v907_v26, 1  ;;  %v219_v39 = vmax.f32 %v211_v31, 0.0  ;;  %v218_v40 = vmax.f32 %v210_v32, 0.0  ;;  %v2744_v42 = vpack.c.bf16 %v215_v34, %v215_v34  ;;  %v384_v2 = vld [vmem:[#allocation2 + $0x24] sm:$0x1] }
  0x1c   : > { %v2743_v43 = vpack.c.bf16 %v214_v35, %v214_v35  ;;  %v221_v44 = vmax.f32 %v3090_v36, 0.0  ;;  %v2746_v45 = vpack.c.bf16 %v217_v37, %v217_v37  ;;  %v2745_v46 = vpack.c.bf16 %v216_v38, %v216_v38  ;;  %v375_v3 = vld [vmem:[#allocation2 + $0x18] sm:$0xf]  ;;  %v378_v4 = vld [vmem:[#allocation2 + $0x1c] sm:$0x1] }
  0x1d   : > { %v910_v41 = vor.u32 %v909_v33, %v905_v25  ;;  %v3093_v47 = vpack.c.bf16 %v219_v39, %v219_v39  ;;  %v3095_v48 = vpack.c.bf16 %v218_v40, %v218_v40  ;;  %v285_v49 = vshrl.u32 %v2744_v42, 16  ;;  %v393_v33 = vld [vmem:[#allocation2 + $0x30] sm:$0xf]  ;;  %v396_v37 = vld [vmem:[#allocation2 + $0x34] sm:$0x1] }
  0x1e   : > { %v288_v50 = vshll.u32 %v2744_v42, 16  ;;  %v277_v51 = vshrl.u32 %v2743_v43, 16  ;;  %v280_v52 = vshll.u32 %v2743_v43, 16  ;;  %v301_v57 = vshrl.u32 %v2746_v45, 16  ;;  %v387_v38 = vld [vmem:[#allocation2 + $0x28] sm:$0xf] }
  0x1f   : > { %960 = vrot.lane.b32.xlu0 %v910_v41, %s2995_s23  ;;  %v304_v58 = vshll.u32 %v2746_v45, 16  ;;  %v293_v59 = vshrl.u32 %v2745_v46, 16  ;;  %v296_v60 = vshll.u32 %v2745_v46, 16  ;;  %v287_v61 = vrot.slane %v285_v49, 7  ;;  %v390_v39 = vld [vmem:[#allocation2 + $0x2c] sm:$0x1] }
  0x20   : > { %v279_v63 = vrot.slane %v277_v51, 7  ;;  %v317_v5 = vshrl.u32 %v3093_v47, 16  ;;  %v320_v6 = vshll.u32 %v3093_v47, 16  ;;  %v303_v8 = vrot.slane %v301_v57, 7  ;;  %v405_v51 = vld [vmem:[#allocation2 + $0x40] sm:$0xf] }
  0x21   : > { %v295_v11 = vrot.slane %v293_v59, 7  ;;  %v309_v13 = vshrl.u32 %v3095_v48, 16  ;;  %v312_v14 = vshll.u32 %v3095_v48, 16  ;;  %v290_v15 = vor.u32 %v288_v50, %v287_v61 }
  0x22   : > { %v291_v17 = vrot.slane %v287_v61, 4  ;;  %v282_v18 = vor.u32 %v280_v52, %v279_v63  ;;  %v283_v19 = vrot.slane %v279_v63, 4  ;;  %v306_v20 = vor.u32 %v304_v58, %v303_v8 }
  0x23   : > { %v307_v21 = vrot.slane %v303_v8, 4  ;;  %v298_v22 = vor.u32 %v296_v60, %v295_v11  ;;  %v299_v23 = vrot.slane %v295_v11, 4  ;;  %v370_v24 = vsel %vm3100_vm4, %v290_v15, %v369_v53 }
  0x24   : > { %v373_v25 = vsel %vm3108_vm5, %v291_v17, %v372_v54  ;;  %v361_v26 = vsel %vm3100_vm4, %v282_v18, %v360_v55  ;;  %v367_v27 = vsel %vm3108_vm5, %v283_v19, %v366_v56  ;;  %371 = vst [vmem:[#allocation2 + $0x10] sm:$0xf] %v370_v24  ;;  %v382_v28 = vsel %vm3100_vm4, %v306_v20, %v381_v0 }
  0x25   : > { %374 = vst [vmem:[#allocation2 + $0x14] sm:$0x1] %v373_v25  ;;  %362 = vst [vmem:[#allocation2 + $0x8] sm:$0xf] %v361_v26  ;;  %v385_v29 = vsel %vm3108_vm5, %v307_v21, %v384_v2  ;;  %v376_v30 = vsel %vm3100_vm4, %v298_v22, %v375_v3  ;;  %v379_v31 = vsel %vm3108_vm5, %v299_v23, %v378_v4  ;;  %v319_v32 = vrot.slane %v317_v5, 7 }
  0x26   : > { %368 = vst [vmem:[#allocation2 + $0xc] sm:$0x1] %v367_v27  ;;  %383 = vst [vmem:[#allocation2 + $0x20] sm:$0xf] %v382_v28  ;;  %v311_v34 = vrot.slane %v309_v13, 7  ;;  %v2750_v35 = vpack.c.bf16 %v221_v44, %v221_v44  ;;  %v200_v36 = vmul.f32 %v2765_v16, %v3059_v1  ;;  %vm691_vm6 = vcmask 64512  }
  0x27   : > { %386 = vst [vmem:[#allocation2 + $0x24] sm:$0x1] %v385_v29  ;;  %377 = vst [vmem:[#allocation2 + $0x18] sm:$0xf] %v376_v30  ;;  %v322_v40 = vor.u32 %v320_v6, %v319_v32  ;;  %v323_v41 = vrot.slane %v319_v32, 4  ;;  %vm716_vm7 = vcmask 130048  }
  0x28   : > { %380 = vst [vmem:[#allocation2 + $0x1c] sm:$0x1] %v379_v31  ;;  %v314_v42 = vor.u32 %v312_v14, %v311_v34  ;;  %v315_v43 = vrot.slane %v311_v34, 4  ;;  %v333_v45 = vshrl.u32 %v2750_v35, 16  ;;  %v336_v46 = vshll.u32 %v2750_v35, 16 }
  0x29   : > { %v212_v47 = vadd.f32 %v3071_v12, %v200_v36  ;;  %v394_v48 = vsel %vm3100_vm4, %v322_v40, %v393_v33  ;;  %v397_v44 = vsel %vm3108_vm5, %v323_v41, %v396_v37  ;;  %v408_v2 = vld [vmem:[#allocation2 + $0x44] sm:$0x1]  ;;  %v399_v21 = vld [vmem:[#allocation2 + $0x38] sm:$0xf]  ;;  %v402_v22 = vld [vmem:[#allocation2 + $0x3c] sm:$0x1] }
  0x2a   : > { %v388_v1 = vsel %vm3100_vm4, %v314_v42, %v387_v38  ;;  %v391_v9 = vsel %vm3108_vm5, %v315_v43, %v390_v39  ;;  %395 = vst [vmem:[#allocation2 + $0x30] sm:$0xf] %v394_v48  ;;  %398 = vst [vmem:[#allocation2 + $0x34] sm:$0x1] %v397_v44  ;;  %v335_v16 = vrot.slane %v333_v45, 7  ;;  %vm733_vm8 = vcmask 195584  }
  0x2b   : > { %389 = vst [vmem:[#allocation2 + $0x28] sm:$0xf] %v388_v1  ;;  %392 = vst [vmem:[#allocation2 + $0x2c] sm:$0x1] %v391_v9  ;;  %v220_v49 = vmax.f32 %v212_v47, 0.0  ;;  %vm786_vm11 = vcmask 261120  }
  0x2c   : > { %v3142_v50 = vld [vmem:[#allocation2 + $0x10] sm:$0xf]  ;;  %v436_v12 = vld [vmem:[#allocation2 + $0x14] sm:$0x1]  ;;  %v3147_v53 = vld [vmem:[#allocation2 + $0x8] sm:$0xf]  ;;  %v338_v55 = vor.u32 %v336_v46, %v335_v16 }
  0x2d   : > { %v3145_v52 = vcombine.low %v3142_v50, %v436_v12  ;;  %v435_v54 = vld [vmem:[#allocation2 + $0xc] sm:$0x1]  ;;  %v2749_v56 = vpack.c.bf16 %v220_v49, %v220_v49  ;;  %v3152_v58 = vld [vmem:[#allocation2 + $0x20] sm:$0xf]  ;;  %v339_v4 = vrot.slane %v335_v16, 4  ;;  %vm1429_vm13 = vcmask 23552  }
  0x2e   : > { %v3150_v57 = vcombine.low %v3147_v53, %v435_v54  ;;  %v438_v59 = vld [vmem:[#allocation2 + $0x24] sm:$0x1]  ;;  %v3159_v61 = vld [vmem:[#allocation2 + $0x18] sm:$0xf]  ;;  %v406_v0 = vsel %vm3100_vm4, %v338_v55, %v405_v51  ;;  %v3168_v6 = vld [vmem:[#allocation2 + $0x14] sm:$0x1] }
  0x2f   : > { %978 = vrot.lane.b32.xlu1 %v3145_v52, %s2996_s24  ;;  %v3157_v60 = vcombine.low %v3152_v58, %v438_v59  ;;  %v437_v63 = vld [vmem:[#allocation2 + $0x1c] sm:$0x1]  ;;  %407 = vst [vmem:[#allocation2 + $0x40] sm:$0xf] %v406_v0  ;;  %v325_v5 = vshrl.u32 %v2749_v56, 16  ;;  %v409_v15 = vsel %vm3108_vm5, %v339_v4, %v408_v2  ;;  %v328_v17 = vshll.u32 %v2749_v56, 16 }
  0x30   : > { %976 = vrot.lane.b32.xlu0 %v3150_v57, %s2996_s24  ;;  %v3166_v3 = vcombine.low %v3159_v61, %v437_v63  ;;  %v866_v8 = vld [vmem:[#allocation2 + $0x10] sm:$0xe]  ;;  %410 = vst [vmem:[#allocation2 + $0x44] sm:$0x1] %v409_v15  ;;  %v3193_v25 = vld [vmem:[#allocation2 + $0xc] sm:$0x1] }
  0x31   : > { %v2603_v11 = vcombine.low %v866_v8, %v3168_v6  ;;  %v3171_v13 = vld [vmem:[#allocation2 + $0x30] sm:$0xf]  ;;  %v3173_v14 = vld [vmem:[#allocation2 + $0x34] sm:$0x1]  ;;  %v327_v24 = vrot.slane %v325_v5, 7  ;;  %vm1446_vm14 = vcmask 48128  }
  0x32   : > { %v3181_v18 = vcombine.low %v3171_v13, %v3173_v14  ;;  %v3183_v19 = vld [vmem:[#allocation2 + $0x28] sm:$0xf]  ;;  %v3185_v20 = vld [vmem:[#allocation2 + $0x2c] sm:$0x1]  ;;  %v873_v27 = vld [vmem:[#allocation2 + $0x10] sm:$0xe] }
  0x33   : > { %982 = vrot.lane.b32.xlu1 %v3157_v60, %s2996_s24  ;;  %v3191_v23 = vcombine.low %v3183_v19, %v3185_v20  ;;  %v865_v26 = vld [vmem:[#allocation2 + $0x8] sm:$0xe]  ;;  %v921_v28 = vshll.u32 %v2603_v11, 16  ;;  %v3195_v29 = vld [vmem:[#allocation2 + $0x1c] sm:$0x1]  ;;  %v330_v30 = vor.u32 %v328_v17, %v327_v24  ;;  %v331_v31 = vrot.slane %v327_v24, 4 }
  0x34   : > { %980 = vrot.lane.b32.xlu0 %v3166_v3, %s2996_s24  ;;  %v867_v32 = vld [vmem:[#allocation2 + $0x18] sm:$0xe]  ;;  %v872_v33 = vld [vmem:[#allocation2 + $0x8] sm:$0xe]  ;;  %v2602_v34 = vcombine.low %v865_v26, %v3193_v25  ;;  %v2610_v36 = vcombine.low %v873_v27, %v436_v12  ;;  %v919_v40 = vshrl.u32 %v2603_v11, 16 }
  0x35   : > { %v2604_v35 = vcombine.low %v867_v32, %v3195_v29  ;;  %v400_v38 = vsel %vm3100_vm4, %v330_v30, %v399_v21  ;;  %v403_v39 = vsel %vm3108_vm5, %v331_v31, %v402_v22  ;;  %v923_v41 = vrot.slane %v921_v28, 1  ;;  %v875_v45 = vld [vmem:[#allocation2 + $0x20] sm:$0xe]  ;;  %v874_v44 = vld [vmem:[#allocation2 + $0x18] sm:$0xe] }
  0x36   : > { %v3203_v37 = vld [vmem:[#allocation2 + $0x40] sm:$0xf]  ;;  %401 = vst [vmem:[#allocation2 + $0x38] sm:$0xf] %v400_v38  ;;  %404 = vst [vmem:[#allocation2 + $0x3c] sm:$0x1] %v403_v39  ;;  %v2609_v43 = vcombine.low %v872_v33, %v435_v54  ;;  %v2612_v1 = vcombine.low %v875_v45, %v438_v59  ;;  %v2611_v54 = vcombine.low %v874_v44, %v437_v63 }
  0x37   : > { %986 = vrot.lane.b32.xlu1 %v3181_v18, %s2996_s24  ;;  %v928_v42 = vshll.u32 %v2604_v35, 16  ;;  %v3209_v46 = vld [vmem:[#allocation2 + $0x44] sm:$0x1]  ;;  %v914_v48 = vshll.u32 %v2602_v34, 16  ;;  %v1026_v62 = vshll.u32 %v2610_v36, 16  ;;  %v924_v7 = vor.u32 %v923_v41, %v919_v40 }
  0x38   : > { %984 = vrot.lane.b32.xlu0 %v3191_v23, %s2996_s24  ;;  %v3213_v47 = vcombine.low %v3203_v37, %v3209_v46  ;;  %v926_v9 = vshrl.u32 %v2604_v35, 16  ;;  %v1019_v49 = vshll.u32 %v2609_v43, 16  ;;  %v3217_v12 = vld [vmem:[#allocation2 + $0x2c] sm:$0x1]  ;;  %v869_v51 = vld [vmem:[#allocation2 + $0x28] sm:$0xe] }
  0x39   : > { %v930_v16 = vrot.slane %v928_v42, 1  ;;  %v912_v55 = vshrl.u32 %v2602_v34, 16  ;;  %v916_v56 = vrot.slane %v914_v48, 1  ;;  %v3219_v0 = vld [vmem:[#allocation2 + $0x24] sm:$0x1]  ;;  %v1024_v59 = vshrl.u32 %v2610_v36, 16 }
  0x3a   : > { %v868_v2 = vld [vmem:[#allocation2 + $0x20] sm:$0xe]  ;;  %v1028_v8 = vrot.slane %v1026_v62, 1  ;;  %v1040_v17 = vshll.u32 %v2612_v1, 16  ;;  %v2606_v21 = vcombine.low %v869_v51, %v3217_v12  ;;  %v1017_v63 = vshrl.u32 %v2609_v43, 16 }
  0x3b   : > { %990 = vrot.lane.b32.xlu1 %v3213_v47, %s2996_s24  ;;  %v931_v15 = vor.u32 %v930_v16, %v926_v9  ;;  %v1021_v22 = vrot.slane %v1019_v49, 1  ;;  %v917_v27 = vor.u32 %v916_v56, %v912_v55  ;;  %v1033_v28 = vshll.u32 %v2611_v54, 16  ;;  %v3233_v32 = vld [vmem:[#allocation2 + $0x34] sm:$0x1]  ;;  %v870_v33 = vld [vmem:[#allocation2 + $0x30] sm:$0xe] }
  0x3c   : > { %v2605_v30 = vcombine.low %v868_v2, %v3219_v0  ;;  %v1038_v31 = vshrl.u32 %v2612_v1, 16  ;;  %v877_v34 = vld [vmem:[#allocation2 + $0x30] sm:$0xe]  ;;  %v1029_v35 = vor.u32 %v1028_v8, %v1024_v59  ;;  %v1042_v36 = vrot.slane %v1040_v17, 1  ;;  %v876_v41 = vld [vmem:[#allocation2 + $0x28] sm:$0xe] }
  0x3d   : > { %v3221_v4 = vld [vmem:[#allocation2 + $0x38] sm:$0xf]  ;;  %v441_v5 = vld [vmem:[#allocation2 + $0x3c] sm:$0x1]  ;;  %v942_v38 = vshll.u32 %v2606_v21, 16  ;;  %v1022_v40 = vor.u32 %v1021_v22, %v1017_v63  ;;  %v1031_v42 = vshrl.u32 %v2611_v54, 16  ;;  %v2607_v48 = vcombine.low %v870_v33, %v3233_v32 }
  0x3e   : > { %v3224_v11 = vcombine.low %v3221_v4, %v441_v5  ;;  %v3228_v24 = vld [vmem:[#allocation2 + $0x3c] sm:$0x1]  ;;  %v871_v26 = vld [vmem:[#allocation2 + $0x38] sm:$0xe]  ;;  %v1035_v43 = vrot.slane %v1033_v28, 1  ;;  %v935_v45 = vshll.u32 %v2605_v30, 16  ;;  %v2614_v44 = vcombine.low %v877_v34, %v3173_v14 }
  0x3f   : > { %964 = vrot.lane.b32.xlu1 %v924_v7, %s2995_s23  ;;  %v2608_v39 = vcombine.low %v871_v26, %v3228_v24  ;;  %v879_v62 = vld [vmem:[#allocation2 + $0x40] sm:$0xe]  ;;  %v1043_v1 = vor.u32 %v1042_v36, %v1038_v31  ;;  %v940_v7 = vshrl.u32 %v2606_v21, 16  ;;  %v944_v9 = vrot.slane %v942_v38, 1  ;;  %v878_v51 = vld [vmem:[#allocation2 + $0x38] sm:$0xe] }
  0x40   : > { %988 = vrot.lane.b32.xlu0 %v3224_v11, %s2996_s24  ;;  %v2613_v49 = vcombine.low %v876_v41, %v3185_v20  ;;  %v1036_v54 = vor.u32 %v1035_v43, %v1031_v42  ;;  %v933_v55 = vshrl.u32 %v2605_v30, 16  ;;  %v937_v56 = vrot.slane %v935_v45, 1  ;;  %v2920_v14 = vld [vmem:[%s3919_s2 + $0x10] sm:$0xff]   ;;  %v3250_v26 = vld [vmem:[#allocation2 + $0xc] sm:$0x1]  ;;  %v2923_v34 = vld [vmem:[%s3919_s2 + $0x18] sm:$0xff]  }
  0x41   : > { %v956_v16 = vshll.u32 %v2608_v39, 16  ;;  %v949_v2 = vshll.u32 %v2607_v48, 16  ;;  %v2616_v59 = vcombine.low %v879_v62, %v3209_v46  ;;  %v3247_v8 = vld [vmem:[#allocation2 + $0x14] sm:$0x1]  ;;  %v954_v17 = vshrl.u32 %v2608_v39, 16  ;;  %2806 = vmatprep.subr.bf16.mxu1 %v2920_v14 }
  0x42   : > { %v1054_v21 = vshll.u32 %v2614_v44, 16  ;;  %v1907_v63 = vld [vmem:[#allocation2 + $0x10] sm:$0xe]  ;;  %v2615_v22 = vcombine.low %v878_v51, %v441_v5  ;;  %2807 = vmatpush3.bf16.msra.mxu1 %v2920_v14  ;;  %v947_v28 = vshrl.u32 %v2607_v48, 16  ;;  %v1047_v46 = vshll.u32 %v2613_v49, 16 }
  0x43   : > { %966 = vrot.lane.b32.xlu1 %v931_v15, %s2995_s23  ;;  %v945_v15 = vor.u32 %v944_v9, %v940_v7  ;;  %v958_v20 = vrot.slane %v956_v16, 1  ;;  %v951_v30 = vrot.slane %v949_v2, 1  ;;  %v1906_v31 = vld [vmem:[#allocation2 + $0x8] sm:$0xe]  ;;  %v2686_v33 = vcombine.low %v1907_v63, %v3247_v8  ;;  %v1909_v41 = vld [vmem:[#allocation2 + $0x20] sm:$0xe]  ;;  %2808 = vmatprep.subr.bf16.mxu1 %v2923_v34 }
  0x44   : > { %962 = vrot.lane.b32.xlu0 %v917_v27, %s2995_s23  ;;  %v938_v27 = vor.u32 %v937_v56, %v933_v55  ;;  %v1052_v5 = vshrl.u32 %v2614_v44, 16  ;;  %v1056_v36 = vrot.slane %v1054_v21, 1  ;;  %v1068_v38 = vshll.u32 %v2616_v59, 16  ;;  %v1908_v7 = vld [vmem:[#allocation2 + $0x18] sm:$0xe] }
  0x45   : > { %v2685_v39 = vcombine.low %v1906_v31, %v3250_v26  ;;  %v952_v42 = vor.u32 %v951_v30, %v947_v28  ;;  %v1045_v43 = vshrl.u32 %v2613_v49, 16  ;;  %v1049_v45 = vrot.slane %v1047_v46, 1  ;;  %v1915_v46 = vld [vmem:[#allocation2 + $0x18] sm:$0xe] }
  0x46   : > { %v1061_v48 = vshll.u32 %v2615_v22, 16  ;;  %2809 = vmatpush3.bf16.msra.mxu1 %v2923_v34  ;;  %v1066_v62 = vshrl.u32 %v2616_v59, 16  ;;  %v1057_v44 = vor.u32 %v1056_v36, %v1052_v5  ;;  %v1070_v9 = vrot.slane %v1068_v38, 1  ;;  %v1481_v5 = vld [vmem:[#allocation2 + $0x1c] sm:$0x1] }
  0x47   : > { %1074 = vrot.lane.b32.xlu1 %v1029_v35, %s2997_s25  ;;  %v959_v35 = vor.u32 %v958_v20, %v954_v17  ;;  %v1956_v16 = vshll.u32 %v2686_v33, 16  ;;  %v1050_v55 = vor.u32 %v1049_v45, %v1045_v43  ;;  %v1949_v49 = vshll.u32 %v2685_v39, 16 }
  0x48   : > { %1072 = vrot.lane.b32.xlu0 %v1022_v40, %s2997_s25  ;;  %v3259_v40 = vld [vmem:[#allocation2 + $0x24] sm:$0x1]  ;;  %v1063_v56 = vrot.slane %v1061_v48, 1  ;;  %v1071_v14 = vor.u32 %v1070_v9, %v1066_v62  ;;  %v1954_v59 = vshrl.u32 %v2686_v33, 16  ;;  %v1947_v21 = vshrl.u32 %v2685_v39, 16 }
  0x49   : > { %v2688_v51 = vcombine.low %v1909_v41, %v3259_v40  ;;  %v1951_v63 = vrot.slane %v1949_v49, 1  ;;  %v1914_v33 = vld [vmem:[#allocation2 + $0x10] sm:$0xe]  ;;  %v2694_v38 = vcombine.low %v1915_v46, %v1481_v5  ;;  %v1480_v39 = vld [vmem:[#allocation2 + $0x14] sm:$0x1] }
  0x4a   : > { %v3273_v41 = vld [vmem:[#allocation2 + $0x18] sm:$0xf]  ;;  %v2693_v45 = vcombine.low %v1914_v33, %v1480_v39  ;;  %v3276_v48 = vld [vmem:[#allocation2 + $0x10] sm:$0xf]  ;;  %v1916_v62 = vld [vmem:[#allocation2 + $0x20] sm:$0xe] }
  0x4b   : > { %1078 = vrot.lane.b32.xlu1 %v1043_v1, %s2997_s25  ;;  %v3262_v1 = vld [vmem:[#allocation2 + $0x1c] sm:$0x1]  ;;  %v1970_v17 = vshll.u32 %v2688_v51, 16  ;;  %v1968_v28 = vshrl.u32 %v2688_v51, 16  ;;  %v1952_v31 = vor.u32 %v1951_v63, %v1947_v21  ;;  %v3282_v9 = vld [vmem:[#allocation2 + $0x28] sm:$0xf]  ;;  %v3288_v49 = vcombine.low %v3276_v48, %v1480_v39 }
  0x4c   : > { %1076 = vrot.lane.b32.xlu0 %v1036_v54, %s2997_s25  ;;  %v1059_v54 = vshrl.u32 %v2615_v22, 16  ;;  %v2687_v2 = vcombine.low %v1908_v7, %v3262_v1  ;;  %v1483_v7 = vld [vmem:[#allocation2 + $0x2c] sm:$0x1]  ;;  %v2068_v51 = vshll.u32 %v2694_v38, 16  ;;  %v2066_v21 = vshrl.u32 %v2694_v38, 16 }
  0x4d   : > { %v1972_v30 = vrot.slane %v1970_v17, 1  ;;  %v3295_v17 = vld [vmem:[#allocation2 + $0x2c] sm:$0x1]  ;;  %v1913_v46 = vld [vmem:[#allocation2 + $0x40] sm:$0xe] }
  0x4e   : > { %v1064_v20 = vor.u32 %v1063_v56, %v1059_v54  ;;  %v1961_v34 = vshrl.u32 %v2687_v2, 16  ;;  %v1482_v54 = vld [vmem:[#allocation2 + $0x24] sm:$0x1]  ;;  %v1911_v56 = vld [vmem:[#allocation2 + $0x30] sm:$0xe]  ;;  %3934 = vst [vmem:[#allocation3_spill] sm:$0xff] %v3295_v17 }
  0x4f   : > { %970 = vrot.lane.b32.xlu1 %v945_v15, %s2995_s23  ;;  %v1958_v15 = vrot.slane %v1956_v16, 1  ;;  %v1973_v36 = vor.u32 %v1972_v30, %v1968_v28  ;;  %v2070_v63 = vrot.slane %v2068_v51, 1  ;;  %v3303_v30 = vld [vmem:[#allocation2 + $0x44] sm:$0x1]  ;;  %v1912_v38 = vld [vmem:[#allocation2 + $0x38] sm:$0xe] }
  0x50   : > { %968 = vrot.lane.b32.xlu0 %v938_v27, %s2995_s23  ;;  %v1963_v27 = vshll.u32 %v2687_v2, 16  ;;  %v3290_v2 = vld [vmem:[#allocation2 + $0x20] sm:$0xf]  ;;  %vm1176_vm9 = vsmask.f32 3328 }
  0x51   : > { %v1959_v22 = vor.u32 %v1958_v15, %v1954_v59  ;;  %v2061_v59 = vshll.u32 %v2693_v45, 16  ;;  %v3293_v15 = vcombine.low %v3282_v9, %v1483_v7  ;;  %v3301_v28 = vcombine.low %v3290_v2, %v1482_v54 }
  0x52   : > { %v2071_v39 = vor.u32 %v2070_v63, %v2066_v21  ;;  %vm1177_vm10 = vsmask.f32 7440 }
  0x53   : > { %974 = vrot.lane.b32.xlu1 %v959_v35, %s2995_s23  ;;  %v1965_v35 = vrot.slane %v1963_v27, 1  ;;  %vm3614_vm12 = vmor %vm1176_vm9, %vm1177_vm10 }
  0x54   : > { %972 = vrot.lane.b32.xlu0 %v952_v42, %s2995_s23  ;;  %v1917_v42 = vld [vmem:[#allocation2 + $0x28] sm:$0xe] }
  0x55   : > { %v1966_v43 = vor.u32 %v1965_v35, %v1961_v34  ;;  %v2696_v16 = vcombine.low %v1917_v42, %v1483_v7  ;;  %v2063_v34 = vrot.slane %v2061_v59, 1 }
  0x57   : > { %1082 = vrot.lane.b32.xlu1 %v1057_v44, %s2997_s25  ;;  %v3280_v44 = vcombine.low %v3273_v41, %v1481_v5  ;;  %v2082_v27 = vshll.u32 %v2696_v16, 16  ;;  %v2080_v5 = vshrl.u32 %v2696_v16, 16 }
  0x58   : > { %1080 = vrot.lane.b32.xlu0 %v1050_v55, %s2997_s25  ;;  %v3284_v55 = vld [vmem:[#allocation2 + $0x34] sm:$0x1] }
  0x59   : > { %v2084_v42 = vrot.slane %v2082_v27, 1 }
  0x5b   : > { %1086 = vrot.lane.b32.xlu1 %v1071_v14, %s2997_s25  ;;  %v2695_v14 = vcombine.low %v1916_v62, %v1482_v54  ;;  %v2692_v62 = vcombine.low %v1913_v46, %v3303_v30  ;;  %v3321_v46 = vld [vmem:[%s3919_s2 + $0x30] sm:$0xff]  }
  0x5c   : > { %1084 = vrot.lane.b32.xlu0 %v1064_v20, %s2997_s25  ;;  %v1910_v20 = vld [vmem:[#allocation2 + $0x28] sm:$0xe]  ;;  %2830 = vmatprep.subr.bf16.mxu1 %v3321_v46 }
  0x5d   : > { %v2075_v35 = vshll.u32 %v2695_v14, 16  ;;  %v2689_v33 = vcombine.low %v1910_v20, %v3295_v17  ;;  %v2073_v7 = vshrl.u32 %v2695_v14, 16  ;;  %v1998_v17 = vshll.u32 %v2692_v62, 16 }
  0x5f   : > { %2004 = vrot.lane.b32.xlu1 %v1959_v22, %s2995_s23  ;;  %v2690_v22 = vcombine.low %v1911_v56, %v3284_v55  ;;  %v2077_v51 = vrot.slane %v2075_v35, 1  ;;  %v1977_v54 = vshll.u32 %v2689_v33, 16  ;;  %v2085_v56 = vor.u32 %v2084_v42, %v2080_v5  ;;  %v1919_v5 = vld [vmem:[#allocation2 + $0x38] sm:$0xe]  ;;  %v1485_v42 = vld [vmem:[#allocation2 + $0x3c] sm:$0x1] }
  0x60   : > { %2002 = vrot.lane.b32.xlu0 %v1952_v31, %s2995_s23  ;;  %v2059_v31 = vshrl.u32 %v2693_v45, 16  ;;  %v1975_v63 = vshrl.u32 %v2689_v33, 16  ;;  %v2000_v35 = vrot.slane %v1998_v17, 1 }
  0x61   : > { %v1982_v59 = vshrl.u32 %v2690_v22, 16  ;;  %v2078_v21 = vor.u32 %v2077_v51, %v2073_v7  ;;  %v1979_v27 = vrot.slane %v1977_v54, 1  ;;  %v2698_v7 = vcombine.low %v1919_v5, %v1485_v42  ;;  %v3327_v51 = vld [vmem:[#allocation2 + $0x38] sm:$0xf]  ;;  %v1921_v54 = vld [vmem:[#allocation2 + $0x48] sm:$0xe] }
  0x62   : > { %v2064_v45 = vor.u32 %v2063_v34, %v2059_v31  ;;  %v1996_v34 = vshrl.u32 %v2692_v62, 16  ;;  %3935 = vst [vmem:[#allocation4_spill] sm:$0xff] %v3327_v51 }
  0x63   : > { %2008 = vrot.lane.b32.xlu1 %v1973_v36, %s2995_s23  ;;  %v3308_v36 = vld [vmem:[#allocation2 + $0x3c] sm:$0x1] }
  0x64   : > { %2006 = vrot.lane.b32.xlu0 %v1966_v43, %s2995_s23  ;;  %v1984_v43 = vshll.u32 %v2690_v22, 16  ;;  %v2691_v16 = vcombine.low %v1912_v38, %v3308_v36  ;;  %v1980_v22 = vor.u32 %v1979_v27, %v1975_v63  ;;  %v2096_v27 = vshll.u32 %v2698_v7, 16 }
  0x66   : > { %v1986_v20 = vrot.slane %v1984_v43, 1  ;;  %v1991_v14 = vshll.u32 %v2691_v16, 16  ;;  %v1989_v38 = vshrl.u32 %v2691_v16, 16  ;;  %v2001_v43 = vor.u32 %v2000_v35, %v1996_v34 }
  0x67   : > { %2020 = vrot.lane.b32.xlu1 %v3280_v44, %s2996_s24  ;;  %v3334_v16 = vcombine.low %v3327_v51, %v1485_v42  ;;  %v2094_v42 = vshrl.u32 %v2698_v7, 16 }
  0x68   : > { %2018 = vrot.lane.b32.xlu0 %v3288_v49, %s2996_s24  ;;  %v1987_v31 = vor.u32 %v1986_v20, %v1982_v59  ;;  %v1993_v33 = vrot.slane %v1991_v14, 1  ;;  %v1920_v59 = vld [vmem:[#allocation2 + $0x40] sm:$0xe]  ;;  %v1487_v20 = vld [vmem:[#allocation2 + $0x4c] sm:$0x1] }
  0x69   : > { %v2700_v63 = vcombine.low %v1921_v54, %v1487_v20  ;;  %v412_v14 = vld [vmem:[#allocation2 + $0x8] sm:$0xf] }
  0x6a   : > { %v1994_v17 = vor.u32 %v1993_v33, %v1989_v38  ;;  %v3342_v38 = vld [vmem:[#allocation2 + $0x40] sm:$0xf] }
  0x6b   : > { %2024 = vrot.lane.b32.xlu1 %v3293_v15, %s2996_s24  ;;  %3938 = vst [vmem:[#allocation7_spill] sm:$0xff] %v3342_v38  ;;  %v2110_v54 = vshll.u32 %v2700_v63, 16 }
  0x6c   : > { %2022 = vrot.lane.b32.xlu0 %v3301_v28, %s2996_s24 }
  0x6f   : > { %2116 = vrot.lane.b32.xlu1 %v2071_v39, %s2997_s25  ;;  %v1918_v39 = vld [vmem:[#allocation2 + $0x30] sm:$0xe] }
  0x70   : > { %2114 = vrot.lane.b32.xlu0 %v2064_v45, %s2997_s25  ;;  %v1484_v45 = vld [vmem:[#allocation2 + $0x34] sm:$0x1] }
  0x71   : > { %v2697_v62 = vcombine.low %v1918_v39, %v1484_v45  ;;  %v3348_v39 = vcombine.low %v412_v14, %v3193_v25 }
  0x73   : > { %2120 = vrot.lane.b32.xlu1 %v2085_v56, %s2997_s25  ;;  %v3330_v56 = vld [vmem:[#allocation2 + $0x30] sm:$0xf]  ;;  %v2089_v5 = vshll.u32 %v2697_v62, 16 }
  0x74   : > { %2118 = vrot.lane.b32.xlu0 %v2078_v21, %s2997_s25  ;;  %3936 = vst [vmem:[#allocation5_spill] sm:$0xff] %v3330_v56  ;;  %v3336_v21 = vld [vmem:[#allocation2 + $0x48] sm:$0xf]  ;;  %v3340_v34 = vcombine.low %v3330_v56, %v1484_v45  ;;  %v2108_v56 = vshrl.u32 %v2700_v63, 16 }
  0x75   : > { %3937 = vst [vmem:[#allocation6_spill] sm:$0xff] %v3336_v21  ;;  %v3345_v33 = vcombine.low %v3336_v21, %v1487_v20  ;;  %v2087_v21 = vshrl.u32 %v2697_v62, 16  ;;  %v2091_v25 = vrot.slane %v2089_v5, 1 }
  0x77   : > { %2012 = vrot.lane.b32.xlu1 %v1987_v31, %s2995_s23  ;;  %v1486_v31 = vld [vmem:[#allocation2 + $0x44] sm:$0x1]  ;;  %v2092_v62 = vor.u32 %v2091_v25, %v2087_v21 }
  0x78   : > { %2010 = vrot.lane.b32.xlu0 %v1980_v22, %s2995_s23  ;;  %v2699_v35 = vcombine.low %v1920_v59, %v1486_v31  ;;  %v411_v22 = vld [vmem:[#allocation2] sm:$0xf]  ;;  %v413_v59 = vld [vmem:[#allocation2 + $0x10] sm:$0xf]  ;;  %v3358_v20 = vcombine.low %v3342_v38, %v1486_v31 }
  0x79   : > { %v3353_v45 = vcombine.low %v411_v22, %v3066_v10  ;;  %v2112_v10 = vrot.slane %v2110_v54, 1  ;;  %v3367_v22 = vcombine.low %v413_v59, %v3168_v6 }
  0x7a   : > { %v2103_v14 = vshll.u32 %v2699_v35, 16  ;;  %v2101_v31 = vshrl.u32 %v2699_v35, 16 }
  0x7b   : > { %2016 = vrot.lane.b32.xlu1 %v2001_v43, %s2995_s23  ;;  %v2098_v43 = vrot.slane %v2096_v27, 1  ;;  %v493_v27 = vshll.u32 %v3348_v39, 16  ;;  %v486_v63 = vshll.u32 %v3353_v45, 16  ;;  %v484_v54 = vshrl.u32 %v3353_v45, 16 }
  0x7c   : > { %2014 = vrot.lane.b32.xlu0 %v1994_v17, %s2995_s23  ;;  %v414_v17 = vld [vmem:[#allocation2 + $0x18] sm:$0xf]  ;;  %v2105_v5 = vrot.slane %v2103_v14, 1  ;;  %v500_v21 = vshll.u32 %v3367_v22, 16 }
  0x7d   : > { %v3361_v51 = vcombine.low %v414_v17, %v3195_v29  ;;  %v2099_v7 = vor.u32 %v2098_v43, %v2094_v42  ;;  %v2113_v29 = vor.u32 %v2112_v10, %v2108_v56  ;;  %v491_v17 = vshrl.u32 %v3348_v39, 16 }
  0x7e   : > { %v495_v42 = vrot.slane %v493_v27, 1  ;;  %v2106_v6 = vor.u32 %v2105_v5, %v2101_v31  ;;  %v488_v59 = vrot.slane %v486_v63, 1  ;;  %v502_v10 = vrot.slane %v500_v21, 1 }
  0x7f   : > { %2028 = vrot.lane.b32.xlu1 %v3334_v16, %s2996_s24  ;;  %v507_v43 = vshll.u32 %v3361_v51, 16  ;;  %v505_v25 = vshrl.u32 %v3361_v51, 16  ;;  %v2576_v5 = vcombine.low %v3142_v50, %v3142_v50  ;;  %v629_v63 = vshll.u32 %v3145_v52, 16 }
  0x80   : > { %2026 = vrot.lane.b32.xlu0 %v3340_v34, %s2996_s24  ;;  %v496_v35 = vor.u32 %v495_v42, %v491_v17  ;;  %v489_v56 = vor.u32 %v488_v59, %v484_v54  ;;  %v2939_v17 = vld [vmem:[%s3919_s2 + $0x8] sm:$0xff]   ;;  %v2575_v42 = vcombine.low %v3147_v53, %v3147_v53  ;;  %v2578_v54 = vcombine.low %v3152_v58, %v3152_v58  ;;  %v418_v59 = vld [vmem:[#allocation2 + $0x38] sm:$0xf]  ;;  %v417_v58 = vld [vmem:[#allocation2 + $0x30] sm:$0xf] }
  0x81   : > { %v509_v14 = vrot.slane %v507_v43, 1  ;;  %v622_v43 = vshll.u32 %v3150_v57, 16  ;;  %v627_v21 = vshrl.u32 %v3145_v52, 16  ;;  %v2577_v53 = vcombine.low %v3159_v61, %v3159_v61 }
  0x82   : > { %v3415_v52 = vcombine.low %v418_v59, %v3228_v24  ;;  %v641_v61 = vshrl.u32 %v3157_v60, 16 }
  0x83   : > { %2032 = vrot.lane.b32.xlu1 %v3345_v33, %s2996_s24  ;;  %v510_v27 = vor.u32 %v509_v14, %v505_v25  ;;  %v643_v25 = vshll.u32 %v3157_v60, 16 }
  0x84   : > { %2030 = vrot.lane.b32.xlu0 %v3358_v20, %s2996_s24 }
  0x87   : > { %2124 = vrot.lane.b32.xlu1 %v2099_v7, %s2997_s25  ;;  %v498_v7 = vshrl.u32 %v3367_v22, 16 }
  0x88   : > { %2122 = vrot.lane.b32.xlu0 %v2092_v62, %s2997_s25  ;;  %v2938_v62 = vld [vmem:[%s3919_s2] sm:$0xff]  }
  0x89   : > { %v503_v31 = vor.u32 %v502_v10, %v498_v7  ;;  %2794 = vmatprep.subr.bf16.mxu0 %v2938_v62  ;;  %v636_v7 = vshll.u32 %v3166_v3, 16 }
  0x8a   : > { %2795 = vmatpush3.bf16.msra.mxu0 %v2938_v62 }
  0x8b   : > { %2128 = vrot.lane.b32.xlu1 %v2113_v29, %s2997_s25  ;;  %v416_v29 = vld [vmem:[#allocation2 + $0x28] sm:$0xf]  ;;  %2796 = vmatprep.subr.bf16.mxu0 %v2939_v17  ;;  %v638_v24 = vrot.slane %v636_v7, 1 }
  0x8c   : > { %2126 = vrot.lane.b32.xlu0 %v2106_v6, %s2997_s25  ;;  %v415_v6 = vld [vmem:[#allocation2 + $0x20] sm:$0xf]  ;;  %v3401_v50 = vcombine.low %v416_v29, %v3217_v12  ;;  %v620_v12 = vshrl.u32 %v3150_v57, 16 }
  0x8d   : > { %v3409_v14 = vcombine.low %v415_v6, %v3219_v0  ;;  %v645_v0 = vrot.slane %v643_v25, 1 }
  0x8e   : > { %2797 = vmatpush3.bf16.msra.mxu0 %v2939_v17  ;;  %v521_v62 = vshll.u32 %v3401_v50, 16  ;;  %v519_v60 = vshrl.u32 %v3401_v50, 16 }
  0x8f   : > { %541 = vrot.lane.b32.xlu1 %v496_v35, %s2995_s23  ;;  %v631_v35 = vrot.slane %v629_v63, 1  ;;  %v514_v63 = vshll.u32 %v3409_v14, 16  ;;  %v646_v17 = vor.u32 %v645_v0, %v641_v61  ;;  %v3447_v0 = vld [vmem:[#allocation2 + $0x20] sm:$0xf] }
  0x90   : > { %539 = vrot.lane.b32.xlu0 %v489_v56, %s2995_s23  ;;  %v624_v56 = vrot.slane %v622_v43, 1  ;;  %v535_v43 = vshll.u32 %v3415_v52, 16  ;;  %3939 = vst [vmem:[#allocation8_spill] sm:$0xff] %v3447_v0 }
  0x91   : > { %v3417_v10 = vpop.permute.xlu0 %960 }
  0x92   : > { %v625_v57 = vor.u32 %v624_v56, %v620_v12  ;;  %v1455_v12 = vld [vmem:[#allocation2 + $0x8] sm:$0xf] }
  0x93   : > { %545 = vrot.lane.b32.xlu1 %v510_v27, %s2995_s23  ;;  %v632_v27 = vor.u32 %v631_v35, %v627_v21  ;;  %v1456_v21 = vld [vmem:[#allocation2 + $0x10] sm:$0xf] }
  0x94   : > { %543 = vrot.lane.b32.xlu0 %v503_v31, %s2995_s23  ;;  %v3423_v31 = vcombine.low %v417_v58, %v3233_v32  ;;  %v537_v58 = vrot.slane %v535_v43, 1  ;;  %v3445_v61 = vcombine.low %v1456_v21, %v3247_v8  ;;  %v657_v8 = vshll.u32 %v3181_v18, 16  ;;  %v1462_v21 = vld [vmem:[#allocation2 + $0x40] sm:$0xf] }
  0x96   : > { %v528_v59 = vshll.u32 %v3423_v31, 16  ;;  %v526_v7 = vshrl.u32 %v3423_v31, 16 }
  0x97   : > { %581 = vrot.lane.b32.xlu1 %v2576_v5, %s2996_s24  ;;  %v634_v5 = vshrl.u32 %v3166_v3, 16  ;;  %v512_v3 = vshrl.u32 %v3409_v14, 16 }
  0x98   : > { %579 = vrot.lane.b32.xlu0 %v2575_v42, %s2996_s24  ;;  %v523_v42 = vrot.slane %v521_v62, 1  ;;  %v1460_v62 = vld [vmem:[#allocation2 + $0x30] sm:$0xf] }
  0x99   : > { %v639_v6 = vor.u32 %v638_v24, %v634_v5 }
  0x9a   : > { %v524_v25 = vor.u32 %v523_v42, %v519_v60  ;;  %v650_v60 = vshll.u32 %v3191_v23, 16  ;;  %v3463_v42 = vcombine.low %v3447_v0, %v3259_v40  ;;  %v2579_v40 = vcombine.low %v3183_v19, %v3183_v19 }
  0x9b   : > { %585 = vrot.lane.b32.xlu1 %v2578_v54, %s2996_s24  ;;  %v516_v54 = vrot.slane %v514_v63, 1  ;;  %v3455_v63 = vcombine.low %v1455_v12, %v3250_v26  ;;  %v3469_v26 = vcombine.low %v1460_v62, %v3284_v55  ;;  %v655_v12 = vshrl.u32 %v3181_v18, 16 }
  0x9c   : > { %583 = vrot.lane.b32.xlu0 %v2577_v53, %s2996_s24  ;;  %v533_v53 = vshrl.u32 %v3415_v52, 16  ;;  %v1536_v18 = vshrl.u32 %v3445_v61, 16  ;;  %v1550_v0 = vshrl.u32 %v3463_v42, 16 }
  0x9d   : > { %v517_v56 = vor.u32 %v516_v54, %v512_v3  ;;  %v671_v3 = vshll.u32 %v3213_v47, 16  ;;  %v1538_v54 = vshll.u32 %v3445_v61, 16  ;;  %v1531_v55 = vshll.u32 %v3455_v63, 16 }
  0x9e   : > { %v538_v24 = vor.u32 %v537_v58, %v533_v53  ;;  %v648_v53 = vshrl.u32 %v3191_v23, 16  ;;  %v652_v58 = vrot.slane %v650_v60, 1  ;;  %v1552_v23 = vshll.u32 %v3463_v42, 16 }
  0x9f   : > { %677 = vrot.lane.b32.xlu1 %v632_v27, %s2997_s25  ;;  %v530_v27 = vrot.slane %v528_v59, 1  ;;  %v673_v62 = vrot.slane %v671_v3, 1  ;;  %v1540_v60 = vrot.slane %v1538_v54, 1  ;;  %v1674_v54 = vshll.u32 %v3280_v44, 16 }
  0xa0   : > { %675 = vrot.lane.b32.xlu0 %v625_v57, %s2997_s25  ;;  %v653_v3 = vor.u32 %v652_v58, %v648_v53  ;;  %v1681_v58 = vshll.u32 %v3301_v28, 16 }
  0xa1   : > { %v3428_v29 = vpop.permute.xlu1 %978  ;;  %v531_v43 = vor.u32 %v530_v27, %v526_v7  ;;  %v3509_v38 = vor.u32 %v1540_v60, %v1536_v18  ;;  %v1672_v18 = vshrl.u32 %v3280_v44, 16  ;;  %v1676_v60 = vrot.slane %v1674_v54, 1 }
  0xa2   : > { %v3433_v32 = vpop.permute.xlu0 %976  ;;  %v1679_v44 = vshrl.u32 %v3301_v28, 16  ;;  %v1683_v54 = vrot.slane %v1681_v58, 1 }
  0xa3   : > { %681 = vrot.lane.b32.xlu1 %v646_v17, %s2997_s25  ;;  %v3457_v17 = vld [vmem:[#allocation2 + $0x18] sm:$0xf]  ;;  %v3558_v58 = vor.u32 %v1676_v60, %v1672_v18 }
  0xa4   : > { %679 = vrot.lane.b32.xlu0 %v639_v6, %s2997_s25  ;;  %3940 = vst [vmem:[#allocation9_spill] sm:$0xff] %v3457_v17  ;;  %v664_v6 = vshll.u32 %v3224_v11, 16  ;;  %v3474_v59 = vcombine.low %v3457_v17, %v3262_v1  ;;  %v662_v1 = vshrl.u32 %v3224_v11, 16 }
  0xa5   : > { %v3438_v35 = vpop.permute.xlu1 %982 }
  0xa6   : > { %v3449_v57 = vpop.permute.xlu0 %980  ;;  %3941 = vst [vmem:[#allocation10_spill] sm:$0xff] %v3474_v59  ;;  %v666_v19 = vrot.slane %v664_v6, 1  ;;  %v1545_v11 = vshll.u32 %v3474_v59, 16  ;;  %v1533_v6 = vrot.slane %v1531_v55, 1  ;;  %v1543_v55 = vshrl.u32 %v3474_v59, 16 }
  0xa7   : > { %549 = vrot.lane.b32.xlu1 %v524_v25, %s2995_s23  ;;  %v2580_v25 = vcombine.low %v3171_v13, %v3171_v13  ;;  %v669_v13 = vshrl.u32 %v3213_v47, 16  ;;  %v1529_v47 = vshrl.u32 %v3455_v63, 16 }
  0xa8   : > { %547 = vrot.lane.b32.xlu0 %v517_v56, %s2995_s23  ;;  %v659_v56 = vrot.slane %v657_v8, 1  ;;  %v2581_v8 = vcombine.low %v3221_v4, %v3221_v4  ;;  %v1547_v53 = vrot.slane %v1545_v11, 1  ;;  %v3527_v11 = vld [vmem:[#allocation2 + $0x38] sm:$0xf] }
  0xa9   : > { %v3451_v5 = vpop.permute.xlu1 %986  ;;  %v674_v4 = vor.u32 %v673_v62, %v669_v13  ;;  %v1688_v13 = vshll.u32 %v3293_v15, 16  ;;  %v1665_v62 = vshrl.u32 %v3288_v49, 16 }
  0xaa   : > { %v3485_v7 = vpop.permute.xlu0 %984 }
  0xab   : > { %553 = vrot.lane.b32.xlu1 %v538_v24, %s2995_s23  ;;  %v3493_v24 = vcombine.low %v1462_v21, %v3303_v30  ;;  %v660_v30 = vor.u32 %v659_v56, %v655_v12  ;;  %v1667_v21 = vshll.u32 %v3288_v49, 16  ;;  %v3513_v12 = vld [vmem:[#allocation2 + $0x28] sm:$0xf] }
  0xac   : > { %551 = vrot.lane.b32.xlu0 %v531_v43, %s2995_s23  ;;  %v2582_v43 = vcombine.low %v3203_v37, %v3203_v37  ;;  %v1554_v37 = vrot.slane %v1552_v23, 1 }
  0xad   : > { %v3487_v27 = vpop.permute.xlu1 %990  ;;  %v1669_v23 = vrot.slane %v1667_v21, 1  ;;  %v3540_v21 = vor.u32 %v1547_v53, %v1543_v55  ;;  %v1089_v55 = vsel %vm691_vm6, %v3353_v45, %v3417_v10 }
  0xaf   : > { %589 = vrot.lane.b32.xlu1 %v2580_v25, %s2996_s24  ;;  %v3506_v25 = vor.u32 %v666_v19, %v662_v1  ;;  %v3942_v1 = vld [vmem:[#allocation3_spill] sm:$0xff]  ;;  %v1566_v19 = vshll.u32 %v3469_v26, 16  ;;  %v3556_v53 = vor.u32 %v1669_v23, %v1665_v62 }
  0xb0   : > { %587 = vrot.lane.b32.xlu0 %v2579_v40, %s2996_s24  ;;  %v3518_v40 = vor.u32 %v1533_v6, %v1529_v47  ;;  %v3538_v49 = vcombine.low %v3513_v12, %v3942_v1  ;;  %v1564_v47 = vshrl.u32 %v3469_v26, 16  ;;  %v3549_v6 = vcombine.low %v3527_v11, %v3308_v36 }
  0xb1   : > { %v965_v17 = vpop.permute.xlu1 %964 }
  0xb2   : > { %v3515_v56 = vpop.permute.xlu0 %988  ;;  %v1557_v36 = vshrl.u32 %v3538_v49, 16  ;;  %v1559_v45 = vshll.u32 %v3538_v49, 16  ;;  %v1093_v18 = vsel %vm691_vm6, %v3367_v22, %v965_v17  ;;  %v1578_v22 = vshrl.u32 %v3493_v24, 16 }
  0xb3   : > { %593 = vrot.lane.b32.xlu1 %v2582_v43, %s2996_s24  ;;  %v3530_v43 = vor.u32 %v1554_v37, %v1550_v0  ;;  %v1686_v0 = vshrl.u32 %v3293_v15, 16  ;;  %v1690_v37 = vrot.slane %v1688_v13, 1  ;;  %v1568_v13 = vrot.slane %v1566_v19, 1 }
  0xb4   : > { %591 = vrot.lane.b32.xlu0 %v2581_v8, %s2996_s24  ;;  %v1580_v17 = vshll.u32 %v3493_v24, 16 }
  0xb5   : > { %v967_v59 = vpop.permute.xlu1 %966 }
  0xb6   : > { %v963_v8 = vpop.permute.xlu0 %962  ;;  %v1095_v15 = vsel %vm691_vm6, %v3361_v51, %v967_v59  ;;  %v1105_v51 = vsel %vm716_vm7, %v1089_v55, %v3433_v32 }
  0xb7   : > { %685 = vrot.lane.b32.xlu1 %v660_v30, %s2997_s25  ;;  %v1091_v28 = vsel %vm691_vm6, %v3348_v39, %v963_v8  ;;  %v3568_v39 = vor.u32 %v1683_v54, %v1679_v44  ;;  %v1111_v44 = vsel %vm716_vm7, %v1095_v15, %v3438_v35  ;;  %v1109_v35 = vsel %vm716_vm7, %v1093_v18, %v3449_v57 }
  0xb8   : > { %v1107_v1 = vsel %vm716_vm7, %v1091_v28, %v3428_v29  ;;  %683 = vrot.lane.b32.xlu0 %v653_v3, %s2997_s25  ;;  %v3574_v29 = vor.u32 %v1690_v37, %v1686_v0  ;;  %v1573_v3 = vshll.u32 %v3549_v6, 16  ;;  %v3585_v0 = vrot.slane %v1559_v45, 1 }
  0xb9   : > { %v1075_v30 = vpop.permute.xlu1 %1074 }
  0xba   : > { %v1123_v10 = vsel %vm733_vm8, %v1107_v1, %v1075_v30  ;;  %v1073_v59 = vpop.permute.xlu0 %1072 }
  0xbb   : > { %v2619_v23 = vcombine.low %v1123_v10, %v1123_v10  ;;  %689 = vrot.lane.b32.xlu1 %v674_v4, %s2997_s25  ;;  %v1121_v19 = vsel %vm733_vm8, %v1105_v51, %v1073_v59  ;;  %v2620_v60 = vcombine.high %v1123_v10, %v1123_v10  ;;  %v3597_v59 = vld [vmem:[%s3919_s2 + $0x20] sm:$0xff]  }
  0xbc   : > { %v2617_v32 = vcombine.low %v1121_v19, %v1121_v19  ;;  %v2618_v54 = vcombine.high %v1121_v19, %v1121_v19  ;;  %687 = vrot.lane.b32.xlu0 %v3506_v25, %s2997_s25  ;;  %2818 = vmatprep.subr.bf16.mxu0 %v3597_v59 }
  0xbd   : > { %v1194_v8 = vshrl.u32 %v2619_v23, 16  ;;  %v1197_v55 = vshll.u32 %v2619_v23, 16  ;;  %v1079_v28 = vpop.permute.xlu1 %1078  ;;  %v1203_v25 = vshll.u32 %v2620_v60, 16 }
  0xbe   : > { %v1127_v4 = vsel %vm733_vm8, %v1111_v44, %v1079_v28  ;;  %v1180_v37 = vshrl.u32 %v2617_v32, 16  ;;  %v1183_v30 = vshll.u32 %v2617_v32, 16  ;;  %v1077_v15 = vpop.permute.xlu0 %1076  ;;  %v1189_v44 = vshll.u32 %v2618_v54, 16 }
  0xbf   : > { %v1196_v1 = vrot.slane %v1194_v8, 4  ;;  %1586 = vrot.lane.b32.xlu1 %v3509_v38, %s2995_s23  ;;  %v1199_v10 = vrot.slane %v1197_v55, 5  ;;  %v1125_v51 = vsel %vm733_vm8, %v1109_v35, %v1077_v15  ;;  %v2623_v45 = vcombine.low %v1127_v4, %v1127_v4 }
  0xc0   : > { %v1182_v23 = vrot.slane %v1180_v37, 4  ;;  %v1185_v19 = vrot.slane %v1183_v30, 5  ;;  %v2621_v32 = vcombine.low %v1125_v51, %v1125_v51  ;;  %1584 = vrot.lane.b32.xlu0 %v3518_v40, %s2995_s23  ;;  %v2622_v57 = vcombine.high %v1125_v51, %v1125_v51 }
  0xc1   : > { %v971_v8 = vpop.permute.xlu1 %970  ;;  %v1200_v38 = vor.u32 %v1199_v10, %v1196_v1  ;;  %v2624_v18 = vcombine.high %v1127_v4, %v1127_v4  ;;  %v1222_v60 = vshrl.u32 %v2623_v45, 16  ;;  %v1225_v15 = vshll.u32 %v2623_v45, 16 }
  0xc2   : > { %v1186_v55 = vor.u32 %v1185_v19, %v1182_v23  ;;  %v1208_v28 = vshrl.u32 %v2621_v32, 16  ;;  %v1211_v35 = vshll.u32 %v2621_v32, 16  ;;  %v969_v62 = vpop.permute.xlu0 %968  ;;  %v1217_v54 = vshll.u32 %v2622_v57, 16 }
  0xc3   : > { %1590 = vrot.lane.b32.xlu1 %v3530_v43, %s2995_s23  ;;  %v1224_v37 = vrot.slane %v1222_v60, 4  ;;  %v1231_v30 = vshll.u32 %v2624_v18, 16  ;;  %v3606_v40 = vor.u32 %v1568_v13, %v1564_v47  ;;  %v1227_v10 = vrot.slane %v1225_v15, 5 }
  0xc4   : > { %v1210_v1 = vrot.slane %v1208_v28, 4  ;;  %v1213_v4 = vrot.slane %v1211_v35, 5  ;;  %v1099_v51 = vsel %vm691_vm6, %v3401_v50, %v971_v8  ;;  %1588 = vrot.lane.b32.xlu0 %v3540_v21, %s2995_s23  ;;  %v1191_v45 = vrot.slane %v1189_v44, 5 }
  0xc5   : > { %v975_v23 = vpop.permute.xlu1 %974  ;;  %v1205_v19 = vrot.slane %v1203_v25, 5  ;;  %v1097_v47 = vsel %vm691_vm6, %v3409_v14, %v969_v62  ;;  %v3620_v13 = vrot.slane %v1573_v3, 1  ;;  %v1228_v57 = vor.u32 %v1227_v10, %v1224_v37 }
  0xc6   : > { %v1214_v32 = vor.u32 %v1213_v4, %v1210_v1  ;;  %v973_v50 = vpop.permute.xlu0 %972  ;;  %v1187_v8 = vrot.slane %v1186_v55, 4  ;;  %v1201_v18 = vrot.slane %v1200_v38, 4  ;;  %v3945_v21 = vcombine.low %v3273_v41, %v3273_v41 }
  0xc7   : > { %v1219_v25 = vrot.slane %v1217_v54, 5  ;;  %v1233_v44 = vrot.slane %v1231_v30, 5  ;;  %v1103_v60 = vsel %vm691_vm6, %v3415_v52, %v975_v23  ;;  %v1115_v14 = vsel %vm716_vm7, %v1099_v51, %v3451_v5  ;;  %v2934_v23 = vld [vmem:[%s3919_s2 + $0x38] sm:$0xff]  }
  0xc8   : > { %1626 = vrot.lane.b32.xlu1 %v3945_v21, %s2996_s24  ;;  %v1215_v62 = vrot.slane %v1214_v32, 4  ;;  %v1229_v3 = vrot.slane %v1228_v57, 4  ;;  %v1192_v28 = vsel %vm3614_vm12, %v1187_v8, %v1191_v45  ;;  %v1206_v38 = vsel %vm3614_vm12, %v1201_v18, %v1205_v19 }
  0xc9   : > { %v1083_v55 = vpop.permute.xlu1 %1082  ;;  %v3946_v41 = vcombine.low %v3276_v48, %v3276_v48  ;;  %v1101_v52 = vsel %vm691_vm6, %v3423_v31, %v973_v50  ;;  %v1113_v5 = vsel %vm716_vm7, %v1097_v47, %v3485_v7  ;;  %v2637_v35 = vcombine.low %v1192_v28, %v1206_v38 }
  0xca   : > { %v1131_v15 = vsel %vm733_vm8, %v1115_v14, %v1083_v55  ;;  %v1220_v54 = vsel %vm3614_vm12, %v1215_v62, %v1219_v25  ;;  %v1234_v37 = vsel %vm3614_vm12, %v1229_v3, %v1233_v44  ;;  %v1081_v30 = vpop.permute.xlu0 %1080  ;;  %v3947_v48 = vcombine.low %v3282_v9, %v3282_v9 }
  0xcb   : > { %1624 = vrot.lane.b32.xlu0 %v3946_v41, %s2996_s24  ;;  %v2627_v1 = vcombine.low %v1131_v15, %v1131_v15  ;;  %v2628_v4 = vcombine.high %v1131_v15, %v1131_v15  ;;  %v1129_v31 = vsel %vm733_vm8, %v1113_v5, %v1081_v30  ;;  %2810 = vmatprep.mubr.msk.bf16.mxu1 %vm786_vm11, %v2637_v35 }
  0xcc   : > { %1630 = vrot.lane.b32.xlu1 %v3947_v48, %s2996_s24  ;;  %v2638_v7 = vcombine.low %v1220_v54, %v1234_v37  ;;  %v1119_v10 = vsel %vm716_vm7, %v1103_v60, %v3487_v27  ;;  %v3658_v51 = vor.u32 %v3585_v0, %v1557_v36  ;;  %v2625_v45 = vcombine.low %v1129_v31, %v1129_v31 }
  0xcd   : > { %v2626_v9 = vcombine.high %v1129_v31, %v1129_v31  ;;  %v1250_v19 = vshrl.u32 %v2627_v1, 16  ;;  %v1253_v47 = vshll.u32 %v2627_v1, 16  ;;  %v1087_v32 = vpop.permute.xlu1 %1086  ;;  %v3948_v57 = vcombine.low %v3290_v2, %v3290_v2 }
  0xce   : > { %v1259_v27 = vshll.u32 %v2628_v4, 16  ;;  %v1117_v50 = vsel %vm716_vm7, %v1101_v52, %v3515_v56  ;;  %2811 = vmatmul.mubr.msk.bf16.vlgmr.msra.gmra.mrb[0].mxu1 %vm786_vm11, %v2638_v7  ;;  %v1135_v36 = vsel %vm733_vm8, %v1119_v10, %v1087_v32  ;;  %v1582_v0 = vrot.slane %v1580_v17, 1  ;;  %v1085_v44 = vpop.permute.xlu0 %1084 }
  0xcf   : > { %1628 = vrot.lane.b32.xlu0 %v3948_v57, %s2996_s24  ;;  %v1236_v8 = vshrl.u32 %v2625_v45, 16  ;;  %v1239_v18 = vshll.u32 %v2625_v45, 16  ;;  %v1245_v21 = vshll.u32 %v2626_v9, 16  ;;  %v1252_v25 = vrot.slane %v1250_v19, 4  ;;  %2831 = vmatpush3.bf16.msra.mxu1 %v3321_v46 }
  0xd0   : > { %1722 = vrot.lane.b32.xlu1 %v3558_v58, %s2997_s25  ;;  %v1255_v2 = vrot.slane %v1253_v47, 5  ;;  %v1261_v60 = vrot.slane %v1259_v27, 5  ;;  %v1133_v56 = vsel %vm733_vm8, %v1117_v50, %v1085_v44  ;;  %v2631_v14 = vcombine.low %v1135_v36, %v1135_v36  ;;  %2832 = vmatprep.subr.bf16.mxu1 %v2934_v23 }
  0xd1   : > { %v1238_v62 = vrot.slane %v1236_v8, 4  ;;  %v1241_v3 = vrot.slane %v1239_v18, 5  ;;  %v1247_v28 = vrot.slane %v1245_v21, 5  ;;  %v2629_v17 = vcombine.low %v1133_v56, %v1133_v56  ;;  %v2005_v38 = vpop.permute.xlu1 %2004 }
  0xd2   : > { %v1256_v55 = vor.u32 %v1255_v2, %v1252_v25  ;;  %v2630_v41 = vcombine.high %v1133_v56, %v1133_v56  ;;  %v2632_v52 = vcombine.high %v1135_v36, %v1135_v36  ;;  %v1278_v58 = vshrl.u32 %v2631_v14, 16  ;;  %v2003_v54 = vpop.permute.xlu0 %2002  ;;  %v3950_v25 = vld [vmem:[#allocation4_spill] sm:$0xff]  ;;  %v3951_v56 = vld [vmem:[#allocation5_spill] sm:$0xff] }
  0xd3   : > { %1720 = vrot.lane.b32.xlu0 %v3556_v53, %s2997_s25  ;;  %v1242_v5 = vor.u32 %v1241_v3, %v1238_v62  ;;  %v1264_v46 = vshrl.u32 %v2629_v17, 16  ;;  %v1267_v35 = vshll.u32 %v2629_v17, 16  ;;  %v1281_v15 = vshll.u32 %v2631_v14, 16  ;;  %2833 = vmatpush3.bf16.msra.mxu1 %v2934_v23 }
  0xd4   : > { %1726 = vrot.lane.b32.xlu1 %v3574_v29, %s2997_s25  ;;  %v1257_v37 = vrot.slane %v1256_v55, 4  ;;  %v1273_v30 = vshll.u32 %v2630_v41, 16  ;;  %v1280_v1 = vrot.slane %v1278_v58, 4  ;;  %v1287_v4 = vshll.u32 %v2632_v52, 16  ;;  %v3952_v52 = vld [vmem:[#allocation6_spill] sm:$0xff] }
  0xd5   : > { %v1243_v48 = vrot.slane %v1242_v5, 4  ;;  %v1266_v31 = vrot.slane %v1264_v46, 4  ;;  %v1269_v53 = vrot.slane %v1267_v35, 5  ;;  %v1283_v7 = vrot.slane %v1281_v15, 5  ;;  %v2009_v10 = vpop.permute.xlu1 %2008 }
  0xd6   : > { %v1262_v45 = vsel %vm3614_vm12, %v1257_v37, %v1261_v60  ;;  %v2007_v19 = vpop.permute.xlu0 %2006  ;;  %v1583_v47 = vor.u32 %v1582_v0, %v1578_v22  ;;  %v3949_v57 = vshrl.u32 %v3549_v6, 16  ;;  %v1695_v27 = vshll.u32 %v3340_v34, 16 }
  0xd7   : > { %1724 = vrot.lane.b32.xlu0 %v3568_v39, %s2997_s25  ;;  %v1248_v9 = vsel %vm3614_vm12, %v1243_v48, %v1247_v28  ;;  %v1270_v29 = vor.u32 %v1269_v53, %v1266_v31  ;;  %v1284_v23 = vor.u32 %v1283_v7, %v1280_v1  ;;  %v1275_v36 = vrot.slane %v1273_v30, 5 }
  0xd8   : > { %1594 = vrot.lane.b32.xlu1 %v3606_v40, %s2995_s23  ;;  %v2639_v32 = vcombine.low %v1248_v9, %v1262_v45  ;;  %v1576_v39 = vor.u32 %v3620_v13, %v3949_v57  ;;  %v1289_v18 = vrot.slane %v1287_v4, 5  ;;  %v1702_v40 = vshll.u32 %v3334_v16, 16  ;;  %v3954_v9 = vld [vmem:[#allocation10_spill] sm:$0xff] }
  0xd9   : > { %v1271_v50 = vrot.slane %v1270_v29, 4  ;;  %v1285_v8 = vrot.slane %v1284_v23, 4  ;;  %v2021_v21 = vpop.permute.xlu1 %2020  ;;  %v2660_v44 = vcombine.low %v3950_v25, %v3950_v25  ;;  %v1709_v60 = vshll.u32 %v3358_v20, 16 }
  0xda   : > { %2814 = vmatprep.mubr.msk.bf16.mxu1 %vm786_vm11, %v2639_v32  ;;  %v2019_v0 = vpop.permute.xlu0 %2018  ;;  %v2659_v14 = vcombine.low %v3951_v56, %v3951_v56  ;;  %v1693_v62 = vshrl.u32 %v3340_v34, 16  ;;  %v1697_v3 = vrot.slane %v1695_v27, 1  ;;  %v1700_v28 = vshrl.u32 %v3334_v16, 16  ;;  %v3953_v16 = vld [vmem:[#allocation7_spill] sm:$0xff] }
  0xdb   : > { %1592 = vrot.lane.b32.xlu0 %v3658_v51, %s2995_s23  ;;  %v1276_v22 = vsel %vm3614_vm12, %v1271_v50, %v1275_v36  ;;  %v1290_v13 = vsel %vm3614_vm12, %v1285_v8, %v1289_v18  ;;  %v1704_v17 = vrot.slane %v1702_v40, 1  ;;  %v1716_v55 = vshll.u32 %v3345_v33, 16 }
  0xdc   : > { %1598 = vrot.lane.b32.xlu1 %v1583_v47, %s2995_s23  ;;  %v2640_v2 = vcombine.low %v1276_v22, %v1290_v13  ;;  %v2662_v58 = vcombine.low %v3952_v52, %v3952_v52  ;;  %v2133_v5 = vsel %vm691_vm6, %v3445_v61, %v2005_v38  ;;  %v1707_v46 = vshrl.u32 %v3358_v20, 16 }
  0xdd   : > { %v2025_v51 = vpop.permute.xlu1 %2024  ;;  %v1711_v34 = vrot.slane %v1709_v60, 1  ;;  %v2149_v35 = vsel %vm716_vm7, %v2133_v5, %v2021_v21  ;;  %v2661_v37 = vcombine.low %v3953_v16, %v3953_v16  ;;  %v1698_v30 = vor.u32 %v1697_v3, %v1693_v62 }
  0xde   : > { %2815 = vmatmul.mubr.msk.bf16.gmra.mrb[4].mxu1 %vm786_vm11, %v2640_v2  ;;  %v2023_v41 = vpop.permute.xlu0 %2022  ;;  %v1714_v1 = vshrl.u32 %v3345_v33, 16  ;;  %v2131_v4 = vsel %vm691_vm6, %v3455_v63, %v2003_v54  ;;  %v1705_v61 = vor.u32 %v1704_v17, %v1700_v28  ;;  %v1718_v38 = vrot.slane %v1716_v55, 1 }
  0xdf   : > { %1596 = vrot.lane.b32.xlu0 %v1576_v39, %s2995_s23  ;;  %v2137_v20 = vsel %vm691_vm6, %v3463_v42, %v2009_v10  ;;  %v2147_v31 = vsel %vm716_vm7, %v2131_v4, %v2019_v0  ;;  %v2135_v33 = vsel %vm691_vm6, %v3954_v9, %v2007_v19  ;;  %v1712_v54 = vor.u32 %v1711_v34, %v1707_v46 }
  0xe0   : > { %1634 = vrot.lane.b32.xlu1 %v2660_v44, %s2996_s24  ;;  %v2153_v29 = vsel %vm716_vm7, %v2137_v20, %v2025_v51  ;;  %v2151_v10 = vsel %vm716_vm7, %v2135_v33, %v2023_v41  ;;  %v1719_v50 = vor.u32 %v1718_v38, %v1714_v1 }
  0xe1   : > { %v2117_v15 = vpop.permute.xlu1 %2116 }
  0xe2   : > { %v2165_v48 = vsel %vm733_vm8, %v2149_v35, %v2117_v15  ;;  %v2115_v53 = vpop.permute.xlu0 %2114 }
  0xe3   : > { %1632 = vrot.lane.b32.xlu0 %v2659_v14, %s2996_s24  ;;  %v2703_v7 = vcombine.low %v2165_v48, %v2165_v48  ;;  %v2704_v45 = vcombine.high %v2165_v48, %v2165_v48  ;;  %v2163_v63 = vsel %vm733_vm8, %v2147_v31, %v2115_v53 }
  0xe4   : > { %1638 = vrot.lane.b32.xlu1 %v2662_v58, %s2996_s24  ;;  %v2701_v23 = vcombine.low %v2163_v63, %v2163_v63  ;;  %v2702_v47 = vcombine.high %v2163_v63, %v2163_v63 }
  0xe5   : > { %v2233_v32 = vshrl.u32 %v2703_v7, 16  ;;  %v2236_v57 = vshll.u32 %v2703_v7, 16  ;;  %v2121_v42 = vpop.permute.xlu1 %2120  ;;  %v2242_v39 = vshll.u32 %v2704_v45, 16 }
  0xe6   : > { %v2169_v27 = vsel %vm733_vm8, %v2153_v29, %v2121_v42  ;;  %v2219_v36 = vshrl.u32 %v2701_v23, 16  ;;  %v2222_v19 = vshll.u32 %v2701_v23, 16  ;;  %v2228_v8 = vshll.u32 %v2702_v47, 16  ;;  %v2119_v21 = vpop.permute.xlu0 %2118 }
  0xe7   : > { %1636 = vrot.lane.b32.xlu0 %v2661_v37, %s2996_s24  ;;  %v2235_v18 = vrot.slane %v2233_v32, 4  ;;  %v2238_v40 = vrot.slane %v2236_v57, 5  ;;  %v2244_v22 = vrot.slane %v2242_v39, 5  ;;  %v2167_v13 = vsel %vm733_vm8, %v2151_v10, %v2119_v21 }
  0xe8   : > { %1730 = vrot.lane.b32.xlu1 %v1705_v61, %s2997_s25  ;;  %v2707_v0 = vcombine.low %v2169_v27, %v2169_v27  ;;  %v2221_v25 = vrot.slane %v2219_v36, 4  ;;  %v2224_v44 = vrot.slane %v2222_v19, 5  ;;  %v2230_v2 = vrot.slane %v2228_v8, 5 }
  0xe9   : > { %v2705_v60 = vcombine.low %v2167_v13, %v2167_v13  ;;  %v2013_v51 = vpop.permute.xlu1 %2012  ;;  %v2239_v56 = vor.u32 %v2238_v40, %v2235_v18  ;;  %v2706_v14 = vcombine.high %v2167_v13, %v2167_v13  ;;  %v2708_v62 = vcombine.high %v2169_v27, %v2169_v27 }
  0xea   : > { %v2261_v3 = vshrl.u32 %v2707_v0, 16  ;;  %v2225_v28 = vor.u32 %v2224_v44, %v2221_v25  ;;  %v2264_v41 = vshll.u32 %v2707_v0, 16  ;;  %v2011_v52 = vpop.permute.xlu0 %2010  ;;  %v2141_v32 = vsel %vm691_vm6, %v3469_v26, %v2013_v51 }
  0xeb   : > { %1728 = vrot.lane.b32.xlu0 %v1698_v30, %s2997_s25  ;;  %v2247_v17 = vshrl.u32 %v2705_v60, 16  ;;  %v2250_v55 = vshll.u32 %v2705_v60, 16  ;;  %v2240_v58 = vrot.slane %v2239_v56, 4  ;;  %v2256_v5 = vshll.u32 %v2706_v14, 16 }
  0xec   : > { %1734 = vrot.lane.b32.xlu1 %v1719_v50, %s2997_s25  ;;  %v2263_v46 = vrot.slane %v2261_v3, 4  ;;  %v2270_v34 = vshll.u32 %v2708_v62, 16  ;;  %v2226_v35 = vrot.slane %v2225_v28, 4  ;;  %v2266_v37 = vrot.slane %v2264_v41, 5 }
  0xed   : > { %v2249_v15 = vrot.slane %v2247_v17, 4  ;;  %v2252_v16 = vrot.slane %v2250_v55, 5  ;;  %v2017_v30 = vpop.permute.xlu1 %2016  ;;  %v2245_v1 = vsel %vm3614_vm12, %v2240_v58, %v2244_v22  ;;  %v2258_v53 = vrot.slane %v2256_v5, 5 }
  0xee   : > { %v2231_v4 = vsel %vm3614_vm12, %v2226_v35, %v2230_v2  ;;  %v2267_v61 = vor.u32 %v2266_v37, %v2263_v46  ;;  %v2015_v38 = vpop.permute.xlu0 %2014  ;;  %v2272_v45 = vrot.slane %v2270_v34, 5  ;;  %v2139_v10 = vsel %vm691_vm6, %v3538_v49, %v2011_v52 }
  0xef   : > { %1732 = vrot.lane.b32.xlu0 %v1712_v54, %s2997_s25  ;;  %v2253_v48 = vor.u32 %v2252_v16, %v2249_v15  ;;  %v2721_v20 = vcombine.low %v2231_v4, %v2245_v1  ;;  %v2145_v27 = vsel %vm691_vm6, %v3493_v24, %v2017_v30  ;;  %v2143_v18 = vsel %vm691_vm6, %v3549_v6, %v2015_v38 }
  0xf0   : > { %v2268_v7 = vrot.slane %v2267_v61, 4 }
  0xf1   : > { %v2254_v31 = vrot.slane %v2253_v48, 4  ;;  %v2029_v9 = vpop.permute.xlu1 %2028  ;;  %2834 = vmatprep.mubr.msk.bf16.mxu1 %vm786_vm11, %v2721_v20 }
  0xf2   : > { %v2273_v29 = vsel %vm3614_vm12, %v2268_v7, %v2272_v45  ;;  %v2027_v63 = vpop.permute.xlu0 %2026  ;;  %v2157_v57 = vsel %vm716_vm7, %v2141_v32, %v2029_v9 }
  0xf3   : > { %v2259_v33 = vsel %vm3614_vm12, %v2254_v31, %v2258_v53  ;;  %v2155_v50 = vsel %vm716_vm7, %v2139_v10, %v2027_v63 }
  0xf4   : > { %v2722_v54 = vcombine.low %v2259_v33, %v2273_v29 }
  0xf5   : > { %v2033_v23 = vpop.permute.xlu1 %2032 }
  0xf6   : > { %2835 = vmatmul.mubr.msk.bf16.vlgmr.msra.gmra.mrb[8].mxu1 %vm786_vm11, %v2722_v54  ;;  %v2031_v47 = vpop.permute.xlu0 %2030  ;;  %v2161_v26 = vsel %vm716_vm7, %v2145_v27, %v2033_v23 }
  0xf7   : > { %v2159_v25 = vsel %vm716_vm7, %v2143_v18, %v2031_v47 }
  0xf9   : > { %v2125_v42 = vpop.permute.xlu1 %2124 }
  0xfa   : > { %v2173_v39 = vsel %vm733_vm8, %v2157_v57, %v2125_v42  ;;  %v2123_v36 = vpop.permute.xlu0 %2122 }
  0xfb   : > { %v2711_v19 = vcombine.low %v2173_v39, %v2173_v39  ;;  %v2712_v8 = vcombine.high %v2173_v39, %v2173_v39  ;;  %v2171_v21 = vsel %vm733_vm8, %v2155_v50, %v2123_v36 }
  0xfc   : > { %v2709_v40 = vcombine.low %v2171_v21, %v2171_v21  ;;  %v2710_v22 = vcombine.high %v2171_v21, %v2171_v21 }
  0xfd   : > { %v2289_v49 = vshrl.u32 %v2711_v19, 16  ;;  %v2292_v13 = vshll.u32 %v2711_v19, 16  ;;  %v2129_v0 = vpop.permute.xlu1 %2128  ;;  %v2298_v24 = vshll.u32 %v2712_v8, 16  ;;  %v2974_v19 = vld [vmem:[#allocation2 + $0x8] sm:$0xf] }
  0xfe   : > { %v2177_v44 = vsel %vm733_vm8, %v2161_v26, %v2129_v0  ;;  %v2275_v2 = vshrl.u32 %v2709_v40, 16  ;;  %v2278_v60 = vshll.u32 %v2709_v40, 16  ;;  %v2284_v51 = vshll.u32 %v2710_v22, 16  ;;  %v2127_v14 = vpop.permute.xlu0 %2126  ;;  %v2975_v26 = vld [vmem:[#allocation2] sm:$0xf] }
  0xff   : > { %v2291_v56 = vrot.slane %v2289_v49, 4  ;;  %v2294_v6 = vrot.slane %v2292_v13, 5  ;;  %v2300_v62 = vrot.slane %v2298_v24, 5  ;;  %v2175_v3 = vsel %vm733_vm8, %v2159_v25, %v2127_v14  ;;  %v2976_v49 = vld [vmem:[#allocation2 + $0x18] sm:$0xf] }
 0x100   : > { %v2715_v28 = vcombine.low %v2177_v44, %v2177_v44  ;;  %v2277_v17 = vrot.slane %v2275_v2, 4  ;;  %v2280_v55 = vrot.slane %v2278_v60, 5  ;;  %v2286_v41 = vrot.slane %v2284_v51, 5  ;;  %v2977_v25 = vld [vmem:[#allocation2 + $0x10] sm:$0xf] }
 0x101   : > { %v2713_v52 = vcombine.low %v2175_v3, %v2175_v3  ;;  %v542_v58 = vpop.permute.xlu1 %541  ;;  %v2295_v5 = vor.u32 %v2294_v6, %v2291_v56  ;;  %v2714_v46 = vcombine.high %v2175_v3, %v2175_v3  ;;  %v2716_v34 = vcombine.high %v2177_v44, %v2177_v44 }
 0x102   : > { %v2317_v35 = vshrl.u32 %v2715_v28, 16  ;;  %v2281_v15 = vor.u32 %v2280_v55, %v2277_v17  ;;  %v2320_v30 = vshll.u32 %v2715_v28, 16  ;;  %v540_v1 = vpop.permute.xlu0 %539  ;;  %v697_v8 = vsel %vm691_vm6, %v2974_v19, %v542_v58 }
 0x103   : > { %v2303_v16 = vshrl.u32 %v2713_v52, 16  ;;  %v2306_v37 = vshll.u32 %v2713_v52, 16  ;;  %v2296_v4 = vrot.slane %v2295_v5, 4  ;;  %v2312_v48 = vshll.u32 %v2714_v46, 16 }
 0x104   : > { %v2319_v61 = vrot.slane %v2317_v35, 4  ;;  %v2326_v38 = vshll.u32 %v2716_v34, 16  ;;  %v2282_v20 = vrot.slane %v2281_v15, 4  ;;  %v2322_v7 = vrot.slane %v2320_v30, 5  ;;  %v2978_v35 = vld [vmem:[#allocation2 + $0x28] sm:$0xf] }
 0x105   : > { %v2305_v31 = vrot.slane %v2303_v16, 4  ;;  %v2308_v53 = vrot.slane %v2306_v37, 5  ;;  %v546_v45 = vpop.permute.xlu1 %545  ;;  %v2301_v9 = vsel %vm3614_vm12, %v2296_v4, %v2300_v62  ;;  %v2314_v32 = vrot.slane %v2312_v48, 5  ;;  %v2979_v37 = vld [vmem:[#allocation2 + $0x20] sm:$0xf] }
 0x106   : > { %v2287_v33 = vsel %vm3614_vm12, %v2282_v20, %v2286_v41  ;;  %v2323_v63 = vor.u32 %v2322_v7, %v2319_v61  ;;  %v544_v54 = vpop.permute.xlu0 %543  ;;  %v2328_v42 = vrot.slane %v2326_v38, 5  ;;  %v694_v21 = vsel %vm691_vm6, %v2975_v26, %v540_v1  ;;  %v2941_v41 = vld [vmem:[%s3919_s2 + $0x28] sm:$0xff]   ;;  %v2980_v48 = vld [vmem:[#allocation2 + $0x38] sm:$0xf]  ;;  %v2981_v20 = vld [vmem:[#allocation2 + $0x30] sm:$0xf] }
 0x107   : > { %v2309_v29 = vor.u32 %v2308_v53, %v2305_v31  ;;  %v2723_v23 = vcombine.low %v2287_v33, %v2301_v9  ;;  %v703_v13 = vsel %vm691_vm6, %v2976_v49, %v546_v45  ;;  %v700_v24 = vsel %vm691_vm6, %v2977_v25, %v544_v54 }
 0x108   : > { %v2324_v57 = vrot.slane %v2323_v63, 4 }
 0x109   : > { %v2310_v47 = vrot.slane %v2309_v29, 4  ;;  %v582_v10 = vpop.permute.xlu1 %581  ;;  %2838 = vmatprep.mubr.msk.bf16.mxu1 %vm786_vm11, %v2723_v23 }
 0x10a   : > { %v2329_v27 = vsel %vm3614_vm12, %v2324_v57, %v2328_v42  ;;  %v580_v50 = vpop.permute.xlu0 %579  ;;  %v720_v40 = vsel %vm716_vm7, %v697_v8, %v582_v10 }
 0x10b   : > { %v2315_v39 = vsel %vm3614_vm12, %v2310_v47, %v2314_v32  ;;  %v718_v43 = vsel %vm716_vm7, %v694_v21, %v580_v50 }
 0x10c   : > { %v2724_v36 = vcombine.low %v2315_v39, %v2329_v27 }
 0x10d   : > { %v586_v18 = vpop.permute.xlu1 %585 }
 0x10e   : > { %2839 = vmatmul.mubr.msk.bf16.gmra.mrb[12].mxu1 %vm786_vm11, %v2724_v36  ;;  %v584_v22 = vpop.permute.xlu0 %583  ;;  %v724_v2 = vsel %vm716_vm7, %v703_v13, %v586_v18  ;;  %v2982_v36 = vld [vmem:[#allocation2 + $0x10] sm:$0xf]  ;;  %v2983_v18 = vld [vmem:[#allocation2 + $0x8] sm:$0xf] }
 0x10f   : > { %v722_v56 = vsel %vm716_vm7, %v700_v24, %v584_v22  ;;  %v3955_v22 = vld [vmem:[#allocation8_spill] sm:$0xff] }
 0x111   : > { %v678_v0 = vpop.permute.xlu1 %677 }
 0x112   : > { %v737_v44 = vsel %vm733_vm8, %v720_v40, %v678_v0  ;;  %v676_v60 = vpop.permute.xlu0 %675  ;;  %v3956_v0 = vld [vmem:[#allocation9_spill] sm:$0xff] }
 0x113   : > { %v735_v51 = vsel %vm733_vm8, %v718_v43, %v676_v60 }
 0x114   : > { %v2591_v6 = vcombine.low %v735_v51, %v737_v44 }
 0x115   : > { %v682_v14 = vpop.permute.xlu1 %681 }
 0x116   : > { %v741_v62 = vsel %vm733_vm8, %v724_v2, %v682_v14  ;;  %v680_v3 = vpop.permute.xlu0 %679  ;;  %2798 = vmatprep.mubr.msk.bf16.mxu0 %vm786_vm11, %v2591_v6 }
 0x117   : > { %v739_v28 = vsel %vm733_vm8, %v722_v56, %v680_v3 }
 0x118   : > { %v2592_v17 = vcombine.low %v739_v28, %v741_v62 }
 0x119   : > { %v550_v55 = vpop.permute.xlu1 %549 }
 0x11a   : > { %v548_v52 = vpop.permute.xlu0 %547  ;;  %2799 = vmatmul.mubr.msk.bf16.vlgmr.msra.gmra.mrb[0].mxu0 %vm786_vm11, %v2592_v17  ;;  %v709_v15 = vsel %vm691_vm6, %v2978_v35, %v550_v55 }
 0x11b   : > { %2819 = vmatpush3.bf16.msra.mxu0 %v3597_v59  ;;  %v706_v30 = vsel %vm691_vm6, %v2979_v37, %v548_v52 }
 0x11c   : > { %2820 = vmatprep.subr.bf16.mxu0 %v2941_v41 }
 0x11d   : > { %v554_v58 = vpop.permute.xlu1 %553 }
 0x11e   : > { %v552_v5 = vpop.permute.xlu0 %551  ;;  %v715_v61 = vsel %vm691_vm6, %v2980_v48, %v554_v58 }
 0x11f   : > { %2821 = vmatpush3.bf16.msra.mxu0 %v2941_v41  ;;  %v712_v31 = vsel %vm691_vm6, %v2981_v20, %v552_v5 }
 0x121   : > { %v590_v46 = vpop.permute.xlu1 %589 }
 0x122   : > { %v588_v34 = vpop.permute.xlu0 %587  ;;  %v728_v1 = vsel %vm716_vm7, %v709_v15, %v590_v46  ;;  %v2984_v46 = vld [vmem:[#allocation2 + $0x30] sm:$0xf] }
 0x123   : > { %v726_v59 = vsel %vm716_vm7, %v706_v30, %v588_v34  ;;  %v2985_v30 = vld [vmem:[#allocation2 + $0x40] sm:$0xf] }
 0x125   : > { %v594_v16 = vpop.permute.xlu1 %593 }
 0x126   : > { %v592_v4 = vpop.permute.xlu0 %591  ;;  %v732_v7 = vsel %vm716_vm7, %v715_v61, %v594_v16 }
 0x127   : > { %v730_v33 = vsel %vm716_vm7, %v712_v31, %v592_v4 }
 0x129   : > { %v686_v38 = vpop.permute.xlu1 %685 }
 0x12a   : > { %v745_v53 = vsel %vm733_vm8, %v728_v1, %v686_v38  ;;  %v684_v45 = vpop.permute.xlu0 %683 }
 0x12b   : > { %v743_v9 = vsel %vm733_vm8, %v726_v59, %v684_v45 }
 0x12c   : > { %v2593_v29 = vcombine.low %v743_v9, %v745_v53 }
 0x12d   : > { %v690_v63 = vpop.permute.xlu1 %689 }
 0x12e   : > { %v749_v54 = vsel %vm733_vm8, %v732_v7, %v690_v63  ;;  %v688_v23 = vpop.permute.xlu0 %687  ;;  %2802 = vmatprep.mubr.msk.bf16.mxu0 %vm786_vm11, %v2593_v29 }
 0x12f   : > { %v747_v47 = vsel %vm733_vm8, %v730_v33, %v688_v23 }
 0x130   : > { %v2594_v32 = vcombine.low %v747_v47, %v749_v54 }
 0x131   : > { %v1587_v57 = vpop.permute.xlu1 %1586 }
 0x132   : > { %v1585_v42 = vpop.permute.xlu0 %1584  ;;  %2803 = vmatmul.mubr.msk.bf16.gmra.mrb[4].mxu0 %vm786_vm11, %v2594_v32  ;;  %v1741_v19 = vsel %vm691_vm6, %v2982_v36, %v1587_v57 }
 0x133   : > { %v1738_v26 = vsel %vm691_vm6, %v2983_v18, %v1585_v42 }
 0x135   : > { %v1591_v10 = vpop.permute.xlu1 %1590 }
 0x136   : > { %v1589_v39 = vpop.permute.xlu0 %1588  ;;  %v1747_v49 = vsel %vm691_vm6, %v3955_v22, %v1591_v10 }
 0x137   : > { %v1744_v25 = vsel %vm691_vm6, %v3956_v0, %v1589_v39 }
 0x13a   : > { %v1627_v27 = vpop.permute.xlu1 %1626 }
 0x13b   : > { %v1763_v21 = vsel %vm716_vm7, %v1741_v19, %v1627_v27 }
 0x13d   : > { %v1625_v50 = vpop.permute.xlu0 %1624 }
 0x13e   : > { %v1631_v8 = vpop.permute.xlu1 %1630  ;;  %v1761_v13 = vsel %vm716_vm7, %v1738_v26, %v1625_v50 }
 0x13f   : > { %v1767_v44 = vsel %vm716_vm7, %v1747_v49, %v1631_v8 }
 0x141   : > { %v1629_v40 = vpop.permute.xlu0 %1628 }
 0x142   : > { %v1723_v43 = vpop.permute.xlu1 %1722  ;;  %v1765_v51 = vsel %vm716_vm7, %v1744_v25, %v1629_v40 }
 0x143   : > { %v1779_v24 = vsel %vm733_vm8, %v1763_v21, %v1723_v43 }
 0x145   : > { %v1721_v2 = vpop.permute.xlu0 %1720 }
 0x146   : > { %v1777_v60 = vsel %vm733_vm8, %v1761_v13, %v1721_v2  ;;  %v1727_v14 = vpop.permute.xlu1 %1726 }
 0x147   : > { %v2675_v56 = vcombine.low %v1777_v60, %v1779_v24  ;;  %v1783_v6 = vsel %vm733_vm8, %v1767_v44, %v1727_v14 }
 0x149   : > { %v1725_v62 = vpop.permute.xlu0 %1724  ;;  %2822 = vmatprep.mubr.msk.bf16.mxu0 %vm786_vm11, %v2675_v56 }
 0x14a   : > { %v1781_v3 = vsel %vm733_vm8, %v1765_v51, %v1725_v62  ;;  %v1595_v17 = vpop.permute.xlu1 %1594 }
 0x14b   : > { %v2676_v28 = vcombine.low %v1781_v3, %v1783_v6  ;;  %v1753_v34 = vsel %vm691_vm6, %v2984_v46, %v1595_v17 }
 0x14d   : > { %v1593_v55 = vpop.permute.xlu0 %1592  ;;  %2823 = vmatmul.mubr.msk.bf16.vlgmr.msra.gmra.mrb[8].mxu0 %vm786_vm11, %v2676_v28 }
 0x14e   : > { %v1599_v41 = vpop.permute.xlu1 %1598  ;;  %v1750_v15 = vsel %vm691_vm6, %v3513_v12, %v1593_v55 }
 0x14f   : > { %v1759_v1 = vsel %vm691_vm6, %v2985_v30, %v1599_v41 }
 0x151   : > { %v1597_v52 = vpop.permute.xlu0 %1596 }
 0x152   : > { %v1635_v58 = vpop.permute.xlu1 %1634  ;;  %v1756_v61 = vsel %vm691_vm6, %v3527_v11, %v1597_v52 }
 0x153   : > { %v1771_v16 = vsel %vm716_vm7, %v1753_v34, %v1635_v58 }
 0x155   : > { %v1633_v5 = vpop.permute.xlu0 %1632 }
 0x156   : > { %v1639_v35 = vpop.permute.xlu1 %1638  ;;  %v1769_v4 = vsel %vm716_vm7, %v1750_v15, %v1633_v5 }
 0x157   : > { %v1775_v38 = vsel %vm716_vm7, %v1759_v1, %v1639_v35 }
 0x159   : > { %v1637_v37 = vpop.permute.xlu0 %1636 }
 0x15a   : > { %v1731_v48 = vpop.permute.xlu1 %1730  ;;  %v1773_v12 = vsel %vm716_vm7, %v1756_v61, %v1637_v37 }
 0x15b   : > { %v1787_v59 = vsel %vm733_vm8, %v1771_v16, %v1731_v48 }
 0x15d   : > { %v1729_v20 = vpop.permute.xlu0 %1728 }
 0x15e   : > { %v1785_v31 = vsel %vm733_vm8, %v1769_v4, %v1729_v20  ;;  %v1735_v7 = vpop.permute.xlu1 %1734 }
 0x15f   : > { %v2677_v53 = vcombine.low %v1785_v31, %v1787_v59  ;;  %v1791_v45 = vsel %vm733_vm8, %v1775_v38, %v1735_v7 }
 0x161   : > { %v1733_v9 = vpop.permute.xlu0 %1732  ;;  %2826 = vmatprep.mubr.msk.bf16.mxu0 %vm786_vm11, %v2677_v53 }
 0x162   : > { %v1789_v33 = vsel %vm733_vm8, %v1773_v12, %v1733_v9 }
 0x163   : > { %v2678_v29 = vcombine.low %v1789_v33, %v1791_v45 }
 0x165   : > { %2827 = vmatmul.mubr.msk.bf16.gmra.mrb[12].mxu0 %vm786_vm11, %v2678_v29 }
 0x1a1   : > { %v2812_v11 = vpop.f32.mrb[0].mxu1 }
 0x1a2   : > { %1409 = vrot.lane.b32.xlu0 %v2812_v11, %s2998_s17  ;;  %v1366_v63 = vpop.f32.mrb[1].mxu1 }
 0x1a3   : > { %v2813_v54 = vpop.f32.mrb[2].mxu1 }
 0x1a4   : > { %v1369_v23 = vpop.f32.mrb[3].mxu1  ;;  %1411 = vrot.lane.b32.xlu1 %v2813_v54, %s2998_s17 }
 0x1a6   : > { %1405 = vrot.lane.b32.xlu0 %v1366_v63, %s2998_s17 }
 0x1a8   : > { %1407 = vrot.lane.b32.xlu1 %v1369_v23, %s2998_s17 }
 0x1b1   : > { %v2816_v47 = vpop.f32.mrb[4].mxu1 }
 0x1b2   : > { %1417 = vrot.lane.b32.xlu0 %v2816_v47, %s2998_s17  ;;  %v1382_v32 = vpop.f32.mrb[5].mxu1 }
 0x1b3   : > { %v2817_v57 = vpop.f32.mrb[6].mxu1 }
 0x1b4   : > { %v1385_v42 = vpop.f32.mrb[7].mxu1  ;;  %1419 = vrot.lane.b32.xlu1 %v2817_v57, %s2998_s17 }
 0x1b6   : > { %1413 = vrot.lane.b32.xlu0 %v1382_v32, %s2998_s17 }
 0x1b8   : > { %1415 = vrot.lane.b32.xlu1 %v1385_v42, %s2998_s17 }
 0x1c9   : > { %v2836_v10 = vpop.f32.mrb[8].mxu1 }
 0x1ca   : > { %2448 = vrot.lane.b32.xlu0 %v2836_v10, %s2998_s17  ;;  %v2405_v39 = vpop.f32.mrb[9].mxu1 }
 0x1cb   : > { %v2837_v27 = vpop.f32.mrb[10].mxu1 }
 0x1cc   : > { %v2408_v50 = vpop.f32.mrb[11].mxu1  ;;  %2450 = vrot.lane.b32.xlu1 %v2837_v27, %s2998_s17 }
 0x1ce   : > { %2444 = vrot.lane.b32.xlu0 %v2405_v39, %s2998_s17 }
 0x1d0   : > { %2446 = vrot.lane.b32.xlu1 %v2408_v50, %s2998_s17 }
 0x1e1   : > { %v2840_v36 = vpop.f32.mrb[12].mxu1 }
 0x1e2   : > { %v2421_v19 = vpop.f32.mrb[13].mxu1 }
 0x1e3   : > { %2452 = vrot.lane.b32.xlu0 %v2421_v19, %s2998_s17  ;;  %v2841_v8 = vpop.f32.mrb[14].mxu1 }
 0x1e4   : > { %v2424_v18 = vpop.f32.mrb[15].mxu1 }
 0x1e5   : > { %2454 = vrot.lane.b32.xlu1 %v2424_v18, %s2998_s17 }
 0x1e7   : > { %2456 = vrot.lane.b32.xlu0 %v2840_v36, %s2998_s17 }
 0x1e9   : > { %2458 = vrot.lane.b32.xlu1 %v2841_v8, %s2998_s17 }
 0x1ed   : > { %v2800_v26 = vpop.f32.mrb[0].mxu0 }
 0x1ee   : > { %v833_v21 = vpop.f32.mrb[1].mxu0 }
 0x1ef   : > { %v2801_v40 = vpop.f32.mrb[2].mxu0 }
 0x1f0   : > { %v836_v22 = vpop.f32.mrb[3].mxu0 }
 0x205   : > { %v2804_v49 = vpop.f32.mrb[4].mxu0 }
 0x206   : > { %v849_v13 = vpop.f32.mrb[5].mxu0 }
 0x207   : > { %v2805_v43 = vpop.f32.mrb[6].mxu0 }
 0x208   : > { %v852_v0 = vpop.f32.mrb[7].mxu0 }
 0x214   : > { %v1410_v25 = vpop.permute.xlu0 %1409 }
 0x215   : > { %v1432_v24 = vsel %vm1429_vm13, %v2800_v26, %v1410_v25 }
 0x216   : > { %2942 = vtanh.f32 %v1432_v24  ;;  %v1412_v44 = vpop.permute.xlu1 %1411 }
 0x217   : > { %v1433_v2 = vsel %vm1429_vm13, %v2801_v40, %v1412_v44 }
 0x218   : > { %2944 = vtanh.f32 %v1433_v2  ;;  %v1406_v60 = vpop.permute.xlu0 %1405 }
 0x219   : > { %v1430_v51 = vsel %vm1429_vm13, %v833_v21, %v1406_v60 }
 0x21a   : > { %2946 = vtanh.f32 %v1430_v51  ;;  %v1408_v56 = vpop.permute.xlu1 %1407 }
 0x21b   : > { %v1431_v14 = vsel %vm1429_vm13, %v836_v22, %v1408_v56 }
 0x21c   : > { %2948 = vtanh.f32 %v1431_v14 }
 0x220   : > { %v2824_v6 = vpop.f32.mrb[8].mxu0  ;;  %v2943_v3 = vpop.eup %2942 }
 0x221   : > { %v1875_v62 = vpop.f32.mrb[9].mxu0  ;;  %1449 = vst.msk [vmem:[%s3868_s21 + $0x20] sm:$0xff] %vm1446_vm14, %v2943_v3 }
 0x222   : > { %v2825_v28 = vpop.f32.mrb[10].mxu0  ;;  %v2945_v55 = vpop.eup %2944 }
 0x223   : > { %v1878_v17 = vpop.f32.mrb[11].mxu0  ;;  %1450 = vst.msk [vmem:[%s3868_s21 + $0x30] sm:$0xff] %vm1446_vm14, %v2945_v55 }
 0x224   : > { %v2947_v41 = vpop.eup %2946  ;;  %v1418_v52 = vpop.permute.xlu0 %1417 }
 0x225   : > { %1447 = vst.msk [vmem:[%s3868_s21] sm:$0xff] %vm1446_vm14, %v2947_v41  ;;  %v1436_v58 = vsel %vm1429_vm13, %v2804_v49, %v1418_v52 }
 0x226   : > { %v2949_v5 = vpop.eup %2948  ;;  %2950 = vtanh.f32 %v1436_v58  ;;  %v1420_v46 = vpop.permute.xlu1 %1419 }
 0x227   : > { %1448 = vst.msk [vmem:[%s3868_s21 + $0x10] sm:$0xff] %vm1446_vm14, %v2949_v5  ;;  %v1437_v34 = vsel %vm1429_vm13, %v2805_v43, %v1420_v46 }
 0x228   : > { %2952 = vtanh.f32 %v1437_v34  ;;  %v1414_v35 = vpop.permute.xlu0 %1413 }
 0x229   : > { %v1434_v15 = vsel %vm1429_vm13, %v849_v13, %v1414_v35 }
 0x22a   : > { %2954 = vtanh.f32 %v1434_v15  ;;  %v1416_v16 = vpop.permute.xlu1 %1415 }
 0x22b   : > { %v1435_v37 = vsel %vm1429_vm13, %v852_v0, %v1416_v16 }
 0x22c   : > { %2956 = vtanh.f32 %v1435_v37 }
 0x230   : > { %v2951_v30 = vpop.eup %2950 }
 0x231   : > { %1453 = vst.msk [vmem:[%s3868_s21 + $0x60] sm:$0xff] %vm1446_vm14, %v2951_v30 }
 0x232   : > { %v2953_v1 = vpop.eup %2952 }
 0x233   : > { %1454 = vst.msk [vmem:[%s3868_s21 + $0x70] sm:$0xff] %vm1446_vm14, %v2953_v1 }
 0x234   : > { %v2955_v4 = vpop.eup %2954 }
 0x235   : > { %1451 = vst.msk [vmem:[%s3868_s21 + $0x40] sm:$0xff] %vm1446_vm14, %v2955_v4 }
 0x236   : > { %v2957_v48 = vpop.eup %2956 }
 0x237   : > { %1452 = vst.msk [vmem:[%s3868_s21 + $0x50] sm:$0xff] %vm1446_vm14, %v2957_v48 }
 0x238   : > { %v2828_v61 = vpop.f32.mrb[12].mxu0 }
 0x239   : > { %v1891_v59 = vpop.f32.mrb[13].mxu0 }
 0x23a   : > { %v2829_v38 = vpop.f32.mrb[14].mxu0 }
 0x23b   : > { %v1894_v20 = vpop.f32.mrb[15].mxu0 }
 0x23c   : > { %v2449_v31 = vpop.permute.xlu0 %2448 }
 0x23d   : > { %v2470_v12 = vsel %vm1429_vm13, %v2824_v6, %v2449_v31 }
 0x23e   : > { %2958 = vtanh.f32 %v2470_v12  ;;  %v2451_v53 = vpop.permute.xlu1 %2450 }
 0x23f   : > { %v2471_v7 = vsel %vm1429_vm13, %v2825_v28, %v2451_v53 }
 0x240   : > { %2960 = vtanh.f32 %v2471_v7  ;;  %v2445_v45 = vpop.permute.xlu0 %2444 }
 0x241   : > { %v2468_v9 = vsel %vm1429_vm13, %v1875_v62, %v2445_v45 }
 0x242   : > { %2962 = vtanh.f32 %v2468_v9  ;;  %v2447_v33 = vpop.permute.xlu1 %2446 }
 0x243   : > { %v2469_v29 = vsel %vm1429_vm13, %v1878_v17, %v2447_v33 }
 0x244   : > { %2964 = vtanh.f32 %v2469_v29 }
 0x248   : > { %v2959_v11 = vpop.eup %2958 }
 0x249   : > { %2733 = vst.msk [vmem:[%s3868_s21 + $0x28] sm:$0xff] %vm1446_vm14, %v2959_v11 }
 0x24a   : > { %v2961_v63 = vpop.eup %2960 }
 0x24b   : > { %2734 = vst.msk [vmem:[%s3868_s21 + $0x38] sm:$0xff] %vm1446_vm14, %v2961_v63 }
 0x24c   : > { %v2963_v54 = vpop.eup %2962 }
 0x24d   : > { %2731 = vst.msk [vmem:[%s3868_s21 + $0x8] sm:$0xff] %vm1446_vm14, %v2963_v54 }
 0x24e   : > { %v2965_v23 = vpop.eup %2964 }
 0x24f   : > { %2732 = vst.msk [vmem:[%s3868_s21 + $0x18] sm:$0xff] %vm1446_vm14, %v2965_v23 }
 0x255   : > { %v2453_v47 = vpop.permute.xlu0 %2452 }
 0x256   : > { %v2472_v32 = vsel %vm1429_vm13, %v1891_v59, %v2453_v47 }
 0x257   : > { %2966 = vtanh.f32 %v2472_v32  ;;  %v2455_v57 = vpop.permute.xlu1 %2454 }
 0x258   : > { %v2473_v42 = vsel %vm1429_vm13, %v1894_v20, %v2455_v57 }
 0x259   : > { %2968 = vtanh.f32 %v2473_v42  ;;  %v2457_v10 = vpop.permute.xlu0 %2456 }
 0x25a   : > { %v2474_v39 = vsel %vm1429_vm13, %v2828_v61, %v2457_v10 }
 0x25b   : > { %2970 = vtanh.f32 %v2474_v39  ;;  %v2459_v27 = vpop.permute.xlu1 %2458 }
 0x25c   : > { %v2475_v50 = vsel %vm1429_vm13, %v2829_v38, %v2459_v27 }
 0x25d   : > { %2972 = vtanh.f32 %v2475_v50 }
 0x261   : > { %v2967_v36 = vpop.eup %2966 }
 0x262   : > { %2735 = vst.msk [vmem:[%s3868_s21 + $0x48] sm:$0xff] %vm1446_vm14, %v2967_v36 }
 0x263   : > { %v2969_v19 = vpop.eup %2968 }
 0x264   : > { %2736 = vst.msk [vmem:[%s3868_s21 + $0x58] sm:$0xff] %vm1446_vm14, %v2969_v19 }
 0x265   : > { %v2971_v8 = vpop.eup %2970 }
 0x266   : > { %2737 = vst.msk [vmem:[%s3868_s21 + $0x68] sm:$0xff] %vm1446_vm14, %v2971_v8 }
 0x267   : > { %v2973_v18 = vpop.eup %2972 }
 0x268   : > { %2738 = vst.msk [vmem:[%s3868_s21 + $0x78] sm:$0xff] %vm1446_vm14, %v2973_v18 }
 0x269 PF: > { %s13_s12 = sadd.s32 1, %s2992_s12  }
 0x26a   : > { %p10_p4 = scmp.ge.s32.totalorder %s13_s12, 4  }
 0x26c   :  { %12 = sbr.rel (!%p10_p4) target bundleno = 1 (0x1), region = 68 }

</bundles_post_ra>
